<compile_context>
chip_gen: v5e
topology: v5e:2x2
jax: 0.10.0
libtpu: 0.0.40
codegen_flags: <defaults>
</compile_context>

<pallas_src>
import functools

import numpy as np
import jax
import jax.numpy as jnp
from jax import lax
from jax.experimental import pallas as pl
from jax.experimental.pallas import tpu as pltpu

# ---------------- config (consistent with the torch module) -----------------
EMB_DIM = 16                     # config['embedding_dim']
ATT_DIM = EMB_DIM * 4            # self.embedding_dim = 64
NUM_HEADS = 8
HEAD_DIM = ATT_DIM // NUM_HEADS  # 8
FC1_IN = EMB_DIM * 8             # 128
FC1_OUT = 64                     # first_fc_hidden_dim
FC2_OUT = 64                     # second_fc_hidden_dim
LOCAL_LR = 5e-3

NUM_RATE, NUM_GENRE, NUM_DIRECTOR, NUM_ACTOR = 6, 25, 2186, 8030
NUM_GENDER, NUM_AGE, NUM_OCC, NUM_AREA = 2, 7, 21, 5

# padded shapes used inside the fused kernel (sublane/lane friendly)
S_PAD = 16                       # user + up to 15 items per set
SEQ2 = 2 * S_PAD                 # support sequence + query sequence stacked
B_PAD = 8                        # per-set batch rows kept for X / y
HS = NUM_HEADS * SEQ2            # 256 = head-replicated stacked sequence
DATA_ROWS = SEQ2 + 2 * B_PAD     # 48: seq rows, y rows, grad-scale rows
WQKV_ROWS = ATT_DIM + 8          # 72: 64 weight rows + bias row + pad
WMISC_ROWS = FC1_IN + 2 * ATT_DIM  # 256: fc1_w | wo | fc2_w stacked on sublanes
MASK_ROWS = 2 * HS + NUM_HEADS + SEQ2  # 552

# Column permutation taking the torch qkv_proj output layout (head-interleaved
# [q0|k0|v0|q1|k1|v1|...], exactly what the reference reshape(S, H, 3*hd)
# implies) to the kernel layout [Q(64)|K(64)|V(64)] with contiguous per-head
# 8-lane sub-blocks.
QKV_PERM = np.array(
    [((c % ATT_DIM) // HEAD_DIM) * 3 * HEAD_DIM
     + (c // ATT_DIM) * HEAD_DIM
     + (c % HEAD_DIM)
     for c in range(3 * ATT_DIM)], dtype=np.int32)


# --------------------- compile-time constant mask slab ----------------------
def build_mask_slab(n_support, n_query):
    """All attention / gradient masks as one [552, 64] numpy constant."""
    slab = np.zeros((MASK_ROWS, ATT_DIM), np.float32)
    lanes = np.arange(ATT_DIM)
    rows = np.arange(HS)

    # rows [0, HS): block-diagonal per-head mask for the sublane-replicated q
    slab[0:HS, :] = (lanes[None, :] // HEAD_DIM == (rows // SEQ2)[:, None])

    # rows [HS, 2*HS), lanes [0, SEQ2): additive key mask
    #   (support rows only see support keys, query rows only query keys,
    #    padded key positions removed)
    pos = rows % SEQ2
    set_of_row = pos // S_PAD
    cols = np.arange(SEQ2)
    set_of_col = cols // S_PAD
    pos_in_set = cols % S_PAD
    real_len = np.where(set_of_col == 0, 1 + n_support, 1 + n_query)
    valid = ((set_of_row[:, None] == set_of_col[None, :])
             & (pos_in_set[None, :] < real_len[None, :]))
    slab[HS:2 * HS, 0:SEQ2] = np.where(valid, 0.0, -1e30)

    # rows [2*HS, 2*HS+H): per-head lane mask used to regather diagonal blocks
    heads = np.arange(NUM_HEADS)
    slab[2 * HS:2 * HS + NUM_HEADS, :] = (
        lanes[None, :] // HEAD_DIM == heads[:, None])

    # rows [2*HS+H, 2*HS+H+SEQ2), lane 0: user-row selector (rows 0 and S_PAD)
    slab[2 * HS + NUM_HEADS + 0, 0] = 1.0
    slab[2 * HS + NUM_HEADS + S_PAD, 0] = 1.0
    return slab


# ------------------------------ fused kernel --------------------------------
def meatt_fused_kernel(data_ref, wqkv_ref, wmisc_ref, vecs_ref, masks_ref,
                       out_ref, *, num_local_update, local_lr, lr_decay):
    f32, bf16 = jnp.float32, jnp.bfloat16
    D, H = ATT_DIM, NUM_HEADS

    # ---- unpack packed slabs (static, sublane-aligned slices) --------------
    seq_emb = data_ref[0:SEQ2, :]                             # [32, 64] sup|qry
    y_true = data_ref[SEQ2:SEQ2 + B_PAD, 0:1]                 # [8, 1]
    gscale = data_ref[SEQ2 + B_PAD:SEQ2 + 2 * B_PAD, 0:1]     # [8, 1]

    w_qkv = wqkv_ref[0:D, :]                                  # [64, 384] wu|wi
    b_qkv = wqkv_ref[D:D + 1, :]                              # [1, 384]  bu|bi

    fc1_w = wmisc_ref[0:FC1_IN, :]                            # [128, 64]
    wo = wmisc_ref[FC1_IN:FC1_IN + D, :]                      # [64, 64]
    fc2_w = wmisc_ref[FC1_IN + D:FC1_IN + 2 * D, :]           # [64, 64]

    bo = vecs_ref[0:1, :]
    gamma = vecs_ref[1:2, :]
    beta = vecs_ref[2:3, :]
    fc1_b = vecs_ref[3:4, :]
    fc2_b = vecs_ref[4:5, :]
    w3t0 = vecs_ref[5:6, :]
    b3_0 = vecs_ref[6:7, 0:1]

    blk_mask = masks_ref[0:HS, :]                             # [256, 64]
    add_mask = masks_ref[HS:2 * HS, 0:SEQ2]                   # [256, 32]
    head_cols = masks_ref[2 * HS:2 * HS + H, :]               # [8, 64]
    is_user = masks_ref[2 * HS + H:2 * HS + H + SEQ2, 0:1]    # [32, 1]

    # ---- attention for support + query sequences in ONE pass ---------------
    # fused user/item QKV projection (one MXU push) + per-row half select.
    qkv_all = jnp.dot(seq_emb.astype(bf16), w_qkv.astype(bf16),
                      preferred_element_type=f32) + b_qkv     # [32, 384]
    qkv_u = qkv_all[:, 0:3 * D]
    qkv_i = qkv_all[:, 3 * D:6 * D]
    qkv = qkv_i + is_user * (qkv_u - qkv_i)                   # [32, 192]
    q = qkv[:, 0:D]
    k = qkv[:, D:2 * D]
    v = qkv[:, 2 * D:3 * D]

    # all 8 heads x 2 sets in a single pair of MXU contractions: replicate q
    # along sublanes and block-diagonal-mask it per head.
    q_stk = jnp.concatenate([q] * H, axis=0) * blk_mask       # [256, 64]
    logits = lax.dot_general(q_stk.astype(bf16), k.astype(bf16),
                             (((1,), (1,)), ((), ())),
                             preferred_element_type=f32)
    logits = logits * (1.0 / float(HEAD_DIM) ** 0.5) + add_mask   # [256, 32]
    m = jnp.max(logits, axis=-1, keepdims=True)
    p = jnp.exp(logits - m)
    attn = p * pl.reciprocal(jnp.sum(p, axis=-1, keepdims=True), approx=True)
    av = jnp.dot(attn.astype(bf16), v.astype(bf16),
                 preferred_element_type=f32)                  # [256, 64]

    # regather the per-head diagonal blocks back to [32, 64] (8 VPU FMAs)
    values = av[0:SEQ2, :] * head_cols[0:1, :]
    for h in range(1, H):
        values = values + av[h * SEQ2:(h + 1) * SEQ2, :] * head_cols[h:h + 1, :]

    o = jnp.dot(values.astype(bf16), wo.astype(bf16),
                preferred_element_type=f32) + bo + seq_emb
    mean = jnp.mean(o, axis=-1, keepdims=True)
    var = jnp.mean((o - mean) ** 2, axis=-1, keepdims=True)
    o = (o - mean) * lax.rsqrt(var + 1e-5) * gamma + beta     # [32, 64]

    # fc1 inputs: X = [user features (broadcast) | item features]
    Xs = jnp.concatenate([jnp.broadcast_to(o[0:1, :], (B_PAD, D)),
                          o[1:1 + B_PAD, :]], axis=1)         # [8, 128]
    Xq = jnp.concatenate([jnp.broadcast_to(o[S_PAD:S_PAD + 1, :], (B_PAD, D)),
                          o[S_PAD + 1:S_PAD + 1 + B_PAD, :]], axis=1)
    Xs_b = Xs.astype(bf16)

    def head_forward(X_b, w1, b1, w2, b2, w3t, b3):
        h1 = jnp.maximum(jnp.dot(X_b, w1.astype(bf16),
                                 preferred_element_type=f32) + b1, 0.0)
        h2 = jnp.maximum(jnp.dot(h1.astype(bf16), w2.astype(bf16),
                                 preferred_element_type=f32) + b2, 0.0)
        y = jnp.sum(h2 * w3t, axis=-1, keepdims=True) + b3
        return y, h1, h2

    # ---- MAML inner loop, fully unrolled at trace time ----------------------
    # (num_local_update is static; equivalent to lax.fori_loop(unroll=True),
    #  constant-folding the lr * lr_decay carry.  SGD updates stay f32.)
    w1, b1, w2, b2, w3t, b3 = fc1_w, fc1_b, fc2_w, fc2_b, w3t0, b3_0
    lr = float(local_lr)
    for _ in range(num_local_update):
        y, h1, h2 = head_forward(Xs_b, w1, b1, w2, b2, w3t, b3)
        dy = gscale * (y - y_true)                            # [8, 1]
        g_w3t = jnp.sum(dy * h2, axis=0, keepdims=True)       # [1, 64]
        g_b3 = jnp.sum(dy, axis=0, keepdims=True)             # [1, 1]
        dh2 = (dy * w3t) * (h2 > 0).astype(f32)               # [8, 64]
        g_w2 = lax.dot_general(h1.astype(bf16), dh2.astype(bf16),
                               (((0,), (0,)), ((), ())),
                               preferred_element_type=f32)    # [64, 64]
        g_b2 = jnp.sum(dh2, axis=0, keepdims=True)
        dh1 = lax.dot_general(dh2.astype(bf16), w2.astype(bf16),
                              (((1,), (1,)), ((), ())),
                              preferred_element_type=f32) * (h1 > 0).astype(f32)
        g_w1 = lax.dot_general(Xs_b, dh1.astype(bf16),
                               (((0,), (0,)), ((), ())),
                               preferred_element_type=f32)    # [128, 64]
        g_b1 = jnp.sum(dh1, axis=0, keepdims=True)
        w1 = w1 - lr * g_w1
        b1 = b1 - lr * g_b1
        w2 = w2 - lr * g_w2
        b2 = b2 - lr * g_b2
        w3t = w3t - lr * g_w3t
        b3 = b3 - lr * g_b3
        lr = lr * lr_decay

    yq, _, _ = head_forward(Xq.astype(bf16), w1, b1, w2, b2, w3t, b3)
    # single lane-dense (unmasked) [8,128] store; wrapper keeps column 0
    out_ref[...] = jnp.broadcast_to(yq, (B_PAD, FC1_IN))


# ------------------------------- JAX glue -----------------------------------
def item_embeddings(params, x):
    """rate gather + genre/director/actor multi-hot projections (XLA glue)."""
    rate_idx = x[:, 0]
    genre = x[:, 1:26].astype(jnp.float32)
    director = x[:, 26:2212].astype(jnp.float32)
    actor = x[:, 2212:10242].astype(jnp.float32)
    rate_e = params["emb_rate"][rate_idx]
    # NOTE: like the torch reference, divides by the multi-hot count
    # (all-zero rows would yield NaN there too).
    genre_e = genre @ params["w_genre"] / jnp.sum(genre, 1, keepdims=True)
    director_e = (director @ params["w_director"]
                  / jnp.sum(director, 1, keepdims=True))
    actor_e = actor @ params["w_actor"] / jnp.sum(actor, 1, keepdims=True)
    return jnp.concatenate([rate_e, genre_e, director_e, actor_e],
                           axis=1).astype(jnp.float32)


def user_embedding(params, x):
    return jnp.concatenate([
        params["emb_gender"][x[0, 10242]][None, :],
        params["emb_age"][x[0, 10243]][None, :],
        params["emb_occ"][x[0, 10244]][None, :],
        params["emb_area"][x[0, 10245]][None, :]], axis=1).astype(jnp.float32)


def user_embedding_batch(params, x_first):
    """x_first: [T, 10246] — first row of each set, like the reference's x[0]."""
    return jnp.concatenate([
        params["emb_gender"][x_first[:, 10242]],
        params["emb_age"][x_first[:, 10243]],
        params["emb_occ"][x_first[:, 10244]],
        params["emb_area"][x_first[:, 10245]]], axis=1).astype(jnp.float32)


def pack_weights(params):
    """Permute + pack the static weights into lane-dense slabs.

    Hoisted out of the per-forward path: call once per weight update and pass
    the result to meatt_forward_batch.
    """
    f32 = jnp.float32
    wu = params["wu"][:, QKV_PERM]
    bu = params["bu"][:, QKV_PERM]
    wi = params["wi"][:, QKV_PERM]
    bi = params["bi"][:, QKV_PERM]
    wqkv = jnp.concatenate([wu, wi], axis=1)                     # [64, 384]
    bqkv = jnp.concatenate([bu, bi], axis=1)                     # [1, 384]
    wqkv_slab = jnp.concatenate(
        [wqkv, bqkv,
         jnp.zeros((WQKV_ROWS - ATT_DIM - 1, 6 * ATT_DIM), f32)], axis=0)
    wmisc_slab = jnp.concatenate(
        [params["fc1_w"], params["wo"], params["fc2_w"]], axis=0)  # [256, 64]
    vec_slab = jnp.concatenate(
        [params["bo"], params["gamma"], params["beta"],
         params["fc1_b"], params["fc2_b"], params["out_w"].T,
         jnp.concatenate([params["out_b"],
                          jnp.zeros((1, ATT_DIM - 1), f32)], axis=1),
         jnp.zeros((1, ATT_DIM), f32)], axis=0)                    # [8, 64]
    return {"wqkv": wqkv_slab.astype(f32),
            "wmisc": wmisc_slab.astype(f32),
            "vecs": vec_slab.astype(f32)}


@functools.partial(jax.jit, static_argnums=(5, 6))
def _meatt_forward_batch_jit(params, packed, support_x, support_y, query_x,
                             num_local_update, local_lr):
    f32 = jnp.float32
    lr_decay = 0.95 if num_local_update > 17 else 1.0
    T, Bs = support_x.shape[0], support_x.shape[1]
    Bq = query_x.shape[1]
    assert Bs <= B_PAD and Bq <= B_PAD, "increase B_PAD / S_PAD"

    # ---- embedding glue, batched across all tasks and both sets ------------
    xs_flat = support_x.reshape(T * Bs, -1)
    xq_flat = query_x.reshape(T * Bq, -1)
    item_all = item_embeddings(params, jnp.concatenate([xs_flat, xq_flat], 0))
    item_s = item_all[:T * Bs].reshape(T, Bs, ATT_DIM)
    item_q = item_all[T * Bs:].reshape(T, Bq, ATT_DIM)
    user_s = user_embedding_batch(params, support_x[:, 0, :])
    user_q = user_embedding_batch(params, query_x[:, 0, :])

    # ---- per-task data slab: [seq_support | seq_query | y | grad_scale] ----
    data = jnp.zeros((T, DATA_ROWS, ATT_DIM), f32)
    data = data.at[:, 0, :].set(user_s)
    data = data.at[:, 1:1 + Bs, :].set(item_s)
    data = data.at[:, S_PAD, :].set(user_q)
    data = data.at[:, S_PAD + 1:S_PAD + 1 + Bq, :].set(item_q)
    data = data.at[:, SEQ2:SEQ2 + Bs, 0].set(support_y.astype(f32))
    data = data.at[:, SEQ2 + B_PAD:SEQ2 + B_PAD + Bs, 0].set(2.0 / Bs)

    masks = jnp.asarray(build_mask_slab(Bs, Bq))                   # constant

    att_flops = (2 * SEQ2 * ATT_DIM * 6 * ATT_DIM
                 + 2 * HS * ATT_DIM * SEQ2
                 + 2 * HS * SEQ2 * ATT_DIM
                 + 2 * SEQ2 * ATT_DIM * ATT_DIM)
    head_flops = 2 * B_PAD * (FC1_IN * FC1_OUT + FC1_OUT * FC2_OUT + FC2_OUT)
    operands = (data, packed["wqkv"], packed["wmisc"], packed["vecs"], masks)
    cost = pl.CostEstimate(
        flops=int(T * (att_flops + (3 * num_local_update + 1) * head_flops)),
        transcendentals=int(T * (HS * SEQ2 + HS)),
        bytes_accessed=int(sum(o.size * o.dtype.itemsize for o in operands)
                           + T * B_PAD * FC1_IN * 4))

    kernel = functools.partial(
        meatt_fused_kernel, num_local_update=num_local_update,
        local_lr=float(local_lr), lr_decay=lr_decay)

    out = pl.pallas_call(
        kernel,
        out_shape=jax.ShapeDtypeStruct((T, B_PAD, FC1_IN), f32),
        grid=(T,),
        in_specs=[
            pl.BlockSpec((None, DATA_ROWS, ATT_DIM), lambda t: (t, 0, 0)),
            pl.BlockSpec((WQKV_ROWS, 6 * ATT_DIM), lambda t: (0, 0)),
            pl.BlockSpec((WMISC_ROWS, ATT_DIM), lambda t: (0, 0)),
            pl.BlockSpec((8, ATT_DIM), lambda t: (0, 0)),
            pl.BlockSpec((MASK_ROWS, ATT_DIM), lambda t: (0, 0)),
        ],
        out_specs=pl.BlockSpec((None, B_PAD, FC1_IN), lambda t: (t, 0, 0)),
        compiler_params=pltpu.CompilerParams(
            dimension_semantics=("parallel",)),
        cost_estimate=cost,
    )(*operands)

    return out[:, :Bq, 0:1]


def meatt_forward_batch(params, packed, support_xs, support_ys, query_xs,
                        num_local_update, local_lr=LOCAL_LR):
    """Batched MeAtt.forward over a task axis: returns [T, Bq, 1]."""
    return _meatt_forward_batch_jit(params, packed, support_xs, support_ys,
                                    query_xs, int(num_local_update),
                                    float(local_lr))


def meatt_forward(params, packed, support_x, support_y, query_x,
                  num_local_update, local_lr=LOCAL_LR):
    """Single-task MeAtt.forward (MAML inner loop + query prediction)."""
    return meatt_forward_batch(params, packed, support_x[None], support_y[None],
                               query_x[None], num_local_update, local_lr)[0]


# ------------------------ pure-JAX reference (torch semantics) --------------
def reference_forward(params, support_x, support_y, query_x, num_local_update,
                      local_lr=LOCAL_LR):
    lr_decay = 0.95 if num_local_update > 17 else 1.0
    hp = jax.lax.Precision.HIGHEST
    FAST_KEYS = ["fc1_w", "fc1_b", "fc2_w", "fc2_b", "out_w", "out_b"]

    def features(x):
        item_emb = item_embeddings(params, x)
        user_emb = user_embedding(params, x)
        user_qkv = jnp.dot(user_emb, params["wu"], precision=hp) + params["bu"]
        item_qkv = jnp.dot(item_emb, params["wi"], precision=hp) + params["bi"]
        qkv = jnp.concatenate([user_qkv, item_qkv], axis=0)
        S = qkv.shape[0]
        qkv = qkv.reshape(S, NUM_HEADS, 3 * HEAD_DIM).transpose(1, 0, 2)
        q, k, v = jnp.split(qkv, 3, axis=-1)
        logits = jnp.einsum("hid,hjd->hij", q, k,
                            precision=hp) / jnp.sqrt(jnp.float32(HEAD_DIM))
        attn = jax.nn.softmax(logits, axis=-1)
        values = jnp.einsum("hij,hjd->hid", attn, v, precision=hp)
        values = values.transpose(1, 0, 2).reshape(S, ATT_DIM)
        o = jnp.dot(values, params["wo"], precision=hp) + params["bo"]
        o = o + jnp.concatenate([user_emb, item_emb], axis=0)
        mean = o.mean(-1, keepdims=True)
        var = ((o - mean) ** 2).mean(-1, keepdims=True)
        o = (o - mean) / jnp.sqrt(var + 1e-5) * params["gamma"] + params["beta"]
        return jnp.concatenate(
            [jnp.broadcast_to(o[0:1], (x.shape[0], ATT_DIM)), o[1:]], axis=1)

    def head(X, fast):
        h1 = jax.nn.relu(jnp.dot(X, fast["fc1_w"], precision=hp) + fast["fc1_b"])
        h2 = jax.nn.relu(jnp.dot(h1, fast["fc2_w"], precision=hp) + fast["fc2_b"])
        y = jnp.dot(h2, fast["out_w"], precision=hp) + fast["out_b"]
        return y, h1, h2

    Xs = features(support_x)
    yt = support_y.reshape(-1, 1)
    fast = {k: params[k] for k in FAST_KEYS}
    for idx in range(num_local_update):
        y, h1, h2 = head(Xs, fast)
        dy = 2.0 * (y - yt) / y.size
        g = {"out_w": jnp.dot(h2.T, dy, precision=hp),
             "out_b": dy.sum(0, keepdims=True)}
        dh2 = jnp.dot(dy, fast["out_w"].T, precision=hp) * (h2 > 0)
        g["fc2_w"] = jnp.dot(h1.T, dh2, precision=hp)
        g["fc2_b"] = dh2.sum(0, keepdims=True)
        dh1 = jnp.dot(dh2, fast["fc2_w"].T, precision=hp) * (h1 > 0)
        g["fc1_w"] = jnp.dot(Xs.T, dh1, precision=hp)
        g["fc1_b"] = dh1.sum(0, keepdims=True)
        lr = local_lr * lr_decay ** idx
        fast = {k: fast[k] - lr * g[k] for k in FAST_KEYS}
    Xq = features(query_x)
    yq, _, _ = head(Xq, fast)
    return yq


# ----------------------------- init / inputs --------------------------------
def init_params(key):
    def nrm(k, shape, scale=0.05):
        return (scale * jax.random.normal(k, shape)).astype(jnp.float32)

    ks = iter(jax.random.split(key, 32))
    D = ATT_DIM
    return {
        "emb_rate": nrm(next(ks), (NUM_RATE, EMB_DIM)),
        "w_genre": nrm(next(ks), (NUM_GENRE, EMB_DIM)),
        "w_director": nrm(next(ks), (NUM_DIRECTOR, EMB_DIM)),
        "w_actor": nrm(next(ks), (NUM_ACTOR, EMB_DIM)),
        "emb_gender": nrm(next(ks), (NUM_GENDER, EMB_DIM)),
        "emb_age": nrm(next(ks), (NUM_AGE, EMB_DIM)),
        "emb_occ": nrm(next(ks), (NUM_OCC, EMB_DIM)),
        "emb_area": nrm(next(ks), (NUM_AREA, EMB_DIM)),
        # qkv projections stored [in, out] in the torch head-interleaved
        # column layout (what the reference reshape-based head split implies)
        "wu": nrm(next(ks), (D, 3 * D)), "bu": jnp.zeros((1, 3 * D), jnp.float32),
        "wi": nrm(next(ks), (D, 3 * D)), "bi": jnp.zeros((1, 3 * D), jnp.float32),
        "wo": nrm(next(ks), (D, D)), "bo": jnp.zeros((1, D), jnp.float32),
        "gamma": jnp.ones((1, D), jnp.float32),
        "beta": jnp.zeros((1, D), jnp.float32),
        "fc1_w": nrm(next(ks), (FC1_IN, FC1_OUT)),
        "fc1_b": jnp.zeros((1, FC1_OUT), jnp.float32),
        "fc2_w": nrm(next(ks), (FC1_OUT, FC2_OUT)),
        "fc2_b": jnp.zeros((1, FC2_OUT), jnp.float32),
        "out_w": nrm(next(ks), (FC2_OUT, 1)),
        "out_b": jnp.zeros((1, 1), jnp.float32),
    }


def make_x(key, B):
    ks = jax.random.split(key, 8)
    rate = jax.random.randint(ks[0], (B, 1), 0, NUM_RATE)
    genre = (jax.random.uniform(ks[1], (B, NUM_GENRE)) < 0.2).astype(jnp.int32)
    genre = genre.at[:, 0].set(1)
    director = (jax.random.uniform(ks[2], (B, NUM_DIRECTOR)) < 0.01).astype(jnp.int32)
    director = director.at[:, 0].set(1)
    actor = (jax.random.uniform(ks[3], (B, NUM_ACTOR)) < 0.01).astype(jnp.int32)
    actor = actor.at[:, 0].set(1)
    gender = jax.random.randint(ks[4], (B, 1), 0, NUM_GENDER)
    age = jax.random.randint(ks[5], (B, 1), 0, NUM_AGE)
    occ = jax.random.randint(ks[6], (B, 1), 0, NUM_OCC)
    area = jax.random.randint(ks[7], (B, 1), 0, NUM_AREA)
    return jnp.concatenate(
        [rate, genre, director, actor, gender, age, occ, area],
        axis=1).astype(jnp.int32)


if __name__ == "__main__":
    key = jax.random.PRNGKey(0)
    k_params, k_data = jax.random.split(key)

    params = init_params(k_params)
    packed = pack_weights(params)        # hoisted: once per weight set

    T, Bs, Bq = 2, 8, 4                  # 2 tasks batched over the kernel grid
    tkeys = jax.random.split(k_data, 3 * T)
    support_xs = jnp.stack([make_x(tkeys[3 * t], Bs) for t in range(T)])
    support_ys = jnp.stack([jax.random.uniform(tkeys[3 * t + 1], (Bs,),
                                               minval=1.0, maxval=5.0)
                            for t in range(T)])
    query_xs = jnp.stack([make_x(tkeys[3 * t + 2], Bq) for t in range(T)])

    preds = meatt_forward_batch(params, packed, support_xs, support_ys,
                                query_xs, num_local_update=2)
    preds = jax.block_until_ready(preds)
    assert preds.shape == (T, Bq, 1)
    assert bool(jnp.all(jnp.isfinite(preds)))

    max_err = 0.0
    for t in range(T):
        ref = reference_forward(params, support_xs[t], support_ys[t],
                                query_xs[t], 2)
        max_err = max(max_err, float(jnp.max(jnp.abs(preds[t] - ref))))
    assert max_err < 1e-2, f"kernel/reference mismatch: max abs err={max_err}"
    print("KERNEL_OK")
</pallas_src>

<mosaic_0001>
module attributes {stable_mosaic.version = 11 : i64} {
  func.func @meatt_fused_kernel(%arg0: i32, %arg1: memref<1x48x64xf32, #tpu.memory_space<vmem>>, %arg2: memref<72x384xf32, #tpu.memory_space<vmem>>, %arg3: memref<256x64xf32, #tpu.memory_space<vmem>>, %arg4: memref<8x64xf32, #tpu.memory_space<vmem>>, %arg5: memref<552x64xf32, #tpu.memory_space<vmem>>, %arg6: memref<1x8x128xf32, #tpu.memory_space<vmem>>) attributes {dimension_semantics = [#tpu.dimension_semantics<parallel>], iteration_bounds = array<i64: 2>, scalar_prefetch = 0 : i64, scratch_operands = 0 : i64, tpu.core_type = #tpu.core_type<tc>, window_params = [{transform_indices = @transform_0, window_bounds = array<i64: 1, 48, 64>}, {pipeline_mode = #tpu.pipeline_mode<synchronous>, transform_indices = @transform_1, window_bounds = array<i64: 72, 384>}, {pipeline_mode = #tpu.pipeline_mode<synchronous>, transform_indices = @transform_2, window_bounds = array<i64: 256, 64>}, {pipeline_mode = #tpu.pipeline_mode<synchronous>, transform_indices = @transform_3, window_bounds = array<i64: 8, 64>}, {pipeline_mode = #tpu.pipeline_mode<synchronous>, transform_indices = @transform_4, window_bounds = array<i64: 552, 64>}, {transform_indices = @transform_5, window_bounds = array<i64: 1, 8, 128>}]} {
    %c0 = arith.constant 0 : index
    %c0_0 = arith.constant 0 : index
    %c0_1 = arith.constant 0 : index
    %0 = vector.load %arg1[%c0, %c0_0, %c0_1] : memref<1x48x64xf32, #tpu.memory_space<vmem>>, vector<1x32x64xf32>
    %1 = vector.shape_cast %0 : vector<1x32x64xf32> to vector<32x64xf32>
    %c0_2 = arith.constant 0 : index
    %c32 = arith.constant 32 : index
    %c0_3 = arith.constant 0 : index
    %2 = vector.load %arg1[%c0_2, %c32, %c0_3] : memref<1x48x64xf32, #tpu.memory_space<vmem>>, vector<1x8x1xf32>
    %3 = vector.shape_cast %2 : vector<1x8x1xf32> to vector<8x1xf32>
    %c0_4 = arith.constant 0 : index
    %c40 = arith.constant 40 : index
    %c0_5 = arith.constant 0 : index
    %4 = vector.load %arg1[%c0_4, %c40, %c0_5] : memref<1x48x64xf32, #tpu.memory_space<vmem>>, vector<1x8x1xf32>
    %5 = vector.shape_cast %4 : vector<1x8x1xf32> to vector<8x1xf32>
    %c0_6 = arith.constant 0 : index
    %c0_7 = arith.constant 0 : index
    %6 = vector.load %arg2[%c0_6, %c0_7] : memref<72x384xf32, #tpu.memory_space<vmem>>, vector<64x384xf32>
    %c64 = arith.constant 64 : index
    %c0_8 = arith.constant 0 : index
    %7 = vector.load %arg2[%c64, %c0_8] : memref<72x384xf32, #tpu.memory_space<vmem>>, vector<1x384xf32>
    %c0_9 = arith.constant 0 : index
    %c0_10 = arith.constant 0 : index
    %8 = vector.load %arg3[%c0_9, %c0_10] : memref<256x64xf32, #tpu.memory_space<vmem>>, vector<128x64xf32>
    %c128 = arith.constant 128 : index
    %c0_11 = arith.constant 0 : index
    %9 = vector.load %arg3[%c128, %c0_11] : memref<256x64xf32, #tpu.memory_space<vmem>>, vector<64x64xf32>
    %c192 = arith.constant 192 : index
    %c0_12 = arith.constant 0 : index
    %10 = vector.load %arg3[%c192, %c0_12] : memref<256x64xf32, #tpu.memory_space<vmem>>, vector<64x64xf32>
    %c0_13 = arith.constant 0 : index
    %c0_14 = arith.constant 0 : index
    %11 = vector.load %arg4[%c0_13, %c0_14] : memref<8x64xf32, #tpu.memory_space<vmem>>, vector<1x64xf32>
    %c1 = arith.constant 1 : index
    %c0_15 = arith.constant 0 : index
    %12 = vector.load %arg4[%c1, %c0_15] : memref<8x64xf32, #tpu.memory_space<vmem>>, vector<1x64xf32>
    %c2 = arith.constant 2 : index
    %c0_16 = arith.constant 0 : index
    %13 = vector.load %arg4[%c2, %c0_16] : memref<8x64xf32, #tpu.memory_space<vmem>>, vector<1x64xf32>
    %c3 = arith.constant 3 : index
    %c0_17 = arith.constant 0 : index
    %14 = vector.load %arg4[%c3, %c0_17] : memref<8x64xf32, #tpu.memory_space<vmem>>, vector<1x64xf32>
    %c4 = arith.constant 4 : index
    %c0_18 = arith.constant 0 : index
    %15 = vector.load %arg4[%c4, %c0_18] : memref<8x64xf32, #tpu.memory_space<vmem>>, vector<1x64xf32>
    %c5 = arith.constant 5 : index
    %c0_19 = arith.constant 0 : index
    %16 = vector.load %arg4[%c5, %c0_19] : memref<8x64xf32, #tpu.memory_space<vmem>>, vector<1x64xf32>
    %c6 = arith.constant 6 : index
    %c0_20 = arith.constant 0 : index
    %17 = vector.load %arg4[%c6, %c0_20] : memref<8x64xf32, #tpu.memory_space<vmem>>, vector<1x1xf32>
    %c0_21 = arith.constant 0 : index
    %c0_22 = arith.constant 0 : index
    %18 = vector.load %arg5[%c0_21, %c0_22] : memref<552x64xf32, #tpu.memory_space<vmem>>, vector<256x64xf32>
    %c256 = arith.constant 256 : index
    %c0_23 = arith.constant 0 : index
    %19 = vector.load %arg5[%c256, %c0_23] : memref<552x64xf32, #tpu.memory_space<vmem>>, vector<256x32xf32>
    %c512 = arith.constant 512 : index
    %c0_24 = arith.constant 0 : index
    %20 = vector.load %arg5[%c512, %c0_24] : memref<552x64xf32, #tpu.memory_space<vmem>>, vector<8x64xf32>
    %c520 = arith.constant 520 : index
    %c0_25 = arith.constant 0 : index
    %21 = vector.load %arg5[%c520, %c0_25] : memref<552x64xf32, #tpu.memory_space<vmem>>, vector<32x1xf32>
    %22 = arith.truncf %1 : vector<32x64xf32> to vector<32x64xbf16>
    %23 = arith.truncf %6 : vector<64x384xf32> to vector<64x384xbf16>
    %cst = arith.constant dense<0.000000e+00> : vector<32x384xf32>
    %24 = tpu.matmul %22, %23, %cst {dimension_numbers = #tpu.dot_dimension_numbers<[1], [0], [0], [1], [0, 0, 1, 1], [], []>} : vector<32x64xbf16>, vector<64x384xbf16>, vector<32x384xf32> -> vector<32x384xf32>
    %25 = vector.broadcast %7 : vector<1x384xf32> to vector<32x384xf32>
    %26 = arith.addf %24, %25 : vector<32x384xf32>
    %27 = vector.extract_strided_slice %26 {offsets = [0, 0], sizes = [32, 192], strides = [1, 1]} : vector<32x384xf32> to vector<32x192xf32>
    %28 = vector.extract_strided_slice %26 {offsets = [0, 192], sizes = [32, 192], strides = [1, 1]} : vector<32x384xf32> to vector<32x192xf32>
    %29 = arith.subf %27, %28 : vector<32x192xf32>
    %30 = vector.broadcast %21 : vector<32x1xf32> to vector<32x192xf32>
    %31 = arith.mulf %30, %29 : vector<32x192xf32>
    %32 = arith.addf %28, %31 : vector<32x192xf32>
    %33 = vector.extract_strided_slice %32 {offsets = [0, 0], sizes = [32, 64], strides = [1, 1]} : vector<32x192xf32> to vector<32x64xf32>
    %34 = vector.extract_strided_slice %32 {offsets = [0, 64], sizes = [32, 64], strides = [1, 1]} : vector<32x192xf32> to vector<32x64xf32>
    %35 = vector.extract_strided_slice %32 {offsets = [0, 128], sizes = [32, 64], strides = [1, 1]} : vector<32x192xf32> to vector<32x64xf32>
    %36 = tpu.concatenate %33, %33, %33, %33, %33, %33, %33, %33 in 0 : vector<32x64xf32>, vector<32x64xf32>, vector<32x64xf32>, vector<32x64xf32>, vector<32x64xf32>, vector<32x64xf32>, vector<32x64xf32>, vector<32x64xf32> -> vector<256x64xf32>
    %37 = arith.mulf %36, %18 : vector<256x64xf32>
    %38 = arith.truncf %37 : vector<256x64xf32> to vector<256x64xbf16>
    %39 = arith.truncf %34 : vector<32x64xf32> to vector<32x64xbf16>
    %cst_26 = arith.constant dense<0.000000e+00> : vector<256x32xf32>
    %40 = tpu.matmul %38, %39, %cst_26 {dimension_numbers = #tpu.dot_dimension_numbers<[1], [1], [0], [0], [0, 0, 1, 0], [], []>} : vector<256x64xbf16>, vector<32x64xbf16>, vector<256x32xf32> -> vector<256x32xf32>
    %cst_27 = arith.constant 0.353553385 : f32
    %41 = vector.broadcast %cst_27 : f32 to vector<256x32xf32>
    %42 = arith.mulf %40, %41 : vector<256x32xf32>
    %43 = arith.addf %42, %19 : vector<256x32xf32>
    %cst_28 = arith.constant dense<0xFF800000> : vector<256xf32>
    %44 = vector.multi_reduction <maximumf>, %43, %cst_28 [1] : vector<256x32xf32> to vector<256xf32>
    %45 = vector.shape_cast %44 : vector<256xf32> to vector<256x1xf32>
    %46 = vector.broadcast %45 : vector<256x1xf32> to vector<256x32xf32>
    %47 = arith.subf %43, %46 : vector<256x32xf32>
    %48 = math.exp %47 : vector<256x32xf32>
    %cst_29 = arith.constant dense<0.000000e+00> : vector<256xf32>
    %49 = vector.multi_reduction <add>, %48, %cst_29 [1] : vector<256x32xf32> to vector<256xf32>
    %50 = vector.shape_cast %49 : vector<256xf32> to vector<256x1xf32>
    %51 = tpu.reciprocal %50 {approx = true} : vector<256x1xf32> -> vector<256x1xf32>
    %52 = vector.broadcast %51 : vector<256x1xf32> to vector<256x32xf32>
    %53 = arith.mulf %48, %52 : vector<256x32xf32>
    %54 = arith.truncf %53 : vector<256x32xf32> to vector<256x32xbf16>
    %55 = arith.truncf %35 : vector<32x64xf32> to vector<32x64xbf16>
    %cst_30 = arith.constant dense<0.000000e+00> : vector<256x64xf32>
    %56 = tpu.matmul %54, %55, %cst_30 {dimension_numbers = #tpu.dot_dimension_numbers<[1], [0], [0], [1], [0, 0, 1, 1], [], []>} : vector<256x32xbf16>, vector<32x64xbf16>, vector<256x64xf32> -> vector<256x64xf32>
    %57 = vector.extract_strided_slice %56 {offsets = [0, 0], sizes = [32, 64], strides = [1, 1]} : vector<256x64xf32> to vector<32x64xf32>
    %58 = vector.extract_strided_slice %20 {offsets = [0, 0], sizes = [1, 64], strides = [1, 1]} : vector<8x64xf32> to vector<1x64xf32>
    %59 = vector.broadcast %58 : vector<1x64xf32> to vector<32x64xf32>
    %60 = arith.mulf %57, %59 : vector<32x64xf32>
    %61 = vector.extract_strided_slice %56 {offsets = [32, 0], sizes = [32, 64], strides = [1, 1]} : vector<256x64xf32> to vector<32x64xf32>
    %62 = vector.extract_strided_slice %20 {offsets = [1, 0], sizes = [1, 64], strides = [1, 1]} : vector<8x64xf32> to vector<1x64xf32>
    %63 = vector.broadcast %62 : vector<1x64xf32> to vector<32x64xf32>
    %64 = arith.mulf %61, %63 : vector<32x64xf32>
    %65 = arith.addf %60, %64 : vector<32x64xf32>
    %66 = vector.extract_strided_slice %56 {offsets = [64, 0], sizes = [32, 64], strides = [1, 1]} : vector<256x64xf32> to vector<32x64xf32>
    %67 = vector.extract_strided_slice %20 {offsets = [2, 0], sizes = [1, 64], strides = [1, 1]} : vector<8x64xf32> to vector<1x64xf32>
    %68 = vector.broadcast %67 : vector<1x64xf32> to vector<32x64xf32>
    %69 = arith.mulf %66, %68 : vector<32x64xf32>
    %70 = arith.addf %65, %69 : vector<32x64xf32>
    %71 = vector.extract_strided_slice %56 {offsets = [96, 0], sizes = [32, 64], strides = [1, 1]} : vector<256x64xf32> to vector<32x64xf32>
    %72 = vector.extract_strided_slice %20 {offsets = [3, 0], sizes = [1, 64], strides = [1, 1]} : vector<8x64xf32> to vector<1x64xf32>
    %73 = vector.broadcast %72 : vector<1x64xf32> to vector<32x64xf32>
    %74 = arith.mulf %71, %73 : vector<32x64xf32>
    %75 = arith.addf %70, %74 : vector<32x64xf32>
    %76 = vector.extract_strided_slice %56 {offsets = [128, 0], sizes = [32, 64], strides = [1, 1]} : vector<256x64xf32> to vector<32x64xf32>
    %77 = vector.extract_strided_slice %20 {offsets = [4, 0], sizes = [1, 64], strides = [1, 1]} : vector<8x64xf32> to vector<1x64xf32>
    %78 = vector.broadcast %77 : vector<1x64xf32> to vector<32x64xf32>
    %79 = arith.mulf %76, %78 : vector<32x64xf32>
    %80 = arith.addf %75, %79 : vector<32x64xf32>
    %81 = vector.extract_strided_slice %56 {offsets = [160, 0], sizes = [32, 64], strides = [1, 1]} : vector<256x64xf32> to vector<32x64xf32>
    %82 = vector.extract_strided_slice %20 {offsets = [5, 0], sizes = [1, 64], strides = [1, 1]} : vector<8x64xf32> to vector<1x64xf32>
    %83 = vector.broadcast %82 : vector<1x64xf32> to vector<32x64xf32>
    %84 = arith.mulf %81, %83 : vector<32x64xf32>
    %85 = arith.addf %80, %84 : vector<32x64xf32>
    %86 = vector.extract_strided_slice %56 {offsets = [192, 0], sizes = [32, 64], strides = [1, 1]} : vector<256x64xf32> to vector<32x64xf32>
    %87 = vector.extract_strided_slice %20 {offsets = [6, 0], sizes = [1, 64], strides = [1, 1]} : vector<8x64xf32> to vector<1x64xf32>
    %88 = vector.broadcast %87 : vector<1x64xf32> to vector<32x64xf32>
    %89 = arith.mulf %86, %88 : vector<32x64xf32>
    %90 = arith.addf %85, %89 : vector<32x64xf32>
    %91 = vector.extract_strided_slice %56 {offsets = [224, 0], sizes = [32, 64], strides = [1, 1]} : vector<256x64xf32> to vector<32x64xf32>
    %92 = vector.extract_strided_slice %20 {offsets = [7, 0], sizes = [1, 64], strides = [1, 1]} : vector<8x64xf32> to vector<1x64xf32>
    %93 = vector.broadcast %92 : vector<1x64xf32> to vector<32x64xf32>
    %94 = arith.mulf %91, %93 : vector<32x64xf32>
    %95 = arith.addf %90, %94 : vector<32x64xf32>
    %96 = arith.truncf %95 : vector<32x64xf32> to vector<32x64xbf16>
    %97 = arith.truncf %9 : vector<64x64xf32> to vector<64x64xbf16>
    %cst_31 = arith.constant dense<0.000000e+00> : vector<32x64xf32>
    %98 = tpu.matmul %96, %97, %cst_31 {dimension_numbers = #tpu.dot_dimension_numbers<[1], [0], [0], [1], [0, 0, 1, 1], [], []>} : vector<32x64xbf16>, vector<64x64xbf16>, vector<32x64xf32> -> vector<32x64xf32>
    %99 = vector.broadcast %11 : vector<1x64xf32> to vector<32x64xf32>
    %100 = arith.addf %98, %99 : vector<32x64xf32>
    %101 = arith.addf %100, %1 : vector<32x64xf32>
    %cst_32 = arith.constant dense<0.000000e+00> : vector<32xf32>
    %102 = vector.multi_reduction <add>, %101, %cst_32 [1] : vector<32x64xf32> to vector<32xf32>
    %103 = vector.shape_cast %102 : vector<32xf32> to vector<32x1xf32>
    %cst_33 = arith.constant 6.400000e+01 : f32
    %104 = vector.broadcast %cst_33 : f32 to vector<32x1xf32>
    %105 = arith.divf %103, %104 : vector<32x1xf32>
    %106 = vector.broadcast %105 : vector<32x1xf32> to vector<32x64xf32>
    %107 = arith.subf %101, %106 : vector<32x64xf32>
    %108 = arith.mulf %107, %107 : vector<32x64xf32>
    %cst_34 = arith.constant dense<0.000000e+00> : vector<32xf32>
    %109 = vector.multi_reduction <add>, %108, %cst_34 [1] : vector<32x64xf32> to vector<32xf32>
    %110 = vector.shape_cast %109 : vector<32xf32> to vector<32x1xf32>
    %cst_35 = arith.constant 6.400000e+01 : f32
    %111 = vector.broadcast %cst_35 : f32 to vector<32x1xf32>
    %112 = arith.divf %110, %111 : vector<32x1xf32>
    %113 = vector.broadcast %105 : vector<32x1xf32> to vector<32x64xf32>
    %114 = arith.subf %101, %113 : vector<32x64xf32>
    %cst_36 = arith.constant 9.99999974E-6 : f32
    %115 = vector.broadcast %cst_36 : f32 to vector<32x1xf32>
    %116 = arith.addf %112, %115 : vector<32x1xf32>
    %117 = math.rsqrt %116 : vector<32x1xf32>
    %118 = vector.broadcast %117 : vector<32x1xf32> to vector<32x64xf32>
    %119 = arith.mulf %114, %118 : vector<32x64xf32>
    %120 = vector.broadcast %12 : vector<1x64xf32> to vector<32x64xf32>
    %121 = arith.mulf %119, %120 : vector<32x64xf32>
    %122 = vector.broadcast %13 : vector<1x64xf32> to vector<32x64xf32>
    %123 = arith.addf %121, %122 : vector<32x64xf32>
    %124 = vector.extract_strided_slice %123 {offsets = [0, 0], sizes = [1, 64], strides = [1, 1]} : vector<32x64xf32> to vector<1x64xf32>
    %125 = vector.shape_cast %124 : vector<1x64xf32> to vector<1x64xf32>
    %126 = vector.broadcast %125 : vector<1x64xf32> to vector<8x64xf32>
    %127 = vector.extract_strided_slice %123 {offsets = [1, 0], sizes = [8, 64], strides = [1, 1]} : vector<32x64xf32> to vector<8x64xf32>
    %128 = tpu.concatenate %126, %127 in 1 : vector<8x64xf32>, vector<8x64xf32> -> vector<8x128xf32>
    %129 = vector.extract_strided_slice %123 {offsets = [16, 0], sizes = [1, 64], strides = [1, 1]} : vector<32x64xf32> to vector<1x64xf32>
    %130 = vector.shape_cast %129 : vector<1x64xf32> to vector<1x64xf32>
    %131 = vector.broadcast %130 : vector<1x64xf32> to vector<8x64xf32>
    %132 = vector.extract_strided_slice %123 {offsets = [17, 0], sizes = [8, 64], strides = [1, 1]} : vector<32x64xf32> to vector<8x64xf32>
    %133 = tpu.concatenate %131, %132 in 1 : vector<8x64xf32>, vector<8x64xf32> -> vector<8x128xf32>
    %134 = arith.truncf %128 : vector<8x128xf32> to vector<8x128xbf16>
    %135 = arith.truncf %8 : vector<128x64xf32> to vector<128x64xbf16>
    %cst_37 = arith.constant dense<0.000000e+00> : vector<8x64xf32>
    %136 = tpu.matmul %134, %135, %cst_37 {dimension_numbers = #tpu.dot_dimension_numbers<[1], [0], [0], [1], [0, 0, 1, 1], [], []>} : vector<8x128xbf16>, vector<128x64xbf16>, vector<8x64xf32> -> vector<8x64xf32>
    %137 = vector.broadcast %14 : vector<1x64xf32> to vector<8x64xf32>
    %138 = arith.addf %136, %137 : vector<8x64xf32>
    %cst_38 = arith.constant 0.000000e+00 : f32
    %139 = vector.broadcast %cst_38 : f32 to vector<8x64xf32>
    %140 = arith.maximumf %138, %139 : vector<8x64xf32>
    %141 = arith.truncf %140 : vector<8x64xf32> to vector<8x64xbf16>
    %142 = arith.truncf %10 : vector<64x64xf32> to vector<64x64xbf16>
    %cst_39 = arith.constant dense<0.000000e+00> : vector<8x64xf32>
    %143 = tpu.matmul %141, %142, %cst_39 {dimension_numbers = #tpu.dot_dimension_numbers<[1], [0], [0], [1], [0, 0, 1, 1], [], []>} : vector<8x64xbf16>, vector<64x64xbf16>, vector<8x64xf32> -> vector<8x64xf32>
    %144 = vector.broadcast %15 : vector<1x64xf32> to vector<8x64xf32>
    %145 = arith.addf %143, %144 : vector<8x64xf32>
    %cst_40 = arith.constant 0.000000e+00 : f32
    %146 = vector.broadcast %cst_40 : f32 to vector<8x64xf32>
    %147 = arith.maximumf %145, %146 : vector<8x64xf32>
    %148 = vector.broadcast %16 : vector<1x64xf32> to vector<8x64xf32>
    %149 = arith.mulf %147, %148 : vector<8x64xf32>
    %cst_41 = arith.constant dense<0.000000e+00> : vector<8xf32>
    %150 = vector.multi_reduction <add>, %149, %cst_41 [1] : vector<8x64xf32> to vector<8xf32>
    %151 = vector.shape_cast %150 : vector<8xf32> to vector<8x1xf32>
    %152 = vector.broadcast %17 : vector<1x1xf32> to vector<8x1xf32>
    %153 = arith.addf %151, %152 : vector<8x1xf32>
    %154 = arith.subf %153, %3 : vector<8x1xf32>
    %155 = arith.mulf %5, %154 : vector<8x1xf32>
    %156 = vector.broadcast %155 : vector<8x1xf32> to vector<8x64xf32>
    %157 = arith.mulf %156, %147 : vector<8x64xf32>
    %cst_42 = arith.constant dense<0.000000e+00> : vector<64xf32>
    %158 = vector.multi_reduction <add>, %157, %cst_42 [0] : vector<8x64xf32> to vector<64xf32>
    %159 = vector.shape_cast %158 : vector<64xf32> to vector<1x64xf32>
    %cst_43 = arith.constant dense<0.000000e+00> : vector<1xf32>
    %160 = vector.multi_reduction <add>, %155, %cst_43 [0] : vector<8x1xf32> to vector<1xf32>
    %161 = vector.shape_cast %160 : vector<1xf32> to vector<1x1xf32>
    %162 = vector.broadcast %155 : vector<8x1xf32> to vector<8x64xf32>
    %163 = vector.broadcast %16 : vector<1x64xf32> to vector<8x64xf32>
    %164 = arith.mulf %162, %163 : vector<8x64xf32>
    %cst_44 = arith.constant 0.000000e+00 : f32
    %165 = vector.broadcast %cst_44 : f32 to vector<8x64xf32>
    %166 = arith.cmpf ogt, %147, %165 : vector<8x64xf32>
    %167 = arith.extui %166 : vector<8x64xi1> to vector<8x64xi32>
    %168 = arith.sitofp %167 : vector<8x64xi32> to vector<8x64xf32>
    %169 = arith.mulf %164, %168 : vector<8x64xf32>
    %170 = arith.truncf %140 : vector<8x64xf32> to vector<8x64xbf16>
    %171 = arith.truncf %169 : vector<8x64xf32> to vector<8x64xbf16>
    %cst_45 = arith.constant dense<0.000000e+00> : vector<64x64xf32>
    %172 = tpu.matmul %170, %171, %cst_45 {dimension_numbers = #tpu.dot_dimension_numbers<[0], [0], [1], [1], [0, 1, 1, 1], [], []>} : vector<8x64xbf16>, vector<8x64xbf16>, vector<64x64xf32> -> vector<64x64xf32>
    %cst_46 = arith.constant dense<0.000000e+00> : vector<64xf32>
    %173 = vector.multi_reduction <add>, %169, %cst_46 [0] : vector<8x64xf32> to vector<64xf32>
    %174 = vector.shape_cast %173 : vector<64xf32> to vector<1x64xf32>
    %175 = arith.truncf %169 : vector<8x64xf32> to vector<8x64xbf16>
    %176 = arith.truncf %10 : vector<64x64xf32> to vector<64x64xbf16>
    %cst_47 = arith.constant dense<0.000000e+00> : vector<8x64xf32>
    %177 = tpu.matmul %175, %176, %cst_47 {dimension_numbers = #tpu.dot_dimension_numbers<[1], [1], [0], [0], [0, 0, 1, 0], [], []>} : vector<8x64xbf16>, vector<64x64xbf16>, vector<8x64xf32> -> vector<8x64xf32>
    %cst_48 = arith.constant 0.000000e+00 : f32
    %178 = vector.broadcast %cst_48 : f32 to vector<8x64xf32>
    %179 = arith.cmpf ogt, %140, %178 : vector<8x64xf32>
    %180 = arith.extui %179 : vector<8x64xi1> to vector<8x64xi32>
    %181 = arith.sitofp %180 : vector<8x64xi32> to vector<8x64xf32>
    %182 = arith.mulf %177, %181 : vector<8x64xf32>
    %183 = arith.truncf %182 : vector<8x64xf32> to vector<8x64xbf16>
    %cst_49 = arith.constant dense<0.000000e+00> : vector<128x64xf32>
    %184 = tpu.matmul %134, %183, %cst_49 {dimension_numbers = #tpu.dot_dimension_numbers<[0], [0], [1], [1], [0, 1, 1, 1], [], []>} : vector<8x128xbf16>, vector<8x64xbf16>, vector<128x64xf32> -> vector<128x64xf32>
    %cst_50 = arith.constant dense<0.000000e+00> : vector<64xf32>
    %185 = vector.multi_reduction <add>, %182, %cst_50 [0] : vector<8x64xf32> to vector<64xf32>
    %186 = vector.shape_cast %185 : vector<64xf32> to vector<1x64xf32>
    %cst_51 = arith.constant 5.000000e-03 : f32
    %187 = vector.broadcast %cst_51 : f32 to vector<128x64xf32>
    %188 = arith.mulf %187, %184 : vector<128x64xf32>
    %189 = arith.subf %8, %188 : vector<128x64xf32>
    %cst_52 = arith.constant 5.000000e-03 : f32
    %190 = vector.broadcast %cst_52 : f32 to vector<1x64xf32>
    %191 = arith.mulf %190, %186 : vector<1x64xf32>
    %192 = arith.subf %14, %191 : vector<1x64xf32>
    %cst_53 = arith.constant 5.000000e-03 : f32
    %193 = vector.broadcast %cst_53 : f32 to vector<64x64xf32>
    %194 = arith.mulf %193, %172 : vector<64x64xf32>
    %195 = arith.subf %10, %194 : vector<64x64xf32>
    %cst_54 = arith.constant 5.000000e-03 : f32
    %196 = vector.broadcast %cst_54 : f32 to vector<1x64xf32>
    %197 = arith.mulf %196, %174 : vector<1x64xf32>
    %198 = arith.subf %15, %197 : vector<1x64xf32>
    %cst_55 = arith.constant 5.000000e-03 : f32
    %199 = vector.broadcast %cst_55 : f32 to vector<1x64xf32>
    %200 = arith.mulf %199, %159 : vector<1x64xf32>
    %201 = arith.subf %16, %200 : vector<1x64xf32>
    %cst_56 = arith.constant 5.000000e-03 : f32
    %202 = vector.broadcast %cst_56 : f32 to vector<1x1xf32>
    %203 = arith.mulf %202, %161 : vector<1x1xf32>
    %204 = arith.subf %17, %203 : vector<1x1xf32>
    %205 = arith.truncf %189 : vector<128x64xf32> to vector<128x64xbf16>
    %cst_57 = arith.constant dense<0.000000e+00> : vector<8x64xf32>
    %206 = tpu.matmul %134, %205, %cst_57 {dimension_numbers = #tpu.dot_dimension_numbers<[1], [0], [0], [1], [0, 0, 1, 1], [], []>} : vector<8x128xbf16>, vector<128x64xbf16>, vector<8x64xf32> -> vector<8x64xf32>
    %207 = vector.broadcast %192 : vector<1x64xf32> to vector<8x64xf32>
    %208 = arith.addf %206, %207 : vector<8x64xf32>
    %cst_58 = arith.constant 0.000000e+00 : f32
    %209 = vector.broadcast %cst_58 : f32 to vector<8x64xf32>
    %210 = arith.maximumf %208, %209 : vector<8x64xf32>
    %211 = arith.truncf %210 : vector<8x64xf32> to vector<8x64xbf16>
    %212 = arith.truncf %195 : vector<64x64xf32> to vector<64x64xbf16>
    %cst_59 = arith.constant dense<0.000000e+00> : vector<8x64xf32>
    %213 = tpu.matmul %211, %212, %cst_59 {dimension_numbers = #tpu.dot_dimension_numbers<[1], [0], [0], [1], [0, 0, 1, 1], [], []>} : vector<8x64xbf16>, vector<64x64xbf16>, vector<8x64xf32> -> vector<8x64xf32>
    %214 = vector.broadcast %198 : vector<1x64xf32> to vector<8x64xf32>
    %215 = arith.addf %213, %214 : vector<8x64xf32>
    %cst_60 = arith.constant 0.000000e+00 : f32
    %216 = vector.broadcast %cst_60 : f32 to vector<8x64xf32>
    %217 = arith.maximumf %215, %216 : vector<8x64xf32>
    %218 = vector.broadcast %201 : vector<1x64xf32> to vector<8x64xf32>
    %219 = arith.mulf %217, %218 : vector<8x64xf32>
    %cst_61 = arith.constant dense<0.000000e+00> : vector<8xf32>
    %220 = vector.multi_reduction <add>, %219, %cst_61 [1] : vector<8x64xf32> to vector<8xf32>
    %221 = vector.shape_cast %220 : vector<8xf32> to vector<8x1xf32>
    %222 = vector.broadcast %204 : vector<1x1xf32> to vector<8x1xf32>
    %223 = arith.addf %221, %222 : vector<8x1xf32>
    %224 = arith.subf %223, %3 : vector<8x1xf32>
    %225 = arith.mulf %5, %224 : vector<8x1xf32>
    %226 = vector.broadcast %225 : vector<8x1xf32> to vector<8x64xf32>
    %227 = arith.mulf %226, %217 : vector<8x64xf32>
    %cst_62 = arith.constant dense<0.000000e+00> : vector<64xf32>
    %228 = vector.multi_reduction <add>, %227, %cst_62 [0] : vector<8x64xf32> to vector<64xf32>
    %229 = vector.shape_cast %228 : vector<64xf32> to vector<1x64xf32>
    %cst_63 = arith.constant dense<0.000000e+00> : vector<1xf32>
    %230 = vector.multi_reduction <add>, %225, %cst_63 [0] : vector<8x1xf32> to vector<1xf32>
    %231 = vector.shape_cast %230 : vector<1xf32> to vector<1x1xf32>
    %232 = vector.broadcast %225 : vector<8x1xf32> to vector<8x64xf32>
    %233 = vector.broadcast %201 : vector<1x64xf32> to vector<8x64xf32>
    %234 = arith.mulf %232, %233 : vector<8x64xf32>
    %cst_64 = arith.constant 0.000000e+00 : f32
    %235 = vector.broadcast %cst_64 : f32 to vector<8x64xf32>
    %236 = arith.cmpf ogt, %217, %235 : vector<8x64xf32>
    %237 = arith.extui %236 : vector<8x64xi1> to vector<8x64xi32>
    %238 = arith.sitofp %237 : vector<8x64xi32> to vector<8x64xf32>
    %239 = arith.mulf %234, %238 : vector<8x64xf32>
    %240 = arith.truncf %210 : vector<8x64xf32> to vector<8x64xbf16>
    %241 = arith.truncf %239 : vector<8x64xf32> to vector<8x64xbf16>
    %cst_65 = arith.constant dense<0.000000e+00> : vector<64x64xf32>
    %242 = tpu.matmul %240, %241, %cst_65 {dimension_numbers = #tpu.dot_dimension_numbers<[0], [0], [1], [1], [0, 1, 1, 1], [], []>} : vector<8x64xbf16>, vector<8x64xbf16>, vector<64x64xf32> -> vector<64x64xf32>
    %cst_66 = arith.constant dense<0.000000e+00> : vector<64xf32>
    %243 = vector.multi_reduction <add>, %239, %cst_66 [0] : vector<8x64xf32> to vector<64xf32>
    %244 = vector.shape_cast %243 : vector<64xf32> to vector<1x64xf32>
    %245 = arith.truncf %239 : vector<8x64xf32> to vector<8x64xbf16>
    %246 = arith.truncf %195 : vector<64x64xf32> to vector<64x64xbf16>
    %cst_67 = arith.constant dense<0.000000e+00> : vector<8x64xf32>
    %247 = tpu.matmul %245, %246, %cst_67 {dimension_numbers = #tpu.dot_dimension_numbers<[1], [1], [0], [0], [0, 0, 1, 0], [], []>} : vector<8x64xbf16>, vector<64x64xbf16>, vector<8x64xf32> -> vector<8x64xf32>
    %cst_68 = arith.constant 0.000000e+00 : f32
    %248 = vector.broadcast %cst_68 : f32 to vector<8x64xf32>
    %249 = arith.cmpf ogt, %210, %248 : vector<8x64xf32>
    %250 = arith.extui %249 : vector<8x64xi1> to vector<8x64xi32>
    %251 = arith.sitofp %250 : vector<8x64xi32> to vector<8x64xf32>
    %252 = arith.mulf %247, %251 : vector<8x64xf32>
    %253 = arith.truncf %252 : vector<8x64xf32> to vector<8x64xbf16>
    %cst_69 = arith.constant dense<0.000000e+00> : vector<128x64xf32>
    %254 = tpu.matmul %134, %253, %cst_69 {dimension_numbers = #tpu.dot_dimension_numbers<[0], [0], [1], [1], [0, 1, 1, 1], [], []>} : vector<8x128xbf16>, vector<8x64xbf16>, vector<128x64xf32> -> vector<128x64xf32>
    %cst_70 = arith.constant dense<0.000000e+00> : vector<64xf32>
    %255 = vector.multi_reduction <add>, %252, %cst_70 [0] : vector<8x64xf32> to vector<64xf32>
    %256 = vector.shape_cast %255 : vector<64xf32> to vector<1x64xf32>
    %cst_71 = arith.constant 5.000000e-03 : f32
    %257 = vector.broadcast %cst_71 : f32 to vector<128x64xf32>
    %258 = arith.mulf %257, %254 : vector<128x64xf32>
    %259 = arith.subf %189, %258 : vector<128x64xf32>
    %cst_72 = arith.constant 5.000000e-03 : f32
    %260 = vector.broadcast %cst_72 : f32 to vector<1x64xf32>
    %261 = arith.mulf %260, %256 : vector<1x64xf32>
    %262 = arith.subf %192, %261 : vector<1x64xf32>
    %cst_73 = arith.constant 5.000000e-03 : f32
    %263 = vector.broadcast %cst_73 : f32 to vector<64x64xf32>
    %264 = arith.mulf %263, %242 : vector<64x64xf32>
    %265 = arith.subf %195, %264 : vector<64x64xf32>
    %cst_74 = arith.constant 5.000000e-03 : f32
    %266 = vector.broadcast %cst_74 : f32 to vector<1x64xf32>
    %267 = arith.mulf %266, %244 : vector<1x64xf32>
    %268 = arith.subf %198, %267 : vector<1x64xf32>
    %cst_75 = arith.constant 5.000000e-03 : f32
    %269 = vector.broadcast %cst_75 : f32 to vector<1x64xf32>
    %270 = arith.mulf %269, %229 : vector<1x64xf32>
    %271 = arith.subf %201, %270 : vector<1x64xf32>
    %cst_76 = arith.constant 5.000000e-03 : f32
    %272 = vector.broadcast %cst_76 : f32 to vector<1x1xf32>
    %273 = arith.mulf %272, %231 : vector<1x1xf32>
    %274 = arith.subf %204, %273 : vector<1x1xf32>
    %275 = arith.truncf %133 : vector<8x128xf32> to vector<8x128xbf16>
    %276 = arith.truncf %259 : vector<128x64xf32> to vector<128x64xbf16>
    %cst_77 = arith.constant dense<0.000000e+00> : vector<8x64xf32>
    %277 = tpu.matmul %275, %276, %cst_77 {dimension_numbers = #tpu.dot_dimension_numbers<[1], [0], [0], [1], [0, 0, 1, 1], [], []>} : vector<8x128xbf16>, vector<128x64xbf16>, vector<8x64xf32> -> vector<8x64xf32>
    %278 = vector.broadcast %262 : vector<1x64xf32> to vector<8x64xf32>
    %279 = arith.addf %277, %278 : vector<8x64xf32>
    %cst_78 = arith.constant 0.000000e+00 : f32
    %280 = vector.broadcast %cst_78 : f32 to vector<8x64xf32>
    %281 = arith.maximumf %279, %280 : vector<8x64xf32>
    %282 = arith.truncf %281 : vector<8x64xf32> to vector<8x64xbf16>
    %283 = arith.truncf %265 : vector<64x64xf32> to vector<64x64xbf16>
    %cst_79 = arith.constant dense<0.000000e+00> : vector<8x64xf32>
    %284 = tpu.matmul %282, %283, %cst_79 {dimension_numbers = #tpu.dot_dimension_numbers<[1], [0], [0], [1], [0, 0, 1, 1], [], []>} : vector<8x64xbf16>, vector<64x64xbf16>, vector<8x64xf32> -> vector<8x64xf32>
    %285 = vector.broadcast %268 : vector<1x64xf32> to vector<8x64xf32>
    %286 = arith.addf %284, %285 : vector<8x64xf32>
    %cst_80 = arith.constant 0.000000e+00 : f32
    %287 = vector.broadcast %cst_80 : f32 to vector<8x64xf32>
    %288 = arith.maximumf %286, %287 : vector<8x64xf32>
    %289 = vector.broadcast %271 : vector<1x64xf32> to vector<8x64xf32>
    %290 = arith.mulf %288, %289 : vector<8x64xf32>
    %cst_81 = arith.constant dense<0.000000e+00> : vector<8xf32>
    %291 = vector.multi_reduction <add>, %290, %cst_81 [1] : vector<8x64xf32> to vector<8xf32>
    %292 = vector.shape_cast %291 : vector<8xf32> to vector<8x1xf32>
    %293 = vector.broadcast %274 : vector<1x1xf32> to vector<8x1xf32>
    %294 = arith.addf %292, %293 : vector<8x1xf32>
    %295 = vector.shape_cast %294 : vector<8x1xf32> to vector<8x1xf32>
    %296 = vector.broadcast %295 : vector<8x1xf32> to vector<8x128xf32>
    %c0_82 = arith.constant 0 : index
    %c0_83 = arith.constant 0 : index
    %c0_84 = arith.constant 0 : index
    %297 = vector.load %arg6[%c0_82, %c0_83, %c0_84] : memref<1x8x128xf32, #tpu.memory_space<vmem>>, vector<1x8x128xf32>
    %298 = vector.shape_cast %297 : vector<1x8x128xf32> to vector<8x128xf32>
    %299 = vector.shape_cast %296 : vector<8x128xf32> to vector<1x8x128xf32>
    tpu.vector_store %arg6[%c0_82, %c0_83, %c0_84], %299 {strides = array<i32>} : memref<1x8x128xf32, #tpu.memory_space<vmem>>, vector<1x8x128xf32>,
    return
  }
  func.func @transform_0(%arg0: i32) -> (i32, i32, i32) {
    %c0_i32 = arith.constant 0 : i32
    %c0_i32_0 = arith.constant 0 : i32
    %c0_i32_1 = arith.constant 0 : i32
    return %arg0, %c0_i32, %c0_i32_0 : i32, i32, i32
  }
  func.func @transform_1(%arg0: i32) -> (i32, i32) {
    %c0_i32 = arith.constant 0 : i32
    %c0_i32_0 = arith.constant 0 : i32
    %c0_i32_1 = arith.constant 0 : i32
    return %c0_i32, %c0_i32_0 : i32, i32
  }
  func.func @transform_2(%arg0: i32) -> (i32, i32) {
    %c0_i32 = arith.constant 0 : i32
    %c0_i32_0 = arith.constant 0 : i32
    %c0_i32_1 = arith.constant 0 : i32
    return %c0_i32, %c0_i32_0 : i32, i32
  }
  func.func @transform_3(%arg0: i32) -> (i32, i32) {
    %c0_i32 = arith.constant 0 : i32
    %c0_i32_0 = arith.constant 0 : i32
    %c0_i32_1 = arith.constant 0 : i32
    return %c0_i32, %c0_i32_0 : i32, i32
  }
  func.func @transform_4(%arg0: i32) -> (i32, i32) {
    %c0_i32 = arith.constant 0 : i32
    %c0_i32_0 = arith.constant 0 : i32
    %c0_i32_1 = arith.constant 0 : i32
    return %c0_i32, %c0_i32_0 : i32, i32
  }
  func.func @transform_5(%arg0: i32) -> (i32, i32, i32) {
    %c0_i32 = arith.constant 0 : i32
    %c0_i32_0 = arith.constant 0 : i32
    %c0_i32_1 = arith.constant 0 : i32
    return %arg0, %c0_i32, %c0_i32_0 : i32, i32, i32
  }
}

</mosaic_0001>

<bundles_post_ra>
// kernel: _meatt_forward_batch_jit.1
= control target key start
LH: loop header
LB: loop body
LE: loop exit
PB: predicated region body
PF: predicated region fallthrough
CT: control target
= control target key end

     0   :  { %s2784_s18 = smov 0   ;;  %s4271_s0 = inlined_call_operand.vmem [shape: f32[2,48,64], index: 0, kind: input, shape index: {}]   ;;  %s4272_s1 = inlined_call_operand.vmem [shape: f32[72,384], index: 1, kind: input, shape index: {}]   ;;  %s4273_s2 = inlined_call_operand.vmem [shape: f32[256,64], index: 2, kind: input, shape index: {}]   ;;  %s4274_s3 = inlined_call_operand.vmem [shape: f32[8,64], index: 3, kind: input, shape index: {}]   ;;  %s4275_s4 = inlined_call_operand.vmem [shape: f32[552,64], index: 4, kind: input, shape index: {}]   ;;  %s4276_s5 = inlined_call_operand.vmem [shape: f32[2,8,128], index: 5, kind: output, shape index: {}]  }
   0x1 LB: > { %s2489_s19 = sadd.s32 4294967295, %s2748_s18   ;;  %p2493_p0 = scmp.ge.s32.totalorder %s2748_s18, 1  ;;  %s2748_s18 = sphi %s2784_s18, %s15_s18  }
   0x2   : > { %p187_p1 = scmp.lt.s32.totalorder %s2748_s18, 3 }
   0x4   : > { %p188_p2 = pnand %p2493_p0, %p187_p1 }
   0x6   : > { %191 = sbr.rel (%p188_p2) target bundleno = 4407 (0x1137), region = 40 }
   0xb   : > { %v249_v0 = vld [vmem:[%s4272_s1 + $0x98] sm:$0xff]  ;;  %v252_v1 = vld [vmem:[%s4272_s1 + $0xb0] sm:$0xff]  ;;  %v250_v2 = vld [vmem:[%s4272_s1 + $0xa0] sm:$0xff]  ;;  %p214_p3 = scmp.lt.s32.totalorder %s2489_s19, 1  ;;  %vm385_vm0 = vcmask 523264   ;;  %v4279_v43 = vmov 0  }
   0xc   : > { %v376_v3 = vpack.c.bf16 %v252_v1, %v249_v0  ;;  %v253_v4 = vld [vmem:[%s4272_s1 + $0xb8] sm:$0xff]  ;;  %v243_v5 = vld [vmem:[%s4272_s1 + $0x68] sm:$0xff]  ;;  %v246_v6 = vld [vmem:[%s4272_s1 + $0x80] sm:$0xff]  ;;  %2590 = vset.pattern.permute.xlu2 %v4279_v43  ;;  %2591 = vset.pattern.permute.xlu1 %v4279_v43  ;;  %s2751_s7 = smov 64   ;;  %vm998_vm1 = vcmask 261120   ;;  %vm1724_vm9 = vcmask 1046528  }
   0xd   : > { %v377_v7 = vpack.c.bf16 %v253_v4, %v250_v2  ;;  %v244_v8 = vld [vmem:[%s4272_s1 + $0x70] sm:$0xff]  ;;  %v247_v9 = vld [vmem:[%s4272_s1 + $0x88] sm:$0xff]  ;;  %s4305_s19 = smov (!%p214_p3, %s2489_s19), 1  ;;  %v373_v10 = vpack.c.bf16 %v246_v6, %v243_v5  ;;  %v237_v12 = vld [vmem:[%s4272_s1 + $0x38] sm:$0xff]  ;;  %vm1854_vm11 = vcmask 1043456   ;;  %vm1841_vm13 = vcmask 64512  }
   0xe   : > { %415 = vmatpush.bf16.msra.mxu1 %v376_v3  ;;  %2572 = vmatpush.bf16.msra.mxu3 %v376_v3  ;;  %v374_v11 = vpack.c.bf16 %v247_v9, %v244_v8  ;;  %v240_v13 = vld [vmem:[%s4272_s1 + $0x50] sm:$0xff]  ;;  %v238_v14 = vld [vmem:[%s4272_s1 + $0x40] sm:$0xff]  ;;  %s2577_s17 = smul.u32 48, %s4305_s19  ;;  %v241_v15 = vld [vmem:[%s4272_s1 + $0x58] sm:$0xff]  ;;  %vm1811_vm14 = vcmask 7168  }
   0xf   : > { %434 = vmatpush.bf16.msra.mxu2 %v377_v7  ;;  %v248_v16 = vld [vmem:[%s4272_s1 + $0x90] sm:$0xff]  ;;  %v251_v17 = vld [vmem:[%s4272_s1 + $0xa8] sm:$0xff]  ;;  %v242_v19 = vld [vmem:[%s4272_s1 + $0x60] sm:$0xff]  ;;  %v370_v21 = vpack.c.bf16 %v240_v13, %v237_v12  ;;  %v371_v23 = vpack.c.bf16 %v241_v15, %v238_v14 }
  0x10   : > { %v375_v18 = vpack.c.bf16 %v251_v17, %v248_v16  ;;  %v245_v20 = vld [vmem:[%s4272_s1 + $0x78] sm:$0xff]  ;;  %v231_v22 = vld [vmem:[%s4272_s1 + $0x8] sm:$0xff]  ;;  %s2849_s9 = scalar_lea.vmem %s4271_s0, %s2577_s17  ;;  %v234_v24 = vld [vmem:[%s4272_s1 + $0x20] sm:$0xff] }
  0x11   : > { %v232_v25 = vld [vmem:[%s4272_s1 + $0x10] sm:$0xff]  ;;  %v235_v26 = vld [vmem:[%s4272_s1 + $0x28] sm:$0xff]  ;;  %v372_v27 = vpack.c.bf16 %v245_v20, %v242_v19  ;;  %v224_v30 = vld [vmem:[%s2849_s9] sm:$0xff]  ;;  %v367_v31 = vpack.c.bf16 %v234_v24, %v231_v22 }
  0x12   : > { %416 = vmatpush.bf16.msra.mxu1 %v373_v10  ;;  %2573 = vmatpush.bf16.msra.mxu3 %v373_v10  ;;  %v236_v28 = vld [vmem:[%s4272_s1 + $0x30] sm:$0xff]  ;;  %v239_v29 = vld [vmem:[%s4272_s1 + $0x48] sm:$0xff]  ;;  %v227_v34 = vld [vmem:[%s2849_s9 + $0x18] sm:$0xff]  ;;  %v368_v35 = vpack.c.bf16 %v235_v26, %v232_v25 }
  0x13   : > { %435 = vmatpush.bf16.msra.mxu2 %v374_v11  ;;  %396 = vmatpush.bf16.msra.mxu0 %v375_v18  ;;  %v225_v32 = vld [vmem:[%s2849_s9 + $0x8] sm:$0xff]  ;;  %v226_v33 = vld [vmem:[%s2849_s9 + $0x10] sm:$0xff]  ;;  %v369_v36 = vpack.c.bf16 %v239_v29, %v236_v28  ;;  %v230_v37 = vld [vmem:[%s4272_s1] sm:$0xff] }
  0x14   : > { %v233_v38 = vld [vmem:[%s4272_s1 + $0x18] sm:$0xff]  ;;  %v364_v39 = vpack.c.bf16 %v225_v32, %v224_v30  ;;  %v365_v40 = vpack.c.bf16 %v227_v34, %v226_v33  ;;  %v360_v42 = vld [vmem:[%s4275_s4 + $0x208] sm:$0xff]  ;;  %v361_v44 = vld [vmem:[%s4275_s4 + $0x210] sm:$0xff] }
  0x15   : > { %v366_v41 = vpack.c.bf16 %v233_v38, %v230_v37  ;;  %495 = vperm.xlu2 %2590, %v360_v42   ;;  %v2496_v45 = vld [vmem:[%s4272_s1 + $0xc0] ss:$8 sm:$0x7]  ;;  %v362_v1 = vld [vmem:[%s4275_s4 + $0x218] sm:$0xff] }
  0x16   : > { %417 = vmatpush.bf16.msra.mxu1 %v370_v21  ;;  %2574 = vmatpush.bf16.msra.mxu3 %v370_v21  ;;  %v380_v46 = vperm.slane %v2496_v45, 1  ;;  %v381_v49 = vperm.slane %v2496_v45, 2  ;;  %v363_v60 = vld [vmem:[%s4275_s4 + $0x220] sm:$0xff]  ;;  %v379_v5 = vperm.slane %v2496_v45, 0  ;;  %v296_v20 = vld [vmem:[%s4275_s4 + $0x8] sm:$0xff]  ;;  %v297_v28 = vld [vmem:[%s4275_s4 + $0x10] sm:$0xff] }
  0x17   : > { %436 = vmatpush.bf16.msra.mxu2 %v371_v23  ;;  %397 = vmatpush.bf16.msra.mxu0 %v372_v27  ;;  %v295_v2 = vld [vmem:[%s4275_s4] sm:$0xff] }
  0x1a   : > { %418 = vmatpush.bf16.msra.mxu1 %v367_v31  ;;  %2575 = vmatpush.bf16.msra.mxu3 %v367_v31 }
  0x1b   : > { %437 = vmatpush.bf16.msra.mxu2 %v368_v35  ;;  %398 = vmatpush.bf16.msra.mxu0 %v369_v36 }
  0x1d   : > { %2499 = vmatmul.msk.bf16.vlgmr.msra.gmra.mxu1 %vm385_vm0, %v364_v39  ;;  %2500 = vmatmul.msk.bf16.vlgmr.msra.gmra.mxu3 %vm385_vm0, %v365_v40 }
  0x1e   : > { %2501 = vmatmul.msk.bf16.vlgmr.msra.gmra.mxu2 %vm385_vm0, %v364_v39  ;;  %500 = vperm.xlu2 %2590, %v361_v44   ;;  %v299_v44 = vld [vmem:[%s4275_s4 + $0x20] sm:$0xff] }
  0x1f   : > { %399 = vmatpush.bf16.msra.mxu0 %v366_v41 }
  0x22   : > { %2497 = vmatmul.msk.bf16.vlgmr.msra.gmra.mxu0 %vm385_vm0, %v364_v39 }
  0x2e   : > { %2502 = vmatmul.msk.bf16.gmra.mxu2 %vm385_vm0, %v365_v40 }
  0x32   : > { %2498 = vmatmul.msk.bf16.gmra.mxu0 %vm385_vm0, %v365_v40  ;;  %v298_v40 = vld [vmem:[%s4275_s4 + $0x18] sm:$0xff] }
  0x6f   : > { %v496_v6 = vpop.permute.xlu2 %495 }
  0x78   : > { %v501_v14 = vpop.permute.xlu2 %500 }
  0x9a   : > { %v420_v47 = vpop.f32.mrf.mxu1 }
  0x9b   : > { %v2893_v48 = vadd.f32 %v420_v47, %v380_v46 }
  0x9d   : > { %457 = vrot.lane.b32.xlu0 %v2893_v48, %s2751_s7 }
  0x9f   : > { %v401_v3 = vpop.f32.mrf.mxu0 }
  0xa0   : > { %v425_v50 = vpop.f32.mrf.mxu3  ;;  %v402_v7 = vadd.f32 %v401_v3, %v379_v5  ;;  %v311_v3 = vld [vmem:[%s4275_s4 + $0x80] sm:$0xff] }
  0xa1   : > { %v439_v51 = vpop.f32.mrf.mxu2  ;;  %v2905_v57 = vadd.f32 %v425_v50, %v380_v46  ;;  %v301_v50 = vld [vmem:[%s4275_s4 + $0x30] sm:$0xff] }
  0xa2   : > { %v2897_v52 = vadd.f32 %v439_v51, %v381_v49  ;;  %v422_v53 = vpop.f32.mrf.mxu1  ;;  %v300_v51 = vld [vmem:[%s4275_s4 + $0x28] sm:$0xff] }
  0xa3   : > { %v2899_v54 = vadd.f32 %v422_v53, %v380_v46  ;;  %v303_v53 = vld [vmem:[%s4275_s4 + $0x40] sm:$0xff] }
  0xa5   : > { %461 = vrot.lane.b32.xlu1 %v2899_v54, %s2751_s7  ;;  %459 = vrot.lane.b32.xlu0 %v2897_v52, %s2751_s7 }
  0xa7   : > { %v403_v8 = vpop.f32.mrf.mxu0 }
  0xa8   : > { %v427_v55 = vpop.f32.mrf.mxu3  ;;  %v404_v15 = vadd.f32 %v403_v8, %v379_v5  ;;  %v314_v8 = vld [vmem:[%s4275_s4 + $0x98] sm:$0xff] }
  0xa9   : > { %v441_v56 = vpop.f32.mrf.mxu2  ;;  %v2907_v58 = vadd.f32 %v427_v55, %v380_v46  ;;  %v302_v55 = vld [vmem:[%s4275_s4 + $0x38] sm:$0xff] }
  0xaa   : > { %v2909_v59 = vadd.f32 %v441_v56, %v381_v49  ;;  %v305_v56 = vld [vmem:[%s4275_s4 + $0x50] sm:$0xff] }
  0xab   : > { %469 = vrot.lane.b32.xlu2 %v2907_v58, %s2751_s7 }
  0xad   : > { %463 = vrot.lane.b32.xlu1 %v2909_v59, %s2751_s7  ;;  %465 = vrot.lane.b32.xlu0 %v2905_v57, %s2751_s7 }
  0xaf   : > { %v406_v17 = vpop.f32.mrf.mxu0 }
  0xb0   : > { %v407_v25 = vadd.f32 %v406_v17, %v379_v5 }
  0xb1   : > { %v444_v61 = vpop.f32.mrf.mxu2 }
  0xb2   : > { %v2920_v62 = vadd.f32 %v444_v61, %v381_v49  ;;  %v307_v61 = vld [vmem:[%s4275_s4 + $0x60] sm:$0xff] }
  0xb3   : > { %510 = vperm.xlu2 %2590, %v363_v60   ;;  %v304_v60 = vld [vmem:[%s4275_s4 + $0x48] sm:$0xff] }
  0xb5   : > { %467 = vrot.lane.b32.xlu1 %v2920_v62, %s2751_s7 }
  0xb7   : > { %v408_v27 = vpop.f32.mrf.mxu0 }
  0xb8   : > { %v409_v29 = vadd.f32 %v408_v27, %v379_v5  ;;  %v313_v5 = vld [vmem:[%s4275_s4 + $0x90] sm:$0xff] }
  0xb9   : > { %v446_v63 = vpop.f32.mrf.mxu2 }
  0xba   : > { %v2924_v0 = vadd.f32 %v446_v63, %v381_v49  ;;  %v306_v63 = vld [vmem:[%s4275_s4 + $0x58] sm:$0xff] }
  0xbb   : > { %597 = vrot.lane.b32.xlu2 %v295_v2, %s2751_s7  ;;  %v308_v2 = vld [vmem:[%s4275_s4 + $0x68] sm:$0xff] }
  0xbc   : > { %471 = vrot.lane.b32.xlu0 %v2924_v0, %s2751_s7 }
  0xbd   : > { %505 = vperm.xlu1 %2591, %v362_v1   ;;  %v309_v1 = vld [vmem:[%s4275_s4 + $0x70] sm:$0xff] }
 0x105   : > { %v470_v23 = vpop.permute.xlu2 %469 }
 0x10d   : > { %v511_v37 = vpop.permute.xlu2 %510 }
 0x10f   : > { %v458_v4 = vpop.permute.xlu0 %457 }
 0x117   : > { %v462_v9 = vpop.permute.xlu1 %461  ;;  %v460_v10 = vpop.permute.xlu0 %459 }
 0x118   : > { %v473_v11 = vsel %vm385_vm0, %v458_v4, %v460_v10  ;;  %v486_v45 = vsub.f32 %v2893_v48, %v460_v10  ;;  %v310_v4 = vld [vmem:[%s4275_s4 + $0x78] sm:$0xff]  ;;  %v316_v10 = vld [vmem:[%s4275_s4 + $0xa8] sm:$0xff] }
 0x119   : > { %v485_v12 = vsub.f32 %v402_v7, %v473_v11  ;;  %v315_v7 = vld [vmem:[%s4275_s4 + $0xa0] sm:$0xff] }
 0x11a   : > { %v514_v47 = vmul.f32 %v496_v6, %v486_v45  ;;  %v319_v11 = vld [vmem:[%s4275_s4 + $0xc0] sm:$0xff] }
 0x11b   : > { %v513_v13 = vmul.f32 %v496_v6, %v485_v12  ;;  %v312_v6 = vld [vmem:[%s4275_s4 + $0x88] sm:$0xff] }
 0x11d   : > { %529 = vrot.lane.b32.xlu0 %v513_v13, %s2751_s7  ;;  %v318_v13 = vld [vmem:[%s4275_s4 + $0xb8] sm:$0xff] }
 0x11f   : > { %v464_v16 = vpop.permute.xlu1 %463  ;;  %v466_v22 = vpop.permute.xlu0 %465 }
 0x120   : > { %v474_v18 = vsel %vm385_vm0, %v462_v9, %v464_v16  ;;  %v488_v46 = vsub.f32 %v2899_v54, %v464_v16  ;;  %v317_v9 = vld [vmem:[%s4275_s4 + $0xb0] sm:$0xff] }
 0x121   : > { %v487_v19 = vsub.f32 %v404_v15, %v474_v18  ;;  %v321_v15 = vld [vmem:[%s4275_s4 + $0xd0] sm:$0xff] }
 0x122   : > { %v516_v49 = vmul.f32 %v501_v14, %v488_v46 }
 0x123   : > { %v515_v21 = vmul.f32 %v501_v14, %v487_v19  ;;  %v598_v14 = vpop.permute.xlu2 %597  ;;  %v320_v19 = vld [vmem:[%s4275_s4 + $0xc8] sm:$0xff] }
 0x125   : > { %533 = vrot.lane.b32.xlu1 %v515_v21, %s2751_s7  ;;  %599 = vrot.lane.b32.xlu0 %v296_v20, %s2751_s7 }
 0x127   : > { %v468_v24 = vpop.permute.xlu1 %467 }
 0x128   : > { %v475_v26 = vsel %vm385_vm0, %v466_v22, %v468_v24  ;;  %v490_v41 = vsub.f32 %v2905_v57, %v468_v24 }
 0x129   : > { %v489_v30 = vsub.f32 %v407_v25, %v475_v26 }
 0x12d   : > { %601 = vrot.lane.b32.xlu0 %v297_v28, %s2751_s7 }
 0x12e   : > { %v472_v31 = vpop.permute.xlu0 %471 }
 0x12f   : > { %v476_v32 = vsel %vm385_vm0, %v470_v23, %v472_v31  ;;  %v492_v33 = vsub.f32 %v2907_v58, %v472_v31  ;;  %v506_v34 = vpop.permute.xlu1 %505 }
 0x130   : > { %v491_v35 = vsub.f32 %v409_v29, %v476_v32  ;;  %v517_v36 = vmul.f32 %v506_v34, %v489_v30  ;;  %v518_v42 = vmul.f32 %v506_v34, %v490_v41  ;;  %v324_v30 = vld [vmem:[%s4275_s4 + $0xe8] sm:$0xff] }
 0x131   : > { %v520_v39 = vmul.f32 %v511_v37, %v492_v33 }
 0x132   : > { %537 = vrot.lane.b32.xlu1 %v517_v36, %s2751_s7  ;;  %v519_v38 = vmul.f32 %v511_v37, %v491_v35 }
 0x134   : > { %541 = vrot.lane.b32.xlu2 %v519_v38, %s2751_s7 }
 0x135   : > { %543 = vrot.lane.b32.xlu0 %v520_v39, %s2751_s7 }
 0x13a   : > { %603 = vrot.lane.b32.xlu1 %v298_v40, %s2751_s7 }
 0x13c   : > { %539 = vrot.lane.b32.xlu2 %v518_v42, %s2751_s7 }
 0x13d   : > { %605 = vrot.lane.b32.xlu0 %v299_v44, %s2751_s7 }
 0x142   : > { %531 = vrot.lane.b32.xlu1 %v514_v47, %s2751_s7 }
 0x144   : > { %535 = vrot.lane.b32.xlu2 %v516_v49, %s2751_s7 }
 0x145   : > { %609 = vrot.lane.b32.xlu0 %v301_v50, %s2751_s7 }
 0x14a   : > { %607 = vrot.lane.b32.xlu1 %v300_v51, %s2751_s7 }
 0x14d   : > { %613 = vrot.lane.b32.xlu0 %v303_v53, %s2751_s7 }
 0x152   : > { %611 = vrot.lane.b32.xlu1 %v302_v55, %s2751_s7 }
 0x155   : > { %617 = vrot.lane.b32.xlu0 %v305_v56, %s2751_s7 }
 0x15a   : > { %615 = vrot.lane.b32.xlu1 %v304_v60, %s2751_s7 }
 0x15d   : > { %621 = vrot.lane.b32.xlu0 %v307_v61, %s2751_s7 }
 0x162   : > { %619 = vrot.lane.b32.xlu1 %v306_v63, %s2751_s7 }
 0x165   : > { %625 = vrot.lane.b32.xlu0 %v309_v1, %s2751_s7 }
 0x16a   : > { %623 = vrot.lane.b32.xlu1 %v308_v2, %s2751_s7 }
 0x16d   : > { %629 = vrot.lane.b32.xlu0 %v311_v3, %s2751_s7 }
 0x172   : > { %627 = vrot.lane.b32.xlu1 %v310_v4, %s2751_s7 }
 0x175   : > { %633 = vrot.lane.b32.xlu0 %v313_v5, %s2751_s7 }
 0x17a   : > { %631 = vrot.lane.b32.xlu1 %v312_v6, %s2751_s7 }
 0x17d   : > { %637 = vrot.lane.b32.xlu0 %v315_v7, %s2751_s7 }
 0x182   : > { %635 = vrot.lane.b32.xlu1 %v314_v8, %s2751_s7 }
 0x185   : > { %641 = vrot.lane.b32.xlu0 %v317_v9, %s2751_s7 }
 0x18a   : > { %639 = vrot.lane.b32.xlu1 %v316_v10, %s2751_s7 }
 0x18d   : > { %645 = vrot.lane.b32.xlu0 %v319_v11, %s2751_s7 }
 0x18e   : > { %v542_v23 = vpop.permute.xlu2 %541 }
 0x18f   : > { %v530_v12 = vpop.permute.xlu0 %529  ;;  %v3084_v35 = vadd.f32 %v542_v23, %v2907_v58 }
 0x190   : > { %v3052_v16 = vadd.f32 %v530_v12, %v2893_v48  ;;  %v323_v48 = vld [vmem:[%s4275_s4 + $0xe0] sm:$0xff] }
 0x192   : > { %643 = vrot.lane.b32.xlu1 %v318_v13, %s2751_s7  ;;  %v693_v21 = vmul.f32 %v598_v14, %v3052_v16 }
 0x195   : > { %649 = vrot.lane.b32.xlu0 %v321_v15, %s2751_s7 }
 0x196   : > { %v540_v27 = vpop.permute.xlu2 %539 }
 0x197   : > { %v534_v17 = vpop.permute.xlu1 %533  ;;  %v600_v18 = vpop.permute.xlu0 %599 }
 0x198   : > { %v3058_v20 = vadd.f32 %v534_v17, %v2899_v54  ;;  %v322_v54 = vld [vmem:[%s4275_s4 + $0xd8] sm:$0xff] }
 0x19a   : > { %v694_v22 = vmul.f32 %v600_v18, %v3058_v20  ;;  %647 = vrot.lane.b32.xlu1 %v320_v19, %s2751_s7 }
 0x19c   : > { %v725_v24 = vpack.c.bf16 %v694_v22, %v693_v21 }
 0x19d   : > { %653 = vrot.lane.b32.xlu0 %v323_v48, %s2751_s7 }
 0x19e   : > { %759 = vrot.lane.b32.xlu2 %v725_v24, %s2751_s7  ;;  %v536_v41 = vpop.permute.xlu2 %535 }
 0x19f   : > { %v602_v25 = vpop.permute.xlu0 %601 }
 0x1a2   : > { %651 = vrot.lane.b32.xlu1 %v322_v54, %s2751_s7 }
 0x1a4   : > { %v538_v26 = vpop.permute.xlu1 %537 }
 0x1a5   : > { %v547_v28 = vsel %vm385_vm0, %v538_v26, %v540_v27  ;;  %v3078_v32 = vadd.f32 %v538_v26, %v2905_v57 }
 0x1a6   : > { %v562_v33 = vadd.f32 %v547_v28, %v2920_v62 }
 0x1a7   : > { %v544_v29 = vpop.permute.xlu0 %543  ;;  %v695_v38 = vmul.f32 %v602_v25, %v3078_v32 }
 0x1a8   : > { %v548_v31 = vsel %vm385_vm0, %v542_v23, %v544_v29 }
 0x1a9   : > { %v564_v34 = vadd.f32 %v548_v31, %v2924_v0  ;;  %v546_v0 = vsel %vm385_vm0, %v534_v17, %v536_v41 }
 0x1aa   : > { %655 = vrot.lane.b32.xlu1 %v324_v30, %s2751_s7  ;;  %v560_v44 = vadd.f32 %v546_v0, %v2909_v59 }
 0x1ab   : > { %v3086_v36 = vpack.c.bf16 %v564_v34, %v562_v33 }
 0x1ac   : > { %v604_v37 = vpop.permute.xlu1 %603 }
 0x1ad   : > { %v696_v39 = vmul.f32 %v604_v37, %v3084_v35  ;;  %v843_v57 = vsel %vm385_vm0, %v3086_v36, 0 }
 0x1ae   : > { %851 = vmatpush.bf16.xpose.msrb.mxu3 %v843_v57 }
 0x1af   : > { %v726_v40 = vpack.c.bf16 %v696_v39, %v695_v38  ;;  %v606_v62 = vpop.permute.xlu0 %605 }
 0x1b0   : > { %v697_v51 = vmul.f32 %v606_v62, %v3052_v16 }
 0x1b1   : > { %761 = vrot.lane.b32.xlu2 %v726_v40, %s2751_s7 }
 0x1b4   : > { %v532_v58 = vpop.permute.xlu1 %531 }
 0x1b5   : > { %v545_v42 = vsel %vm385_vm0, %v530_v12, %v532_v58 }
 0x1b6   : > { %v558_v45 = vadd.f32 %v545_v42, %v2897_v52 }
 0x1b7   : > { %v610_v46 = vpop.permute.xlu0 %609 }
 0x1b8   : > { %v3097_v47 = vpack.c.bf16 %v560_v44, %v558_v45  ;;  %v699_v59 = vmul.f32 %v610_v46, %v3078_v32 }
 0x1ba   : > { %v840_v49 = vsel %vm385_vm0, %v3097_v47, 0 }
 0x1bb   : > { %852 = vmatpush.bf16.xpose.msrb.mxu3 %v840_v49 }
 0x1bc   : > { %v608_v50 = vpop.permute.xlu1 %607 }
 0x1bd   : > { %v698_v53 = vmul.f32 %v608_v50, %v3058_v20 }
 0x1bf   : > { %v727_v55 = vpack.c.bf16 %v698_v53, %v697_v51  ;;  %v614_v56 = vpop.permute.xlu0 %613 }
 0x1c0   : > { %v701_v2 = vmul.f32 %v614_v56, %v3052_v16 }
 0x1c1   : > { %763 = vrot.lane.b32.xlu2 %v727_v55, %s2751_s7 }
 0x1c4   : > { %v612_v60 = vpop.permute.xlu1 %611 }
 0x1c5   : > { %v700_v52 = vmul.f32 %v612_v60, %v3084_v35 }
 0x1c7   : > { %v728_v61 = vpack.c.bf16 %v700_v52, %v699_v59  ;;  %v618_v63 = vpop.permute.xlu0 %617  ;;  %v327_v59 = vld [vmem:[%s4275_s4 + $0x100] sm:$0xff] }
 0x1c8   : > { %v703_v7 = vmul.f32 %v618_v63, %v3078_v32 }
 0x1c9   : > { %765 = vrot.lane.b32.xlu2 %v728_v61, %s2751_s7 }
 0x1cc   : > { %v616_v1 = vpop.permute.xlu1 %615 }
 0x1cd   : > { %v702_v3 = vmul.f32 %v616_v1, %v3058_v20 }
 0x1cf   : > { %v729_v4 = vpack.c.bf16 %v702_v3, %v701_v2  ;;  %v622_v5 = vpop.permute.xlu0 %621  ;;  %v328_v3 = vld [vmem:[%s4275_s4 + $0x108] sm:$0xff] }
 0x1d0   : > { %v705_v12 = vmul.f32 %v622_v5, %v3052_v16 }
 0x1d1   : > { %767 = vrot.lane.b32.xlu2 %v729_v4, %s2751_s7 }
 0x1d4   : > { %v620_v6 = vpop.permute.xlu1 %619 }
 0x1d5   : > { %v704_v8 = vmul.f32 %v620_v6, %v3084_v35 }
 0x1d7   : > { %v730_v9 = vpack.c.bf16 %v704_v8, %v703_v7  ;;  %v626_v10 = vpop.permute.xlu0 %625 }
 0x1d8   : > { %v707_v25 = vmul.f32 %v626_v10, %v3078_v32 }
 0x1d9   : > { %769 = vrot.lane.b32.xlu2 %v730_v9, %s2751_s7  ;;  %v329_v9 = vld [vmem:[%s4275_s4 + $0x110] sm:$0xff] }
 0x1dc   : > { %v624_v11 = vpop.permute.xlu1 %623 }
 0x1dd   : > { %v706_v13 = vmul.f32 %v624_v11, %v3058_v20 }
 0x1df   : > { %v731_v14 = vpack.c.bf16 %v706_v13, %v705_v12  ;;  %v630_v15 = vpop.permute.xlu0 %629 }
 0x1e0   : > { %v709_v21 = vmul.f32 %v630_v15, %v3052_v16 }
 0x1e1   : > { %771 = vrot.lane.b32.xlu2 %v731_v14, %s2751_s7  ;;  %v330_v14 = vld [vmem:[%s4275_s4 + $0x118] sm:$0xff] }
 0x1e4   : > { %v628_v17 = vpop.permute.xlu1 %627 }
 0x1e5   : > { %v708_v23 = vmul.f32 %v628_v17, %v3084_v35 }
 0x1e7   : > { %v634_v18 = vpop.permute.xlu0 %633  ;;  %v732_v26 = vpack.c.bf16 %v708_v23, %v707_v25 }
 0x1e8   : > { %v711_v38 = vmul.f32 %v634_v18, %v3078_v32 }
 0x1ec   : > { %v632_v19 = vpop.permute.xlu1 %631 }
 0x1ed   : > { %v710_v22 = vmul.f32 %v632_v19, %v3058_v20 }
 0x1ef   : > { %v733_v48 = vpack.c.bf16 %v710_v22, %v709_v21  ;;  %v638_v54 = vpop.permute.xlu0 %637 }
 0x1f0   : > { %v713_v29 = vmul.f32 %v638_v54, %v3052_v16 }
 0x1f1   : > { %775 = vrot.lane.b32.xlu2 %v733_v48, %s2751_s7  ;;  %v331_v48 = vld [vmem:[%s4275_s4 + $0x120] sm:$0xff] }
 0x1f4   : > { %v636_v24 = vpop.permute.xlu1 %635 }
 0x1f5   : > { %v712_v34 = vmul.f32 %v636_v24, %v3084_v35 }
 0x1f7   : > { %v642_v33 = vpop.permute.xlu0 %641  ;;  %v734_v39 = vpack.c.bf16 %v712_v34, %v711_v38 }
 0x1f8   : > { %v760_v27 = vpop.permute.xlu2 %759  ;;  %v715_v0 = vmul.f32 %v642_v33, %v3078_v32 }
 0x1f9   : > { %2503 = vmatmul.msk.bf16.vlgmr.msrb.gmra.mxu3 %vm385_vm0, %v760_v27  ;;  %773 = vrot.lane.b32.xlu2 %v732_v26, %s2751_s7 }
 0x1fc   : > { %v640_v28 = vpop.permute.xlu1 %639 }
 0x1fd   : > { %v714_v30 = vmul.f32 %v640_v28, %v3058_v20  ;;  %v332_v28 = vld [vmem:[%s4275_s4 + $0x128] sm:$0xff] }
 0x1ff   : > { %v735_v31 = vpack.c.bf16 %v714_v30, %v713_v29  ;;  %v646_v57 = vpop.permute.xlu0 %645 }
 0x200   : > { %v717_v58 = vmul.f32 %v646_v57, %v3052_v16 }
 0x201   : > { %779 = vrot.lane.b32.xlu2 %v735_v31, %s2751_s7 }
 0x204   : > { %v644_v37 = vpop.permute.xlu1 %643 }
 0x205   : > { %v716_v40 = vmul.f32 %v644_v37, %v3084_v35 }
 0x207   : > { %v736_v44 = vpack.c.bf16 %v716_v40, %v715_v0  ;;  %v650_v21 = vpop.permute.xlu0 %649 }
 0x208   : > { %v719_v40 = vmul.f32 %v650_v21, %v3078_v32 }
 0x209   : > { %777 = vrot.lane.b32.xlu2 %v734_v39, %s2751_s7 }
 0x20b   : > { %v762_v62 = vpop.permute.xlu2 %761 }
 0x20c   : > { %v648_v41 = vpop.permute.xlu1 %647  ;;  %2504 = vmatmul.msk.bf16.gmra.mxu3 %vm385_vm0, %v762_v62 }
 0x20d   : > { %v718_v42 = vmul.f32 %v648_v41, %v3058_v20 }
 0x20f   : > { %v737_v45 = vpack.c.bf16 %v718_v42, %v717_v58  ;;  %v654_v26 = vpop.permute.xlu0 %653 }
 0x210   : > { %v721_v31 = vmul.f32 %v654_v26, %v3052_v16 }
 0x211   : > { %781 = vrot.lane.b32.xlu2 %v736_v44, %s2751_s7  ;;  %783 = vrot.lane.b32.xlu1 %v737_v45, %s2751_s7 }
 0x214   : > { %v652_v18 = vpop.permute.xlu1 %651 }
 0x215   : > { %v720_v39 = vmul.f32 %v652_v18, %v3084_v35 }
 0x217   : > { %v738_v41 = vpack.c.bf16 %v720_v39, %v719_v40 }
 0x21b   : > { %v764_v46 = vpop.permute.xlu2 %763 }
 0x21c   : > { %2505 = vmatmul.msk.bf16.gmra.mxu3 %vm385_vm0, %v764_v46  ;;  %v656_v54 = vpop.permute.xlu1 %655 }
 0x21d   : > { %v722_v29 = vmul.f32 %v656_v54, %v3058_v20  ;;  %v333_v20 = vld [vmem:[%s4275_s4 + $0x130] sm:$0xff] }
 0x21f   : > { %v739_v37 = vpack.c.bf16 %v722_v29, %v721_v31 }
 0x223   : > { %v766_v49 = vpop.permute.xlu2 %765 }
 0x22b   : > { %v768_v50 = vpop.permute.xlu2 %767 }
 0x22c   : > { %2506 = vmatmul.msk.bf16.gmra.mxu3 %vm385_vm0, %v766_v49 }
 0x233   : > { %v770_v51 = vpop.permute.xlu2 %769 }
 0x23b   : > { %v772_v53 = vpop.permute.xlu2 %771 }
 0x23c   : > { %2507 = vmatmul.msk.bf16.gmra.mxu3 %vm385_vm0, %v768_v50  ;;  %v334_v50 = vld [vmem:[%s4275_s4 + $0x138] sm:$0xff] }
 0x24b   : > { %v776_v55 = vpop.permute.xlu2 %775 }
 0x24c   : > { %2508 = vmatmul.msk.bf16.gmra.mxu3 %vm385_vm0, %v770_v51 }
 0x253   : > { %v774_v56 = vpop.permute.xlu2 %773 }
 0x25b   : > { %v780_v63 = vpop.permute.xlu2 %779 }
 0x25c   : > { %2509 = vmatmul.msk.bf16.gmra.mxu3 %vm385_vm0, %v772_v53  ;;  %v335_v53 = vld [vmem:[%s4275_s4 + $0x140] sm:$0xff] }
 0x263   : > { %v778_v7 = vpop.permute.xlu2 %777 }
 0x26b   : > { %v782_v34 = vpop.permute.xlu2 %781 }
 0x26c   : > { %2510 = vmatmul.msk.bf16.gmra.mxu3 %vm385_vm0, %v774_v56 }
 0x27c   : > { %v854_v60 = vpop.f32.mrf.mxu3  ;;  %2511 = vmatmul.msk.bf16.gmra.mxu3 %vm385_vm0, %v776_v55 }
 0x27d   : > { %v934_v52 = vmul.f32 0.35355338, %v854_v60 }
 0x27f   : > { %v3146_v61 = vadd.f32 %v934_v52, %v327_v59 }
 0x281   : > { %v999_v1 = vsel %vm998_vm1, %v3146_v61, -inf }
 0x282   : > { %1000 = vmax.xlane.f32.xlu2 %v999_v1 }
 0x283   : > { %v784_v42 = vpop.permute.xlu1 %783 }
 0x284   : > { %v856_v2 = vpop.f32.mrf.mxu3 }
 0x285   : > { %v935_v4 = vmul.f32 0.35355338, %v856_v2 }
 0x287   : > { %v3153_v5 = vadd.f32 %v935_v4, %v328_v3 }
 0x289   : > { %v1002_v6 = vsel %vm998_vm1, %v3153_v5, -inf }
 0x28a   : > { %1003 = vmax.xlane.f32.xlu0 %v1002_v6 }
 0x28c   : > { %2512 = vmatmul.msk.bf16.gmra.mxu3 %vm385_vm0, %v778_v7 }
 0x28f   : > { %v859_v8 = vpop.f32.mrf.mxu3 }
 0x290   : > { %v936_v10 = vmul.f32 0.35355338, %v859_v8 }
 0x292   : > { %v3161_v11 = vadd.f32 %v936_v10, %v329_v9 }
 0x294   : > { %v1005_v12 = vsel %vm998_vm1, %v3161_v11, -inf }
 0x295   : > { %1006 = vmax.xlane.f32.xlu1 %v1005_v12 }
 0x297   : > { %v861_v13 = vpop.f32.mrf.mxu3 }
 0x298   : > { %v937_v15 = vmul.f32 0.35355338, %v861_v13 }
 0x29a   : > { %v3168_v17 = vadd.f32 %v937_v15, %v330_v14 }
 0x29c   : > { %2513 = vmatmul.msk.bf16.gmra.mxu3 %vm385_vm0, %v780_v63  ;;  %v1008_v19 = vsel %vm998_vm1, %v3168_v17, -inf  ;;  %v338_v63 = vld [vmem:[%s4275_s4 + $0x158] sm:$0xff] }
 0x29d   : > { %1009 = vmax.xlane.f32.xlu2 %v1008_v19 }
 0x29f   : > { %v864_v22 = vpop.f32.mrf.mxu3 }
 0x2a0   : > { %v938_v23 = vmul.f32 0.35355338, %v864_v22 }
 0x2a2   : > { %v3176_v24 = vadd.f32 %v938_v23, %v331_v48 }
 0x2a4   : > { %v1011_v25 = vsel %vm998_vm1, %v3176_v24, -inf }
 0x2a5   : > { %1012 = vmax.xlane.f32.xlu0 %v1011_v25 }
 0x2a7   : > { %v866_v27 = vpop.f32.mrf.mxu3 }
 0x2a8   : > { %v939_v30 = vmul.f32 0.35355338, %v866_v27 }
 0x2aa   : > { %v3185_v33 = vadd.f32 %v939_v30, %v332_v28  ;;  %v337_v28 = vld [vmem:[%s4275_s4 + $0x150] sm:$0xff] }
 0x2ac   : > { %2514 = vmatmul.msk.bf16.gmra.mxu3 %vm385_vm0, %v782_v34  ;;  %v1014_v38 = vsel %vm998_vm1, %v3185_v33, -inf }
 0x2ad   : > { %1015 = vmax.xlane.f32.xlu0 %v1014_v38 }
 0x2ae   : > { %787 = vrot.lane.b32.xlu1 %v739_v37, %s2751_s7 }
 0x2af   : > { %v869_v57 = vpop.f32.mrf.mxu3 }
 0x2b0   : > { %v940_v16 = vmul.f32 0.35355338, %v869_v57 }
 0x2b2   : > { %v3196_v62 = vadd.f32 %v940_v16, %v333_v20 }
 0x2b4   : > { %v1017_v0 = vsel %vm998_vm1, %v3196_v62, -inf }
 0x2b5   : > { %1018 = vmax.xlane.f32.xlu0 %v1017_v0  ;;  %785 = vrot.lane.b32.xlu2 %v738_v41, %s2751_s7  ;;  %v339_v0 = vld [vmem:[%s4275_s4 + $0x160] sm:$0xff] }
 0x2b6   : > { %1371 = vrot.lane.b32.xlu1 %v3086_v36, %s2751_s7 }
 0x2b7   : > { %v871_v58 = vpop.f32.mrf.mxu3 }
 0x2b8   : > { %v941_v49 = vmul.f32 0.35355338, %v871_v58  ;;  %v340_v58 = vld [vmem:[%s4275_s4 + $0x168] sm:$0xff] }
 0x2ba   : > { %v3212_v55 = vadd.f32 %v941_v49, %v334_v50 }
 0x2bc   : > { %2515 = vmatmul.msk.bf16.gmra.mxu3 %vm385_vm0, %v784_v42  ;;  %v1020_v60 = vsel %vm998_vm1, %v3212_v55, -inf }
 0x2bf   : > { %v874_v44 = vpop.f32.mrf.mxu3 }
 0x2c0   : > { %v942_v51 = vmul.f32 0.35355338, %v874_v44 }
 0x2c2   : > { %v3214_v36 = vadd.f32 %v942_v51, %v335_v53  ;;  %v341_v53 = vld [vmem:[%s4275_s4 + $0x170] sm:$0xff] }
 0x2c4   : > { %v1023_v52 = vsel %vm998_vm1, %v3214_v36, -inf }
 0x2c7   : > { %v3204_v45 = vpop.f32.mrf.mxu3 }
 0x2cf   : > { %v879_v46 = vpop.f32.mrf.mxu3 }
 0x2d0   : > { %v944_v26 = vmul.f32 0.35355338, %v879_v46 }
 0x2d2   : > { %v3254_v34 = vadd.f32 %v944_v26, %v337_v28 }
 0x2d4   : > { %v1029_v38 = vsel %vm998_vm1, %v3254_v34, -inf }
 0x2d7   : > { %v881_v56 = vpop.f32.mrf.mxu3 }
 0x2d8   : > { %v945_v59 = vmul.f32 0.35355338, %v881_v56 }
 0x2da   : > { %v3223_v1 = vadd.f32 %v945_v59, %v338_v63  ;;  %v943_v63 = vmul.f32 0.35355338, %v3204_v45  ;;  %v342_v45 = vld [vmem:[%s4275_s4 + $0x178] sm:$0xff] }
 0x2dc   : > { %v1032_v2 = vsel %vm998_vm1, %v3223_v1, -inf }
 0x2de   : > { %1021 = vmax.xlane.f32.xlu2 %v1020_v60 }
 0x2df   : > { %v884_v27 = vpop.f32.mrf.mxu3 }
 0x2e0   : > { %1024 = vmax.xlane.f32.xlu1 %v1023_v52  ;;  %v946_v16 = vmul.f32 0.35355338, %v884_v27 }
 0x2e2   : > { %v3274_v42 = vadd.f32 %v946_v16, %v339_v0 }
 0x2e4   : > { %v1035_v50 = vsel %vm998_vm1, %v3274_v42, -inf }
 0x2e7   : > { %v886_v39 = vpop.f32.mrf.mxu3 }
 0x2e8   : > { %1033 = vmax.xlane.f32.xlu1 %v1032_v2  ;;  %v947_v40 = vmul.f32 0.35355338, %v886_v39  ;;  %v336_v2 = vld [vmem:[%s4275_s4 + $0x148] sm:$0xff] }
 0x2ea   : > { %v3276_v44 = vadd.f32 %v947_v40, %v340_v58 }
 0x2ec   : > { %v1038_v51 = vsel %vm998_vm1, %v3276_v44, -inf }
 0x2ef   : > { %v889_v46 = vpop.f32.mrf.mxu3 }
 0x2f0   : > { %v948_v49 = vmul.f32 0.35355338, %v889_v46 }
 0x2f2   : > { %v3285_v56 = vadd.f32 %v948_v49, %v341_v53 }
 0x2f4   : > { %v1041_v59 = vsel %vm998_vm1, %v3285_v56, -inf }
 0x2f5   : > { %v1001_v3 = vpop.xlane.xlu2 %1000 }
 0x2f6   : > { %v1095_v4 = vsub.f32 %v3146_v61, %v1001_v3 }
 0x2f8   : > { %v1127_v6 = vmul.f32 1.442695, %v1095_v4  ;;  %v3294_v4 = vadd.f32 %v943_v63, %v336_v2 }
 0x2fa   : > { %2600 = vpow2.f32 %v1127_v6  ;;  %v1026_v6 = vsel %vm998_vm1, %v3294_v4, -inf }
 0x2fd   : > { %v1004_v7 = vpop.xlane.xlu0 %1003 }
 0x2fe   : > { %v1096_v8 = vsub.f32 %v3153_v5, %v1004_v7  ;;  %v891_v7 = vpop.f32.mrf.mxu3 }
 0x300   : > { %v3229_v9 = vpop.eup %2600  ;;  %v1129_v10 = vmul.f32 1.442695, %v1096_v8 }
 0x301   : > { %v1191_v12 = vsel %vm998_vm1, %v3229_v9, 0.0 }
 0x302   : > { %2602 = vpow2.f32 %v1129_v10  ;;  %1192 = vadd.xlane.f32.xlu0 %v1191_v12  ;;  %v949_v10 = vmul.f32 0.35355338, %v891_v7 }
 0x308   : > { %v3233_v13 = vpop.eup %2602  ;;  %v1007_v14 = vpop.xlane.xlu1 %1006 }
 0x309   : > { %v1097_v15 = vsub.f32 %v3161_v11, %v1007_v14  ;;  %v1194_v61 = vsel %vm998_vm1, %v3233_v13, 0.0 }
 0x30a   : > { %1195 = vadd.xlane.f32.xlu0 %v1194_v61  ;;  %v3306_v61 = vadd.f32 %v949_v10, %v342_v45 }
 0x30b   : > { %v1131_v18 = vmul.f32 1.442695, %v1097_v15 }
 0x30d   : > { %2604 = vpow2.f32 %v1131_v18  ;;  %v894_v18 = vpop.f32.mrf.mxu3 }
 0x310   : > { %v1010_v5 = vpop.xlane.xlu2 %1009 }
 0x311   : > { %v1098_v19 = vsub.f32 %v3168_v17, %v1010_v5 }
 0x313   : > { %v3239_v21 = vpop.eup %2604  ;;  %v1133_v22 = vmul.f32 1.442695, %v1098_v19 }
 0x314   : > { %v1197_v48 = vsel %vm998_vm1, %v3239_v21, 0.0 }
 0x315   : > { %2606 = vpow2.f32 %v1133_v22  ;;  %1198 = vadd.xlane.f32.xlu2 %v1197_v48  ;;  %v950_v22 = vmul.f32 0.35355338, %v894_v18  ;;  %v1044_v48 = vsel %vm998_vm1, %v3306_v61, -inf }
 0x318   : > { %v786_v23 = vpop.permute.xlu2 %785  ;;  %v1013_v25 = vpop.xlane.xlu0 %1012 }
 0x319   : > { %2516 = vmatmul.msk.bf16.gmra.mxu3 %vm385_vm0, %v786_v23  ;;  %v1099_v54 = vsub.f32 %v3176_v24, %v1013_v25  ;;  %v343_v25 = vld [vmem:[%s4275_s4 + $0x180] sm:$0xff] }
 0x31b   : > { %v3244_v11 = vpop.eup %2606  ;;  %v1135_v29 = vmul.f32 1.442695, %v1099_v54 }
 0x31c   : > { %v1200_v17 = vsel %vm998_vm1, %v3244_v11, 0.0 }
 0x31d   : > { %1201 = vadd.xlane.f32.xlu2 %v1200_v17  ;;  %2608 = vpow2.f32 %v1135_v29  ;;  %v896_v29 = vpop.f32.mrf.mxu3 }
 0x31e   : > { %1369 = vrot.lane.b32.xlu0 %v3097_v47, %s2751_s7 }
 0x320   : > { %v788_v30 = vpop.permute.xlu1 %787  ;;  %v1016_v31 = vpop.xlane.xlu0 %1015 }
 0x321   : > { %v1100_v24 = vsub.f32 %v3185_v33, %v1016_v31  ;;  %v951_v31 = vmul.f32 0.35355338, %v896_v29 }
 0x323   : > { %v1137_v37 = vmul.f32 1.442695, %v1100_v24  ;;  %v3259_v20 = vpop.eup %2608 }
 0x324   : > { %v1203_v33 = vsel %vm998_vm1, %v3259_v20, 0.0 }
 0x325   : > { %2610 = vpow2.f32 %v1137_v37  ;;  %1030 = vmax.xlane.f32.xlu2 %v1029_v38 }
 0x328   : > { %v1372_v57 = vpop.permute.xlu1 %1371  ;;  %v1019_v60 = vpop.xlane.xlu0 %1018 }
 0x329   : > { %2517 = vmatmul.msk.bf16.gmra.mxu3 %vm385_vm0, %v788_v30  ;;  %1429 = vmatpush.bf16.msrb.mxu0 %v1372_v57  ;;  %v1101_v52 = vsub.f32 %v3196_v62, %v1019_v60  ;;  %v899_v57 = vpop.f32.mrf.mxu3 }
 0x32a   : > { %v952_v16 = vmul.f32 0.35355338, %v899_v57 }
 0x32b   : > { %v3262_v47 = vpop.eup %2610  ;;  %v1139_v3 = vmul.f32 1.442695, %v1101_v52 }
 0x32c   : > { %v1206_v41 = vsel %vm998_vm1, %v3262_v47, 0.0 }
 0x32d   : > { %1204 = vadd.xlane.f32.xlu2 %v1203_v33  ;;  %1207 = vadd.xlane.f32.xlu1 %v1206_v41  ;;  %2612 = vpow2.f32 %v1139_v3  ;;  %v345_v33 = vld [vmem:[%s4275_s4 + $0x190] sm:$0xff] }
 0x32e   : > { %v3341_v41 = vadd.f32 %v952_v16, %v345_v33 }
 0x330   : > { %v1053_v0 = vsel %vm998_vm1, %v3341_v41, -inf }
 0x331   : > { %v3346_v60 = vpop.f32.mrf.mxu3 }
 0x333   : > { %v3298_v8 = vpop.eup %2612 }
 0x334   : > { %v1209_v62 = vsel %vm998_vm1, %v3298_v8, 0.0 }
 0x335   : > { %1036 = vmax.xlane.f32.xlu2 %v1035_v50  ;;  %1039 = vmax.xlane.f32.xlu1 %v1038_v51 }
 0x33d   : > { %1042 = vmax.xlane.f32.xlu1 %v1041_v59 }
 0x348   : > { %1027 = vmax.xlane.f32.xlu0 %v1026_v6  ;;  %v3350_v6 = vpop.f32.mrf.mxu3 }
 0x350   : > { %1210 = vadd.xlane.f32.xlu0 %v1209_v62 }
 0x351   : > { %v1022_v12 = vpop.xlane.xlu2 %1021 }
 0x352   : > { %v1102_v14 = vsub.f32 %v3212_v55, %v1022_v12  ;;  %v3314_v55 = vadd.f32 %v950_v22, %v343_v25 }
 0x353   : > { %v1025_v15 = vpop.xlane.xlu1 %1024 }
 0x354   : > { %v1141_v5 = vmul.f32 1.442695, %v1102_v14  ;;  %v1103_v19 = vsub.f32 %v3214_v36, %v1025_v15  ;;  %v1047_v28 = vsel %vm998_vm1, %v3314_v55, -inf  ;;  %v906_v14 = vpop.f32.mrf.mxu3 }
 0x356   : > { %2614 = vpow2.f32 %v1141_v5  ;;  %v1143_v23 = vmul.f32 1.442695, %v1103_v19 }
 0x358   : > { %1045 = vmax.xlane.f32.xlu0 %v1044_v48  ;;  %2616 = vpow2.f32 %v1143_v23 }
 0x35b   : > { %v1034_v54 = vpop.xlane.xlu1 %1033 }
 0x35c   : > { %v3316_v26 = vpop.eup %2614  ;;  %v1106_v17 = vsub.f32 %v3223_v1, %v1034_v54  ;;  %v344_v1 = vld [vmem:[%s4275_s4 + $0x188] sm:$0xff]  ;;  %v909_v25 = vpop.f32.mrf.mxu3 }
 0x35d   : > { %v1212_v36 = vsel %vm998_vm1, %v3316_v26, 0.0  ;;  %v3334_v39 = vadd.f32 %v951_v31, %v344_v1  ;;  %v956_v57 = vmul.f32 0.35355338, %v909_v25 }
 0x35e   : > { %v1149_v27 = vmul.f32 1.442695, %v1106_v17  ;;  %1213 = vadd.xlane.f32.xlu2 %v1212_v36  ;;  %v3323_v30 = vpop.eup %2616 }
 0x35f   : > { %v1215_v24 = vsel %vm998_vm1, %v3323_v30, 0.0  ;;  %v1050_v40 = vsel %vm998_vm1, %v3334_v39, -inf }
 0x360   : > { %2618 = vpow2.f32 %v1149_v27  ;;  %1048 = vmax.xlane.f32.xlu0 %v1047_v28 }
 0x366   : > { %v3327_v37 = vpop.eup %2618  ;;  %1216 = vadd.xlane.f32.xlu2 %v1215_v24 }
 0x367   : > { %v1224_v38 = vsel %vm998_vm1, %v3327_v37, 0.0 }
 0x368   : > { %1225 = vadd.xlane.f32.xlu0 %v1224_v38 }
 0x36e   : > { %1051 = vmax.xlane.f32.xlu2 %v1050_v40 }
 0x375   : > { %v1193_v58 = vpop.xlane.xlu0 %1192 }
 0x376   : > { %1054 = vmax.xlane.f32.xlu2 %v1053_v0 }
 0x37d   : > { %v1196_v46 = vpop.xlane.xlu0 %1195 }
 0x37e   : > { %2620 = vrcp.f32 %v1196_v46 }
 0x37f   : > { %2622 = vrcp.f32 %v1193_v58  ;;  %v349_v58 = vld [vmem:[%s4275_s4 + $0x1b0] sm:$0xff] }
 0x384   : > { %v2621_v50 = vpop.eup %2620 }
 0x385   : > { %v2623_v51 = vpop.eup %2622  ;;  %v1320_v53 = vmul.f32 %v2621_v50, %v3233_v13  ;;  %v3388_v50 = vadd.f32 %v956_v57, %v349_v58 }
 0x386   : > { %v1319_v59 = vmul.f32 %v2623_v51, %v3229_v9 }
 0x388   : > { %v1199_v49 = vpop.xlane.xlu2 %1198  ;;  %v1351_v2 = vpack.c.bf16 %v1320_v53, %v1319_v59 }
 0x390   : > { %v1202_v52 = vpop.xlane.xlu2 %1201  ;;  %v1370_v63 = vpop.permute.xlu0 %1369 }
 0x391   : > { %1430 = vmatpush.bf16.msrb.mxu0 %v1370_v63  ;;  %2624 = vrcp.f32 %v1202_v52  ;;  %v1065_v52 = vsel %vm998_vm1, %v3388_v50, -inf }
 0x392   : > { %2626 = vrcp.f32 %v1199_v49 }
 0x394   : > { %2519 = vmatmul.msk.bf16.vlgmr.msrb.gmra.mxu0 %vm998_vm1, %v1351_v2 }
 0x397   : > { %v2625_v7 = vpop.eup %2624 }
 0x398   : > { %v1031_v3 = vpop.xlane.xlu2 %1030  ;;  %v2627_v10 = vpop.eup %2626  ;;  %v1322_v62 = vmul.f32 %v2625_v7, %v3244_v11  ;;  %v351_v7 = vld [vmem:[%s4275_s4 + $0x1c0] sm:$0xff] }
 0x399   : > { %v1321_v12 = vmul.f32 %v2627_v10, %v3239_v21  ;;  %v1105_v46 = vsub.f32 %v3254_v34, %v1031_v3 }
 0x39b   : > { %v1352_v9 = vpack.c.bf16 %v1322_v62, %v1321_v12  ;;  %v1147_v59 = vmul.f32 1.442695, %v1105_v46  ;;  %v953_v12 = vmul.f32 0.35355338, %v3346_v60 }
 0x3a0   : > { %v1205_v13 = vpop.xlane.xlu2 %1204  ;;  %v1208_v45 = vpop.xlane.xlu1 %1207 }
 0x3a1   : > { %2628 = vrcp.f32 %v1205_v13 }
 0x3a2   : > { %2630 = vrcp.f32 %v1208_v45 }
 0x3a4   : > { %2520 = vmatmul.msk.bf16.gmra.mxu0 %vm998_vm1, %v1352_v9 }
 0x3a7   : > { %v2629_v22 = vpop.eup %2628 }
 0x3a8   : > { %v1037_v15 = vpop.xlane.xlu2 %1036  ;;  %v1040_v18 = vpop.xlane.xlu1 %1039  ;;  %v1323_v21 = vmul.f32 %v2629_v22, %v3259_v20 }
 0x3a9   : > { %v1107_v5 = vsub.f32 %v3274_v42, %v1037_v15  ;;  %v1108_v19 = vsub.f32 %v3276_v44, %v1040_v18  ;;  %v2631_v48 = vpop.eup %2630  ;;  %v955_v44 = vmul.f32 0.35355338, %v906_v14  ;;  %v346_v15 = vld [vmem:[%s4275_s4 + $0x198] sm:$0xff] }
 0x3aa   : > { %v1324_v54 = vmul.f32 %v2631_v48, %v3262_v47  ;;  %v348_v47 = vld [vmem:[%s4275_s4 + $0x1a8] sm:$0xff]  ;;  %v954_v48 = vmul.f32 0.35355338, %v3350_v6 }
 0x3ab   : > { %v1151_v23 = vmul.f32 1.442695, %v1107_v5  ;;  %v1153_v11 = vmul.f32 1.442695, %v1108_v19  ;;  %v3372_v24 = vadd.f32 %v955_v44, %v348_v47  ;;  %v3415_v5 = vadd.f32 %v953_v12, %v346_v15 }
 0x3ac   : > { %v1353_v27 = vpack.c.bf16 %v1324_v54, %v1323_v21 }
 0x3ad   : > { %2632 = vpow2.f32 %v1151_v23  ;;  %v1062_v33 = vsel %vm998_vm1, %v3372_v24, -inf  ;;  %v1056_v60 = vsel %vm998_vm1, %v3415_v5, -inf }
 0x3ae   : > { %2634 = vpow2.f32 %v1153_v11  ;;  %v347_v11 = vld [vmem:[%s4275_s4 + $0x1a0] sm:$0xff] }
 0x3b0   : > { %v1043_v17 = vpop.xlane.xlu1 %1042 }
 0x3b1   : > { %v1109_v36 = vsub.f32 %v3285_v56, %v1043_v17  ;;  %v911_v56 = vpop.f32.mrf.mxu3 }
 0x3b2   : > { %v957_v0 = vmul.f32 0.35355338, %v911_v56 }
 0x3b3   : > { %v3360_v28 = vpop.eup %2632  ;;  %v1155_v42 = vmul.f32 1.442695, %v1109_v36 }
 0x3b4   : > { %v3362_v29 = vpop.eup %2634  ;;  %2521 = vmatmul.msk.bf16.gmra.mxu0 %vm998_vm1, %v1353_v27  ;;  %v1227_v31 = vsel %vm998_vm1, %v3360_v28, 0.0  ;;  %v3428_v27 = vadd.f32 %v954_v48, %v347_v11 }
 0x3b5   : > { %2636 = vpow2.f32 %v1155_v42  ;;  %v1230_v20 = vsel %vm998_vm1, %v3362_v29, 0.0  ;;  %1228 = vadd.xlane.f32.xlu0 %v1227_v31 }
 0x3b6   : > { %1231 = vadd.xlane.f32.xlu2 %v1230_v20  ;;  %v1059_v44 = vsel %vm998_vm1, %v3428_v27, -inf }
 0x3b9   : > { %v914_v53 = vpop.f32.mrf.mxu3 }
 0x3ba   : > { %v958_v63 = vmul.f32 0.35355338, %v914_v53 }
 0x3bb   : > { %v3374_v1 = vpop.eup %2636  ;;  %v1028_v38 = vpop.xlane.xlu0 %1027 }
 0x3bc   : > { %v1104_v16 = vsub.f32 %v3294_v4, %v1028_v38  ;;  %v1233_v40 = vsel %vm998_vm1, %v3374_v1, 0.0  ;;  %v350_v4 = vld [vmem:[%s4275_s4 + $0x1b8] sm:$0xff]  ;;  %v3403_v62 = vadd.f32 %v958_v63, %v351_v7 }
 0x3bd   : > { %1063 = vmax.xlane.f32.xlu0 %v1062_v33  ;;  %v3390_v51 = vadd.f32 %v957_v0, %v350_v4 }
 0x3be   : > { %v1145_v49 = vmul.f32 1.442695, %v1104_v16  ;;  %1234 = vadd.xlane.f32.xlu2 %v1233_v40  ;;  %v1071_v45 = vsel %vm998_vm1, %v3403_v62, -inf }
 0x3bf   : > { %v1068_v34 = vsel %vm998_vm1, %v3390_v51, -inf }
 0x3c0   : > { %2638 = vpow2.f32 %v1145_v49 }
 0x3c1   : > { %2640 = vpow2.f32 %v1147_v59  ;;  %v916_v42 = vpop.f32.mrf.mxu3 }
 0x3c2   : > { %v959_v0 = vmul.f32 0.35355338, %v916_v42 }
 0x3c3   : > { %v1211_v3 = vpop.xlane.xlu0 %1210 }
 0x3c4   : > { %2642 = vrcp.f32 %v1211_v3  ;;  %v353_v3 = vld [vmem:[%s4275_s4 + $0x1d0] sm:$0xff] }
 0x3c5   : > { %1066 = vmax.xlane.f32.xlu0 %v1065_v52  ;;  %v354_v52 = vld [vmem:[%s4275_s4 + $0x1d8] sm:$0xff] }
 0x3c6   : > { %v3396_v2 = vpop.eup %2638  ;;  %1069 = vmax.xlane.f32.xlu2 %v1068_v34 }
 0x3c7   : > { %v1218_v10 = vsel %vm998_vm1, %v3396_v2, 0.0  ;;  %v3405_v13 = vpop.eup %2640 }
 0x3c8   : > { %1219 = vadd.xlane.f32.xlu1 %v1218_v10  ;;  %v1221_v9 = vsel %vm998_vm1, %v3405_v13, 0.0 }
 0x3c9   : > { %v919_v56 = vpop.f32.mrf.mxu3 }
 0x3ca   : > { %v2643_v19 = vpop.eup %2642  ;;  %v960_v63 = vmul.f32 0.35355338, %v919_v56 }
 0x3cb   : > { %v1046_v14 = vpop.xlane.xlu0 %1045  ;;  %v1325_v21 = vmul.f32 %v2643_v19, %v3298_v8 }
 0x3cc   : > { %v1110_v22 = vsub.f32 %v3306_v61, %v1046_v14  ;;  %v355_v14 = vld [vmem:[%s4275_s4 + $0x1e0] sm:$0xff] }
 0x3ce   : > { %1072 = vmax.xlane.f32.xlu2 %v1071_v45  ;;  %v1157_v17 = vmul.f32 1.442695, %v1110_v22  ;;  %v3467_v45 = vadd.f32 %v960_v63, %v353_v3 }
 0x3d0   : > { %1222 = vadd.xlane.f32.xlu1 %v1221_v9  ;;  %v1077_v15 = vsel %vm998_vm1, %v3467_v45, -inf }
 0x3d1   : > { %v1214_v18 = vpop.xlane.xlu2 %1213  ;;  %v921_v46 = vpop.f32.mrf.mxu3 }
 0x3d2   : > { %2644 = vrcp.f32 %v1214_v18  ;;  %v961_v53 = vmul.f32 0.35355338, %v921_v46 }
 0x3d3   : > { %v1049_v36 = vpop.xlane.xlu0 %1048  ;;  %2646 = vpow2.f32 %v1157_v17 }
 0x3d4   : > { %v1111_v6 = vsub.f32 %v3314_v55, %v1049_v36  ;;  %v3465_v7 = vadd.f32 %v961_v53, %v354_v52 }
 0x3d6   : > { %v1159_v31 = vmul.f32 1.442695, %v1111_v6  ;;  %v1080_v9 = vsel %vm998_vm1, %v3465_v7, -inf }
 0x3d8   : > { %v2645_v23 = vpop.eup %2644  ;;  %1057 = vmax.xlane.f32.xlu1 %v1056_v60  ;;  %2648 = vpow2.f32 %v1159_v31  ;;  %v3485_v60 = vld [vmem:[%s4275_s4 + $0x200] sm:$0xff] }
 0x3d9   : > { %v3424_v25 = vpop.xlane.xlu2 %1216  ;;  %v1326_v54 = vmul.f32 %v2645_v23, %v3316_v26  ;;  %v3435_v26 = vpop.eup %2646  ;;  %v3488_v11 = vperm.slane %v3485_v60, 0  ;;  %v3496_v6 = vperm.slane %v3485_v60, 1 }
 0x3da   : > { %v1236_v55 = vsel %vm998_vm1, %v3435_v26, 0.0  ;;  %v924_v10 = vpop.f32.mrf.mxu3 }
 0x3db   : > { %v1354_v61 = vpack.c.bf16 %v1326_v54, %v1325_v21  ;;  %v962_v12 = vmul.f32 0.35355338, %v924_v10  ;;  %v1226_v23 = vpop.xlane.xlu0 %1225 }
 0x3dd   : > { %2522 = vmatmul.msk.bf16.gmra.mxu0 %vm998_vm1, %v1354_v61  ;;  %v3476_v18 = vadd.f32 %v962_v12, %v355_v14 }
 0x3de   : > { %v3440_v16 = vpop.eup %2648 }
 0x3df   : > { %v1239_v58 = vsel %vm998_vm1, %v3440_v16, 0.0  ;;  %v1083_v19 = vsel %vm998_vm1, %v3476_v18, -inf }
 0x3e0   : > { %1060 = vmax.xlane.f32.xlu1 %v1059_v44 }
 0x3e1   : > { %v1052_v20 = vpop.xlane.xlu2 %1051 }
 0x3e2   : > { %v1112_v8 = vsub.f32 %v3334_v39, %v1052_v20 }
 0x3e4   : > { %v1161_v47 = vmul.f32 1.442695, %v1112_v8 }
 0x3e6   : > { %2650 = vpow2.f32 %v1161_v47 }
 0x3e8   : > { %1237 = vadd.xlane.f32.xlu1 %v1236_v55 }
 0x3e9   : > { %v1055_v38 = vpop.xlane.xlu2 %1054 }
 0x3ea   : > { %v1113_v57 = vsub.f32 %v3341_v41, %v1055_v38  ;;  %v352_v41 = vld [vmem:[%s4275_s4 + $0x1c8] sm:$0xff] }
 0x3eb   : > { %v3451_v49 = vadd.f32 %v959_v0, %v352_v41 }
 0x3ec   : > { %v3442_v40 = vpop.eup %2650  ;;  %v1163_v33 = vmul.f32 1.442695, %v1113_v57 }
 0x3ed   : > { %v1242_v39 = vsel %vm998_vm1, %v3442_v40, 0.0  ;;  %v1074_v34 = vsel %vm998_vm1, %v3451_v49, -inf }
 0x3ee   : > { %2652 = vpow2.f32 %v1163_v33  ;;  %1243 = vadd.xlane.f32.xlu0 %v1242_v39 }
 0x3f0   : > { %1240 = vadd.xlane.f32.xlu1 %v1239_v58 }
 0x3f4   : > { %v3453_v4 = vpop.eup %2652 }
 0x3f5   : > { %v1245_v59 = vsel %vm998_vm1, %v3453_v4, 0.0 }
 0x3f6   : > { %1246 = vadd.xlane.f32.xlu0 %v1245_v59 }
 0x3f8   : > { %1075 = vmax.xlane.f32.xlu1 %v1074_v34 }
 0x3fe   : > { %1081 = vmax.xlane.f32.xlu0 %v1080_v9 }
 0x400   : > { %1078 = vmax.xlane.f32.xlu1 %v1077_v15 }
 0x406   : > { %1084 = vmax.xlane.f32.xlu0 %v1083_v19 }
 0x411   : > { %v1432_v22 = vpop.f32.mrf.mxu0 }
 0x412   : > { %v1513_v8 = vmul.f32 %v3488_v11, %v1432_v22 }
 0x419   : > { %v3480_v48 = vpop.f32.mrf.mxu0 }
 0x421   : > { %v1437_v21 = vpop.f32.mrf.mxu0 }
 0x422   : > { %v3491_v54 = vmul.f32 %v3488_v11, %v1437_v21 }
 0x428   : > { %v1229_v17 = vpop.xlane.xlu0 %1228 }
 0x429   : > { %v1232_v36 = vpop.xlane.xlu2 %1231  ;;  %v3493_v61 = vpop.f32.mrf.mxu0 }
 0x430   : > { %v1064_v42 = vpop.xlane.xlu0 %1063 }
 0x431   : > { %v3498_v44 = vpop.xlane.xlu2 %1234  ;;  %v1116_v31 = vsub.f32 %v3372_v24, %v1064_v42  ;;  %v1442_v20 = vpop.f32.mrf.mxu0 }
 0x432   : > { %v1518_v47 = vmul.f32 %v3496_v6, %v1442_v20 }
 0x433   : > { %v1169_v56 = vmul.f32 1.442695, %v1116_v31 }
 0x434   : > { %v3503_v55 = vadd.f32 %v1518_v47, %v1513_v8 }
 0x435   : > { %2654 = vpow2.f32 %v1169_v56 }
 0x436   : > { %2656 = vrcp.f32 %v3424_v25 }
 0x438   : > { %v1067_v38 = vpop.xlane.xlu0 %1066 }
 0x439   : > { %v1070_v57 = vpop.xlane.xlu2 %1069  ;;  %v1117_v33 = vsub.f32 %v3388_v50, %v1067_v38  ;;  %v3525_v19 = vpop.f32.mrf.mxu0 }
 0x43a   : > { %v1118_v39 = vsub.f32 %v3390_v51, %v1070_v57 }
 0x43b   : > { %v3508_v0 = vpop.eup %2654  ;;  %v1171_v24 = vmul.f32 1.442695, %v1117_v33  ;;  %v1220_v58 = vpop.xlane.xlu1 %1219 }
 0x43c   : > { %v1173_v46 = vmul.f32 1.442695, %v1118_v39  ;;  %2658 = vrcp.f32 %v1220_v58  ;;  %v1254_v41 = vsel %vm998_vm1, %v3508_v0, 0.0  ;;  %v2657_v53 = vpop.eup %2656 }
 0x43d   : > { %2660 = vpow2.f32 %v1171_v24  ;;  %1255 = vadd.xlane.f32.xlu1 %v1254_v41  ;;  %v1327_v25 = vmul.f32 %v2657_v53, %v3323_v30  ;;  %v356_v24 = vld [vmem:[%s4275_s4 + $0x1e8] sm:$0xff] }
 0x43e   : > { %2662 = vpow2.f32 %v1173_v46 }
 0x441   : > { %v1073_v8 = vpop.xlane.xlu2 %1072 }
 0x442   : > { %v2659_v59 = vpop.eup %2658 }
 0x443   : > { %v3512_v52 = vpop.eup %2660  ;;  %v1223_v50 = vpop.xlane.xlu1 %1222  ;;  %v1328_v51 = vmul.f32 %v2659_v59, %v3396_v2  ;;  %v1516_v59 = vmul.f32 %v3488_v11, %v3493_v61 }
 0x444   : > { %v3516_v63 = vpop.eup %2662  ;;  %v1257_v34 = vsel %vm998_vm1, %v3512_v52, 0.0  ;;  %2664 = vrcp.f32 %v1223_v50 }
 0x445   : > { %v1260_v3 = vsel %vm998_vm1, %v3516_v63, 0.0  ;;  %1258 = vadd.xlane.f32.xlu1 %v1257_v34  ;;  %v1355_v10 = vpack.c.bf16 %v1328_v51, %v1327_v25  ;;  %2666 = vrcp.f32 %v1226_v23 }
 0x446   : > { %1261 = vadd.xlane.f32.xlu0 %v1260_v3 }
 0x447   : > { %2523 = vmatmul.msk.bf16.gmra.mxu0 %vm998_vm1, %v1355_v10 }
 0x44a   : > { %v2665_v9 = vpop.eup %2664 }
 0x44b   : > { %v1058_v12 = vpop.xlane.xlu1 %1057  ;;  %v2667_v14 = vpop.eup %2666  ;;  %v1329_v15 = vmul.f32 %v2665_v9, %v3405_v13 }
 0x44c   : > { %v1114_v30 = vsub.f32 %v3415_v5, %v1058_v12  ;;  %v1330_v21 = vmul.f32 %v2667_v14, %v3327_v37 }
 0x44e   : > { %v1165_v2 = vmul.f32 1.442695, %v1114_v30  ;;  %v1356_v31 = vpack.c.bf16 %v1330_v21, %v1329_v15 }
 0x450   : > { %2668 = vpow2.f32 %v1165_v2 }
 0x451   : > { %2670 = vrcp.f32 %v1229_v17 }
 0x452   : > { %2672 = vrcp.f32 %v1232_v36  ;;  %v1119_v36 = vsub.f32 %v3403_v62, %v1073_v8 }
 0x453   : > { %v1061_v22 = vpop.xlane.xlu1 %1060 }
 0x454   : > { %v1115_v42 = vsub.f32 %v3428_v27, %v1061_v22  ;;  %v926_v27 = vpop.f32.mrf.mxu3 }
 0x455   : > { %v963_v33 = vmul.f32 0.35355338, %v926_v27 }
 0x456   : > { %v3529_v20 = vpop.eup %2668  ;;  %v1167_v23 = vmul.f32 1.442695, %v1115_v42 }
 0x457   : > { %2524 = vmatmul.msk.bf16.gmra.mxu0 %vm998_vm1, %v1356_v31  ;;  %v1248_v5 = vsel %vm998_vm1, %v3529_v20, 0.0  ;;  %v2671_v56 = vpop.eup %2670  ;;  %v3551_v25 = vadd.f32 %v963_v33, %v356_v24  ;;  %v1526_v24 = vperm.slane %v3485_v60, 2 }
 0x458   : > { %2674 = vpow2.f32 %v1167_v23  ;;  %1249 = vadd.xlane.f32.xlu2 %v1248_v5  ;;  %v2673_v38 = vpop.eup %2672  ;;  %v1331_v46 = vmul.f32 %v2671_v56, %v3360_v28 }
 0x459   : > { %v1332_v41 = vmul.f32 %v2673_v38, %v3362_v29  ;;  %v1086_v28 = vsel %vm998_vm1, %v3551_v25, -inf }
 0x45a   : > { %v1447_v13 = vpop.f32.mrf.mxu0 }
 0x45b   : > { %v1520_v47 = vmul.f32 %v3496_v6, %v1447_v13  ;;  %v1238_v37 = vpop.xlane.xlu1 %1237  ;;  %v1357_v34 = vpack.c.bf16 %v1332_v41, %v1331_v46 }
 0x45d   : > { %v3536_v57 = vadd.f32 %v1520_v47, %v3491_v54  ;;  %v1175_v54 = vmul.f32 1.442695, %v1119_v36 }
 0x45e   : > { %v3538_v17 = vpop.eup %2674 }
 0x45f   : > { %v1251_v39 = vsel %vm998_vm1, %v3538_v17, 0.0  ;;  %2676 = vpow2.f32 %v1175_v54 }
 0x460   : > { %1252 = vadd.xlane.f32.xlu2 %v1251_v39  ;;  %2678 = vrcp.f32 %v1238_v37 }
 0x461   : > { %v1244_v58 = vpop.xlane.xlu0 %1243  ;;  %2680 = vrcp.f32 %v3498_v44 }
 0x462   : > { %v1449_v53 = vpop.f32.mrf.mxu0 }
 0x463   : > { %v1521_v62 = vmul.f32 %v3496_v6, %v1449_v53  ;;  %v1241_v50 = vpop.xlane.xlu1 %1240 }
 0x465   : > { %v3553_v51 = vadd.f32 %v1521_v62, %v1516_v59  ;;  %v3559_v3 = vpop.eup %2676 }
 0x466   : > { %v2679_v12 = vpop.eup %2678  ;;  %v1263_v9 = vsel %vm998_vm1, %v3559_v3, 0.0 }
 0x467   : > { %2525 = vmatmul.msk.bf16.gmra.mxu0 %vm998_vm1, %v1357_v34  ;;  %v2681_v2 = vpop.eup %2680  ;;  %v1334_v15 = vmul.f32 %v2679_v12, %v3435_v26 }
 0x468   : > { %1087 = vmax.xlane.f32.xlu2 %v1086_v28  ;;  %v1333_v44 = vmul.f32 %v2681_v2, %v3374_v1 }
 0x469   : > { %v1247_v29 = vpop.xlane.xlu0 %1246 }
 0x46b   : > { %v1076_v61 = vpop.xlane.xlu1 %1075 }
 0x46c   : > { %v1120_v10 = vsub.f32 %v3451_v49, %v1076_v61  ;;  %v1358_v49 = vpack.c.bf16 %v1334_v15, %v1333_v44 }
 0x46e   : > { %v1177_v30 = vmul.f32 1.442695, %v1120_v10 }
 0x470   : > { %2682 = vpow2.f32 %v1177_v30  ;;  %1264 = vadd.xlane.f32.xlu2 %v1263_v9 }
 0x471   : > { %v1082_v14 = vpop.xlane.xlu0 %1081 }
 0x472   : > { %v1122_v22 = vsub.f32 %v3465_v7, %v1082_v14 }
 0x473   : > { %v1079_v21 = vpop.xlane.xlu1 %1078 }
 0x474   : > { %v1181_v42 = vmul.f32 1.442695, %v1122_v22  ;;  %v1121_v31 = vsub.f32 %v3467_v45, %v1079_v21  ;;  %v1535_v22 = vperm.slane %v3485_v60, 3 }
 0x476   : > { %v3568_v23 = vpop.eup %2682  ;;  %2684 = vpow2.f32 %v1181_v42  ;;  %v1179_v5 = vmul.f32 1.442695, %v1121_v31 }
 0x477   : > { %2686 = vrcp.f32 %v1241_v50  ;;  %2526 = vmatmul.msk.bf16.gmra.mxu0 %vm998_vm1, %v1358_v49  ;;  %v1266_v13 = vsel %vm998_vm1, %v3568_v23, 0.0 }
 0x478   : > { %2688 = vpow2.f32 %v1179_v5  ;;  %1267 = vadd.xlane.f32.xlu1 %v1266_v13  ;;  %v1519_v5 = vmul.f32 %v3496_v6, %v3525_v19 }
 0x479   : > { %v1085_v26 = vpop.xlane.xlu0 %1084  ;;  %2690 = vrcp.f32 %v1244_v58 }
 0x47a   : > { %v1123_v1 = vsub.f32 %v3476_v18, %v1085_v26 }
 0x47c   : > { %v3574_v7 = vpop.eup %2684  ;;  %v1183_v45 = vmul.f32 1.442695, %v1123_v1 }
 0x47d   : > { %v2687_v8 = vpop.eup %2686  ;;  %v1272_v47 = vsel %vm998_vm1, %v3574_v7, 0.0 }
 0x47e   : > { %v3578_v37 = vpop.eup %2688  ;;  %2692 = vpow2.f32 %v1183_v45  ;;  %1273 = vadd.xlane.f32.xlu2 %v1272_v47  ;;  %v1335_v38 = vmul.f32 %v2687_v8, %v3440_v16 }
 0x47f   : > { %v1269_v56 = vsel %vm998_vm1, %v3578_v37, 0.0  ;;  %v2691_v27 = vpop.eup %2690  ;;  %2694 = vrcp.f32 %v1247_v29 }
 0x480   : > { %1270 = vadd.xlane.f32.xlu0 %v1269_v56  ;;  %v1336_v18 = vmul.f32 %v2691_v27, %v3442_v40 }
 0x482   : > { %v1359_v39 = vpack.c.bf16 %v1336_v18, %v1335_v38 }
 0x484   : > { %v3584_v36 = vpop.eup %2692 }
 0x485   : > { %v1275_v33 = vsel %vm998_vm1, %v3584_v36, 0.0  ;;  %v2695_v40 = vpop.eup %2694 }
 0x486   : > { %1276 = vadd.xlane.f32.xlu1 %v1275_v33  ;;  %v1337_v62 = vmul.f32 %v2695_v40, %v3453_v4 }
 0x487   : > { %2527 = vmatmul.msk.bf16.gmra.mxu0 %vm998_vm1, %v1359_v39 }
 0x4b0   : > { %v1256_v10 = vpop.xlane.xlu1 %1255 }
 0x4b8   : > { %v1259_v21 = vpop.xlane.xlu1 %1258 }
 0x4b9   : > { %v1262_v42 = vpop.xlane.xlu0 %1261 }
 0x4c4   : > { %v1452_v58 = vpop.f32.mrf.mxu0 }
 0x4c5   : > { %v1527_v46 = vmul.f32 %v1526_v24, %v1452_v58 }
 0x4c7   : > { %v1531_v41 = vadd.f32 %v1527_v46, %v3503_v55 }
 0x4cb   : > { %v1250_v54 = vpop.xlane.xlu2 %1249 }
 0x4cc   : > { %2696 = vrcp.f32 %v1250_v54  ;;  %v1454_v16 = vpop.f32.mrf.mxu0 }
 0x4cd   : > { %v1528_v13 = vmul.f32 %v1526_v24, %v1454_v16 }
 0x4d2   : > { %v2697_v53 = vpop.eup %2696 }
 0x4d3   : > { %v1253_v59 = vpop.xlane.xlu2 %1252  ;;  %v1338_v50 = vmul.f32 %v2697_v53, %v3529_v20 }
 0x4d4   : > { %v1457_v34 = vpop.f32.mrf.mxu0  ;;  %2698 = vrcp.f32 %v1253_v59 }
 0x4d5   : > { %v1529_v28 = vmul.f32 %v1526_v24, %v1457_v34  ;;  %v1360_v61 = vpack.c.bf16 %v1338_v50, %v1337_v62  ;;  %2700 = vrcp.f32 %v1256_v10 }
 0x4d7   : > { %v1533_v12 = vadd.f32 %v1529_v28, %v3536_v57  ;;  %2528 = vmatmul.msk.bf16.gmra.mxu0 %vm998_vm1, %v1360_v61 }
 0x4da   : > { %v2699_v2 = vpop.eup %2698 }
 0x4db   : > { %v1088_v55 = vpop.xlane.xlu2 %1087  ;;  %v2701_v20 = vpop.eup %2700  ;;  %v1339_v15 = vmul.f32 %v2699_v2, %v3538_v17 }
 0x4dc   : > { %v1124_v29 = vsub.f32 %v3551_v25, %v1088_v55  ;;  %v1459_v30 = vpop.f32.mrf.mxu0  ;;  %v1340_v57 = vmul.f32 %v2701_v20, %v3508_v0  ;;  %v1514_v0 = vmul.f32 %v3488_v11, %v3480_v48 }
 0x4dd   : > { %v1530_v9 = vmul.f32 %v1526_v24, %v1459_v30 }
 0x4de   : > { %v1185_v14 = vmul.f32 1.442695, %v1124_v29  ;;  %v1361_v49 = vpack.c.bf16 %v1340_v57, %v1339_v15  ;;  %v1523_v26 = vadd.f32 %v1519_v5, %v1514_v0 }
 0x4df   : > { %v1534_v4 = vadd.f32 %v1530_v9, %v3553_v51 }
 0x4e0   : > { %2702 = vpow2.f32 %v1185_v14  ;;  %v1532_v8 = vadd.f32 %v1528_v13, %v1523_v26 }
 0x4e1   : > { %2704 = vrcp.f32 %v1259_v21 }
 0x4e2   : > { %2706 = vrcp.f32 %v1262_v42 }
 0x4e3   : > { %v1265_v58 = vpop.xlane.xlu2 %1264 }
 0x4e4   : > { %v1462_v44 = vpop.f32.mrf.mxu0 }
 0x4e5   : > { %v1536_v31 = vmul.f32 %v1535_v22, %v1462_v44 }
 0x4e6   : > { %v3600_v25 = vpop.eup %2702 }
 0x4e7   : > { %v1540_v51 = vadd.f32 %v1536_v31, %v1531_v41  ;;  %2529 = vmatmul.msk.bf16.gmra.mxu0 %vm998_vm1, %v1361_v49  ;;  %v1278_v17 = vsel %vm998_vm1, %v3600_v25, 0.0  ;;  %v2705_v45 = vpop.eup %2704 }
 0x4e8   : > { %1279 = vadd.xlane.f32.xlu0 %v1278_v17  ;;  %v2707_v56 = vpop.eup %2706  ;;  %v1341_v19 = vmul.f32 %v2705_v45, %v3512_v52  ;;  %v3616_v52 = vperm.slane %v3485_v60, 4 }
 0x4e9   : > { %v1342_v27 = vmul.f32 %v2707_v56, %v3516_v63 }
 0x4eb   : > { %v1268_v18 = vpop.xlane.xlu1 %1267  ;;  %v1362_v39 = vpack.c.bf16 %v1342_v27, %v1341_v19 }
 0x4ec   : > { %v1464_v1 = vpop.f32.mrf.mxu0  ;;  %2708 = vrcp.f32 %v1268_v18  ;;  %v279_v18 = vld [vmem:[%s4273_s2 + $0xb8] sm:$0xff] }
 0x4ed   : > { %v1537_v47 = vmul.f32 %v1535_v22, %v1464_v1  ;;  %2710 = vrcp.f32 %v1265_v58  ;;  %v277_v58 = vld [vmem:[%s4273_s2 + $0xa8] sm:$0xff] }
 0x4ef   : > { %v3609_v6 = vadd.f32 %v1537_v47, %v1532_v8  ;;  %v1562_v8 = vperm.slane %v3485_v60, 6 }
 0x4f1   : > { %v1274_v50 = vpop.xlane.xlu2 %1273 }
 0x4f2   : > { %v2709_v24 = vpop.eup %2708 }
 0x4f3   : > { %v2711_v54 = vpop.eup %2710  ;;  %v1344_v16 = vmul.f32 %v2709_v24, %v3568_v23  ;;  %v1271_v53 = vpop.xlane.xlu0 %1270 }
 0x4f4   : > { %v1467_v38 = vpop.f32.mrf.mxu0  ;;  %v1343_v63 = vmul.f32 %v2711_v54, %v3559_v3  ;;  %2712 = vrcp.f32 %v1271_v53  ;;  %v273_v54 = vld [vmem:[%s4273_s2 + $0x88] sm:$0xff] }
 0x4f5   : > { %v1538_v33 = vmul.f32 %v1535_v22, %v1467_v38  ;;  %2714 = vrcp.f32 %v1274_v50  ;;  %v278_v38 = vld [vmem:[%s4273_s2 + $0xb0] sm:$0xff] }
 0x4f6   : > { %v1363_v62 = vpack.c.bf16 %v1344_v16, %v1343_v63 }
 0x4f7   : > { %v1542_v46 = vadd.f32 %v1538_v33, %v1533_v12  ;;  %2530 = vmatmul.msk.bf16.gmra.mxu0 %vm998_vm1, %v1362_v39  ;;  %v1585_v33 = vpack.c.bf16 %v279_v18, %v278_v38  ;;  %v276_v39 = vld [vmem:[%s4273_s2 + $0xa0] sm:$0xff] }
 0x4f9   : > { %v1277_v30 = vpop.xlane.xlu1 %1276  ;;  %1597 = vmatpush.bf16.msrb.mxu1 %v1585_v33 }
 0x4fa   : > { %v2713_v28 = vpop.eup %2712  ;;  %2716 = vrcp.f32 %v1277_v30 }
 0x4fb   : > { %v2715_v61 = vpop.eup %2714  ;;  %v1345_v23 = vmul.f32 %v2713_v28, %v3578_v37  ;;  %v1553_v37 = vperm.slane %v3485_v60, 5 }
 0x4fc   : > { %v1469_v48 = vpop.f32.mrf.mxu0  ;;  %v1346_v10 = vmul.f32 %v2715_v61, %v3574_v7 }
 0x4fd   : > { %v1539_v11 = vmul.f32 %v1535_v22, %v1469_v48  ;;  %v274_v48 = vld [vmem:[%s4273_s2 + $0x90] sm:$0xff] }
 0x4fe   : > { %v1364_v12 = vpack.c.bf16 %v1346_v10, %v1345_v23 }
 0x4ff   : > { %v1543_v41 = vadd.f32 %v1539_v11, %v1534_v4  ;;  %v275_v11 = vld [vmem:[%s4273_s2 + $0x98] sm:$0xff] }
 0x500   : > { %v2717_v15 = vpop.eup %2716  ;;  %v1583_v24 = vpack.c.bf16 %v275_v11, %v274_v48 }
 0x501   : > { %v1347_v22 = vmul.f32 %v2717_v15, %v3584_v36  ;;  %v2739_v15 = vld [vmem:[%s2849_s9 + $0x8] sm:$0xff] }
 0x504   : > { %v1472_v40 = vpop.f32.mrf.mxu0 }
 0x505   : > { %v1545_v59 = vmul.f32 %v3616_v52, %v1472_v40 }
 0x507   : > { %v1549_v34 = vadd.f32 %v1545_v59, %v1540_v51  ;;  %2531 = vmatmul.msk.bf16.gmra.mxu0 %vm998_vm1, %v1363_v62  ;;  %v3661_v59 = vperm.slane %v3485_v60, 7  ;;  %v3670_v60 = vld [vmem:[%s4274_s3] ss:$0 sm:$0xff] }
 0x50c   : > { %v1474_v3 = vpop.f32.mrf.mxu0 }
 0x50d   : > { %v1546_v40 = vmul.f32 %v3616_v52, %v1474_v3 }
 0x50f   : > { %v1550_v62 = vadd.f32 %v1546_v40, %v3609_v6  ;;  %v3714_v40 = vld [vmem:[%s4273_s2 + $0x68] sm:$0xff] }
 0x517   : > { %2532 = vmatmul.msk.bf16.gmra.mxu0 %vm998_vm1, %v1364_v12 }
 0x554   : > { %v1477_v55 = vpop.f32.mrf.mxu0 }
 0x555   : > { %v1547_v29 = vmul.f32 %v3616_v52, %v1477_v55 }
 0x557   : > { %v1551_v9 = vadd.f32 %v1547_v29, %v1542_v46  ;;  %v1584_v46 = vpack.c.bf16 %v277_v58, %v276_v39 }
 0x559   : > { %1598 = vmatpush.bf16.msrb.mxu1 %v1584_v46 }
 0x55b   : > { %v1280_v2 = vpop.xlane.xlu0 %1279 }
 0x55c   : > { %2718 = vrcp.f32 %v1280_v2  ;;  %v1479_v14 = vpop.f32.mrf.mxu0 }
 0x55d   : > { %v1548_v4 = vmul.f32 %v3616_v52, %v1479_v14  ;;  %1599 = vmatpush.bf16.msrb.mxu1 %v1583_v24 }
 0x55f   : > { %v1552_v20 = vadd.f32 %v1548_v4, %v1543_v41  ;;  %v272_v41 = vld [vmem:[%s4273_s2 + $0x80] sm:$0xff] }
 0x560   : > { %v1582_v16 = vpack.c.bf16 %v273_v54, %v272_v41  ;;  %v3697_v41 = vld [vmem:[%s4273_s2 + $0x70] sm:$0xff]  ;;  %v3702_v54 = vld [vmem:[%s4273_s2 + $0x78] sm:$0xff] }
 0x562   : > { %v2719_v7 = vpop.eup %2718  ;;  %1600 = vmatpush.bf16.msrb.mxu1 %v1582_v16  ;;  %v3707_v16 = vld [vmem:[%s4273_s2 + $0x60] sm:$0xff] }
 0x563   : > { %v1348_v57 = vmul.f32 %v2719_v7, %v3600_v25 }
 0x564   : > { %v1482_v21 = vpop.f32.mrf.mxu0 }
 0x565   : > { %v1554_v44 = vmul.f32 %v1553_v37, %v1482_v21  ;;  %v1365_v42 = vpack.c.bf16 %v1348_v57, %v1347_v22  ;;  %v2752_v22 = vmov 64.0  }
 0x566   : > { %2720 = vrcp.f32 %v2752_v22 }
 0x567   : > { %v1558_v31 = vadd.f32 %v1554_v44, %v1549_v34  ;;  %2533 = vmatmul.msk.bf16.gmra.mxu0 %vm998_vm1, %v1365_v42 }
 0x56c   : > { %v1484_v49 = vpop.f32.mrf.mxu0  ;;  %v2721_v57 = vpop.eup %2720 }
 0x56d   : > { %v1555_v53 = vmul.f32 %v1553_v37, %v1484_v49  ;;  %v1629_v21 = vmul.f32 64.0, %v2721_v57  ;;  %vm1633_vm2 = vweird.f32 %v2721_v57 }
 0x56f   : > { %v1559_v28 = vadd.f32 %v1555_v53, %v1550_v62  ;;  %v1630_v44 = vsub.f32 1.0, %v1629_v21  ;;  %v3768_v21 = vld [vmem:[%s4273_s2 + $0x20] sm:$0xff] }
 0x571   : > { %v1631_v42 = vmul.f32 %v2721_v57, %v1630_v44  ;;  %v3773_v44 = vld [vmem:[%s4273_s2 + $0x28] sm:$0xff] }
 0x574   : > { %v1487_v5 = vpop.f32.mrf.mxu0 }
 0x575   : > { %v1556_v51 = vmul.f32 %v1553_v37, %v1487_v5 }
 0x577   : > { %v1560_v17 = vadd.f32 %v1556_v51, %v1551_v9  ;;  %v2738_v9 = vld [vmem:[%s2849_s9] sm:$0xff] }
 0x57c   : > { %v1489_v0 = vpop.f32.mrf.mxu0 }
 0x57d   : > { %v1557_v13 = vmul.f32 %v1553_v37, %v1489_v0 }
 0x57f   : > { %v1561_v26 = vadd.f32 %v1557_v13, %v1552_v20 }
 0x584   : > { %v1492_v1 = vpop.f32.mrf.mxu0 }
 0x585   : > { %v1563_v50 = vmul.f32 %v1562_v8, %v1492_v1 }
 0x587   : > { %v1567_v10 = vadd.f32 %v1563_v50, %v1558_v31  ;;  %v1632_v31 = vadd.f32 %v2721_v57, %v1631_v42  ;;  %v1749_v50 = vpack.c.bf16 %v3714_v40, %v3707_v16 }
 0x589   : > { %v3678_v49 = vsel %vm1633_vm2, %v2721_v57, %v1632_v31 }
 0x58c   : > { %v1494_v45 = vpop.f32.mrf.mxu0 }
 0x58d   : > { %v1564_v34 = vmul.f32 %v1562_v8, %v1494_v45 }
 0x58f   : > { %v1568_v12 = vadd.f32 %v1564_v34, %v1559_v28 }
 0x594   : > { %v1497_v36 = vpop.f32.mrf.mxu0 }
 0x595   : > { %v1565_v47 = vmul.f32 %v1562_v8, %v1497_v36 }
 0x597   : > { %v3631_v25 = vadd.f32 %v1565_v47, %v1560_v17  ;;  %v325_v47 = vld [vmem:[%s4275_s4 + $0xf0] sm:$0xff] }
 0x59c   : > { %v1499_v56 = vpop.f32.mrf.mxu0 }
 0x59d   : > { %v1566_v19 = vmul.f32 %v1562_v8, %v1499_v56  ;;  %v326_v56 = vld [vmem:[%s4275_s4 + $0xf8] sm:$0xff] }
 0x59f   : > { %v3633_v27 = vadd.f32 %v1566_v19, %v1561_v26 }
 0x5e4   : > { %v1502_v63 = vpop.f32.mrf.mxu0 }
 0x5e5   : > { %v1572_v61 = vmul.f32 %v3661_v59, %v1502_v63  ;;  %v1750_v63 = vpack.c.bf16 %v3702_v54, %v3697_v41 }
 0x5e7   : > { %v1576_v29 = vadd.f32 %v1572_v61, %v1567_v10  ;;  %1752 = vmatpush.bf16.msrb.mxu2 %v1750_v63  ;;  %v3721_v61 = vld [vmem:[%s4273_s2 + $0x50] sm:$0xff] }
 0x5eb   : > { %1753 = vmatpush.bf16.msrb.mxu2 %v1749_v50  ;;  %v3841_v50 = vld [vmem:[%s4273_s2 + $0xd0] sm:$0xff] }
 0x5ec   : > { %v1504_v23 = vpop.f32.mrf.mxu0 }
 0x5ed   : > { %v1573_v55 = vmul.f32 %v3661_v59, %v1504_v23  ;;  %v3726_v23 = vld [vmem:[%s4273_s2 + $0x58] sm:$0xff] }
 0x5ef   : > { %v1577_v52 = vadd.f32 %v1573_v55, %v1568_v12  ;;  %v1748_v55 = vpack.c.bf16 %v3726_v23, %v3721_v61 }
 0x5f1   : > { %v1580_v3 = vpack.c.bf16 %v1577_v52, %v1576_v29  ;;  %v3733_v52 = vld [vmem:[%s4273_s2 + $0x40] sm:$0xff]  ;;  %1754 = vmatpush.bf16.msrb.mxu2 %v1748_v55 }
 0x5f3   : > { %2535 = vmatmul.msk.bf16.vlgmr.msrb.gmra.mxu1 %vm385_vm0, %v1580_v3  ;;  %v3738_v3 = vld [vmem:[%s4273_s2 + $0x48] sm:$0xff] }
 0x670   : > { %v1602_v6 = vpop.f32.mrf.mxu1 }
 0x671   : > { %v1603_v30 = vadd.f32 %v3670_v60, %v1602_v6 }
 0x673   : > { %v1612_v2 = vadd.f32 %v2738_v9, %v1603_v30  ;;  %v3743_v30 = vld [vmem:[%s4274_s3 + $0x1] ss:$0 sm:$0xff] }
 0x675   : > { %v1616_v14 = vsel %vm385_vm0, %v1612_v2, 0.0 }
 0x676   : > { %1617 = vadd.xlane.f32.xlu2 %v1616_v14 }
 0x678   : > { %v1604_v4 = vpop.f32.mrf.mxu1 }
 0x679   : > { %v1605_v20 = vadd.f32 %v3670_v60, %v1604_v4  ;;  %v3750_v4 = vld [vmem:[%s4273_s2 + $0x30] sm:$0xff] }
 0x67b   : > { %v1613_v37 = vadd.f32 %v2739_v15, %v1605_v20  ;;  %v3755_v20 = vld [vmem:[%s4273_s2 + $0x38] sm:$0xff] }
 0x67c   : > { %v1746_v57 = vpack.c.bf16 %v3755_v20, %v3750_v4 }
 0x67d   : > { %v1619_v7 = vsel %vm385_vm0, %v1613_v37, 0.0 }
 0x67e   : > { %1620 = vadd.xlane.f32.xlu1 %v1619_v7 }
 0x6e9   : > { %v1618_v5 = vpop.xlane.xlu2 %1617 }
 0x6ea   : > { %v1635_v51 = vmul.f32 %v3678_v49, %v1618_v5 }
 0x6ec   : > { %v1639_v17 = vsub.f32 %v1612_v2, %v1635_v51  ;;  %v1747_v2 = vpack.c.bf16 %v3738_v3, %v3733_v52  ;;  %v1745_v51 = vpack.c.bf16 %v3773_v44, %v3768_v21 }
 0x6ee   : > { %v1643_v0 = vmul.f32 %v1639_v17, %v1639_v17  ;;  %1755 = vmatpush.bf16.msrb.mxu2 %v1747_v2 }
 0x6f0   : > { %v1647_v13 = vsel %vm385_vm0, %v1643_v0, 0.0  ;;  %v3788_v0 = vld [vmem:[%s4273_s2 + $0x18] sm:$0xff] }
 0x6f1   : > { %v1621_v26 = vpop.xlane.xlu1 %1620  ;;  %1648 = vadd.xlane.f32.xlu0 %v1647_v13 }
 0x6f2   : > { %v1636_v1 = vmul.f32 %v3678_v49, %v1621_v26  ;;  %1756 = vmatpush.bf16.msrb.mxu2 %v1746_v57 }
 0x6f4   : > { %v1640_v45 = vsub.f32 %v1613_v37, %v1636_v1  ;;  %v3761_v37 = vld [vmem:[%s4274_s3 + $0x2] ss:$0 sm:$0xff] }
 0x6f5   : > { %4288 = vst [vmem:[#allocation2_spill] sm:$0xff] %v3761_v37 }
 0x6f6   : > { %v1644_v8 = vmul.f32 %v1640_v45, %v1640_v45  ;;  %1757 = vmatpush.bf16.msrb.mxu2 %v1745_v51 }
 0x6f8   : > { %v1650_v36 = vsel %vm385_vm0, %v1644_v8, 0.0 }
 0x6f9   : > { %1651 = vadd.xlane.f32.xlu2 %v1650_v36 }
 0x705   : > { %657 = vrot.lane.b32.xlu0 %v325_v47, %s2751_s7 }
 0x711   : > { %659 = vrot.lane.b32.xlu2 %v326_v56, %s2751_s7 }
 0x764   : > { %v1649_v19 = vpop.xlane.xlu0 %1648 }
 0x765   : > { %v1659_v38 = vmul.f32 %v1649_v19, %v3678_v49 }
 0x767   : > { %v1663_v18 = vadd.f32 1e-05, %v1659_v38  ;;  %v3800_v38 = vld [vmem:[%s4273_s2] sm:$0xff] }
 0x769   : > { %2722 = vrsqrt.f32 %v1663_v18  ;;  %vm1673_vm4 = vweird.f32 %v1663_v18 }
 0x76c   : > { %v1652_v33 = vpop.xlane.xlu2 %1651 }
 0x76d   : > { %v1660_v39 = vmul.f32 %v1652_v33, %v3678_v49 }
 0x76f   : > { %v2723_v58 = vpop.eup %2722  ;;  %v1664_v46 = vadd.f32 1e-05, %v1660_v39  ;;  %v3822_v39 = vld [vmem:[%s4273_s2 + $0xe0] sm:$0xff] }
 0x770   : > { %v1668_v48 = vmul.f32 %v2723_v58, %v1663_v18  ;;  %vm1674_vm3 = vweird.f32 %v2723_v58  ;;  %v3805_v18 = vld [vmem:[%s4273_s2 + $0x8] sm:$0xff] }
 0x771   : > { %2724 = vrsqrt.f32 %v1664_v46  ;;  %vm1675_vm5 = vmor %vm1673_vm4, %vm1674_vm3  ;;  %vm1683_vm7 = vweird.f32 %v1664_v46  ;;  %v1743_v33 = vpack.c.bf16 %v3805_v18, %v3800_v38 }
 0x772   : > { %v1669_v11 = vmul.f32 %v2723_v58, %v1668_v48 }
 0x774   : > { %v1670_v24 = vmul.f32 0.5, %v1669_v11  ;;  %v660_v36 = vpop.permute.xlu2 %659 }
 0x775   : > { %v724_v56 = vmul.f32 %v660_v36, %v3084_v35  ;;  %v3817_v35 = vld [vmem:[%s4273_s2 + $0xf8] sm:$0xff] }
 0x776   : > { %v1671_v53 = vsub.f32 1.5, %v1670_v24 }
 0x777   : > { %v2725_v62 = vpop.eup %2724  ;;  %v658_v1 = vpop.permute.xlu0 %657 }
 0x778   : > { %v1672_v34 = vmul.f32 %v2723_v58, %v1671_v53  ;;  %v1678_v28 = vmul.f32 %v2725_v62, %v1664_v46  ;;  %vm1684_vm6 = vweird.f32 %v2725_v62  ;;  %v723_v47 = vmul.f32 %v658_v1, %v3078_v32  ;;  %v3812_v32 = vld [vmem:[%s4273_s2 + $0xf0] sm:$0xff]  ;;  %v3829_v46 = vld [vmem:[%s4273_s2 + $0xe8] sm:$0xff] }
 0x779   : > { %vm1685_vm8 = vmor %vm1683_vm7, %vm1684_vm6  ;;  %v1769_v48 = vpack.c.bf16 %v3829_v46, %v3822_v39 }
 0x77a   : > { %v1676_v10 = vsel %vm1675_vm5, %v2723_v58, %v1672_v34  ;;  %v1679_v12 = vmul.f32 %v2725_v62, %v1678_v28  ;;  %v740_v19 = vpack.c.bf16 %v724_v56, %v723_v47  ;;  %v1770_v58 = vpack.c.bf16 %v3817_v35, %v3812_v32  ;;  %v3846_v34 = vld [vmem:[%s4273_s2 + $0xd8] sm:$0xff]  ;;  %v2598_v47 = vld [vmem:[%s4274_s3 + $0x5] ss:$0 sm:$0xff] }
 0x77b   : > { %v1707_v6 = vmul.f32 %v1676_v10, %v1639_v17  ;;  %v3783_v17 = vld [vmem:[%s4273_s2 + $0x10] sm:$0xff]  ;;  %v1768_v28 = vpack.c.bf16 %v3846_v34, %v3841_v50  ;;  %v3853_v10 = vld [vmem:[%s4273_s2 + $0xc0] sm:$0xff] }
 0x77c   : > { %v1680_v29 = vmul.f32 0.5, %v1679_v12  ;;  %v1744_v8 = vpack.c.bf16 %v3788_v0, %v3783_v17  ;;  %v3858_v12 = vld [vmem:[%s4273_s2 + $0xc8] sm:$0xff] }
 0x77d   : > { %v1712_v15 = vmul.f32 %v3743_v30, %v1707_v6  ;;  %v1767_v55 = vpack.c.bf16 %v3858_v12, %v3853_v10 }
 0x77e   : > { %v1681_v9 = vsub.f32 1.5, %v1680_v29  ;;  %1758 = vmatpush.bf16.msrb.mxu2 %v1744_v8  ;;  %v2596_v29 = vld [vmem:[%s4274_s3 + $0x3] ss:$0 sm:$0xff] }
 0x77f   : > { %v1717_v31 = vadd.f32 %v3761_v37, %v1712_v15 }
 0x780   : > { %v1682_v14 = vmul.f32 %v2725_v62, %v1681_v9 }
 0x781   : > { %v1725_v13 = vrot.slane %v1717_v31, 1  ;;  %v1721_v11 = vperm.slane %v1717_v31, 0 }
 0x782   : > { %v1686_v7 = vsel %vm1685_vm8, %v2725_v62, %v1682_v14  ;;  %1759 = vmatpush.bf16.msrb.mxu2 %v1743_v33 }
 0x783   : > { %v1708_v22 = vmul.f32 %v1686_v7, %v1640_v45  ;;  %v357_v7 = vld [vmem:[%s4275_s4 + $0x1f0] sm:$0xff] }
 0x785   : > { %v1713_v42 = vmul.f32 %v3743_v30, %v1708_v22 }
 0x786   : > { %1779 = vmatpush.bf16.msra.mxu2 %v1770_v58 }
 0x787   : > { %v1718_v5 = vadd.f32 %v3761_v37, %v1713_v42 }
 0x789   : > { %v1726_v26 = vrot.slane %v1718_v5, 1 }
 0x78a   : > { %1780 = vmatpush.bf16.msra.mxu2 %v1769_v48 }
 0x78b   : > { %v1727_v45 = vsel %vm1724_vm9, %v1725_v13, %v1726_v26  ;;  %v2597_v26 = vld [vmem:[%s4274_s3 + $0x4] ss:$0 sm:$0xff] }
 0x78c   : > { %1728 = vrot.lane.b32.xlu1 %v1727_v45, %s2751_s7 }
 0x78e   : > { %1781 = vmatpush.bf16.msra.mxu2 %v1768_v28 }
 0x792   : > { %1782 = vmatpush.bf16.msra.mxu2 %v1767_v55 }
 0x794   : > { %789 = vrot.lane.b32.xlu1 %v740_v19, %s2751_s7 }
 0x7fe   : > { %v1729_v24 = vpop.permute.xlu1 %1728 }
 0x7ff   : > { %v1731_v63 = vsel %vm385_vm0, %v1721_v11, %v1729_v24  ;;  %v2599_v24 = vld [vmem:[%s4274_s3 + $0x6] ss:$0 sm:$0xff] }
 0x800   : > { %v3834_v53 = vpack.c.bf16 %v1731_v63, %v1731_v63  ;;  %v3893_v63 = vld [vmem:[%s2849_s9 + $0x20] sm:$0xff] }
 0x802   : > { %1760 = vmatmul.bf16.vlgmr.msrb.gmra.mxu2 %v3834_v53 }
 0x806   : > { %v790_v62 = vpop.permute.xlu1 %789 }
 0x807   : > { %2518 = vmatmul.msk.bf16.gmra.mxu3 %vm385_vm0, %v790_v62 }
 0x885   : > { %v1761_v6 = vpop.f32.mrf.mxu2 }
 0x886   : > { %v1762_v9 = vadd.f32 %v2596_v29, %v1761_v6  ;;  %v3896_v6 = vld [vmem:[%s2849_s9 + $0x28] sm:$0xff] }
 0x888   : > { %v3865_v2 = vmax.f32 %v1762_v9, 0.0 }
 0x88a   : > { %v1766_v14 = vpack.c.bf16 %v3865_v2, %v3865_v2  ;;  %v929_v15 = vpop.f32.mrf.mxu3  ;;  %vm1921_vm12 = vcmp.gt.f32.partialorder %v3865_v2, 0.0 }
 0x88b   : > { %v964_v22 = vmul.f32 0.35355338, %v929_v15 }
 0x88c   : > { %2537 = vmatmul.msk.bf16.vlgmr.msra.gmra.mxu2 %vm385_vm0, %v1766_v14 }
 0x88d   : > { %v1763_v57 = vpop.f32.mrf.mxu2  ;;  %v996_v42 = vadd.f32 %v964_v22, %v357_v7  ;;  %v1906_v7 = vsel %vm385_vm0, %v1770_v58, 0  ;;  %v1900_v22 = vsel %vm385_vm0, %v1768_v28, 0  ;;  %v4277_v28 = vmov 0.0  }
 0x88e   : > { %1912 = vmatpush.bf16.xpose.msrb.mxu2 %v1906_v7 }
 0x88f   : > { %v1089_v31 = vsel %vm998_vm1, %v996_v42, -inf }
 0x890   : > { %1090 = vmax.xlane.f32.xlu1 %v1089_v31 }
 0x892   : > { %v931_v57 = vpop.f32.mrf.mxu3 }
 0x893   : > { %v965_v31 = vmul.f32 0.35355338, %v931_v57 }
 0x903   : > { %v1091_v5 = vpop.xlane.xlu1 %1090 }
 0x904   : > { %v1125_v51 = vsub.f32 %v996_v42, %v1091_v5  ;;  %v1897_v42 = vsel %vm385_vm0, %v1767_v55, 0  ;;  %v358_v5 = vld [vmem:[%s4275_s4 + $0x1f8] sm:$0xff] }
 0x906   : > { %v1187_v13 = vmul.f32 1.442695, %v1125_v51  ;;  %v997_v51 = vadd.f32 %v965_v31, %v358_v5 }
 0x908   : > { %2726 = vpow2.f32 %v1187_v13  ;;  %v1092_v13 = vsel %vm998_vm1, %v997_v51, -inf }
 0x90e   : > { %v3877_v1 = vpop.eup %2726 }
 0x90f   : > { %v1784_v45 = vpop.f32.mrf.mxu2  ;;  %v1281_v8 = vsel %vm998_vm1, %v3877_v1, 0.0 }
 0x910   : > { %v1785_v36 = vadd.f32 %v2597_v26, %v1784_v45  ;;  %1282 = vadd.xlane.f32.xlu1 %v1281_v8 }
 0x912   : > { %v3884_v56 = vmax.f32 %v1785_v36, 0.0 }
 0x914   : > { %v1790_v19 = vmul.f32 %v2598_v47, %v3884_v56  ;;  %vm1820_vm10 = vcmp.gt.f32.partialorder %v3884_v56, 0.0 }
 0x915   : > { %v2538_v26 = vsel %vm1820_vm10, 1.0, %v4277_v28 }
 0x916   : > { %v1791_v33 = vsel %vm385_vm0, %v1790_v19, 0.0 }
 0x917   : > { %v1786_v11 = vpop.f32.mrf.mxu2  ;;  %1792 = vadd.xlane.f32.xlu0 %v1791_v33 }
 0x940   : > { %1926 = vxpose.xlu0.c.b16.start.end [1/1] (short) %v3834_v53, 128 }
 0x94a   : > { %1825 = vxpose.xlu1.c.b16.start.end [1/1] (short) (narrow) %v1766_v14, 64  ;;  %v1903_v14 = vsel %vm385_vm0, %v1769_v48, 0 }
 0x94b   : > { %1913 = vmatpush.bf16.xpose.msrb.mxu2 %v1903_v14 }
 0x953   : > { %1914 = vmatpush.bf16.xpose.msrb.mxu2 %v1900_v22 }
 0x95b   : > { %1915 = vmatpush.bf16.xpose.msrb.mxu2 %v1897_v42 }
 0x983   : > { %v1283_v42 = vpop.xlane.xlu1 %1282 }
 0x98a   : > { %v1793_v62 = vpop.xlane.xlu0 %1792 }
 0x98b   : > { %v1795_v29 = vadd.f32 %v2599_v24, %v1793_v62  ;;  %v2544_v62 = vsel %vm1921_vm12, 1.0, %v4277_v28 }
 0x98d   : > { %v1796_v9 = vsub.f32 %v1795_v29, %v3893_v63 }
 0x98f   : > { %v3900_v15 = vmul.f32 %v1796_v9, %v3896_v6 }
 0x991   : > { %1800 = vperm.xlu2 %2590, %v3900_v15  }
 0x9ba   : > { %1093 = vmax.xlane.f32.xlu2 %v1092_v13 }
 0x9eb   : > { %v3912_v58 = vpop.permute.xlu2 %1800 }
 0x9ec   : > { %v1819_v48 = vmul.f32 %v2598_v47, %v3912_v58  ;;  %v3930_v14 = vpop.trf.xlu0 }
 0x9ee   : > { %v3916_v55 = vmul.f32 %v2538_v26, %v1819_v48 }
 0x9f0   : > { %v1824_v45 = vpack.c.bf16 %v3916_v55, %v3916_v55 }
 0x9f2   : > { %2543 = vmatmul.msk.bf16.vlgmr.msrb.gmra.mxu2 %vm385_vm0, %v1824_v45  ;;  %v1856_v8 = vsel %vm1854_vm11, %v1824_v45, 0 }
 0x9f3   : > { %1865 = vmatpush.bf16.msra.mxu1 %v1856_v8 }
 0x9fc   : > { %v3934_v57 = vpop.trf.xlu0 }
 0x9fd   : > { %4289 = vst [vmem:[#allocation3_spill] sm:$0xff] %v3934_v57 }
 0xa0c   : > { %v3938_v2 = vpop.trf.xlu0 }
 0xa0d   : > { %4290 = vst [vmem:[#allocation4_spill] sm:$0xff] %v3938_v2 }
 0xa1c   : > { %v3942_v31 = vpop.trf.xlu0 }
 0xa2c   : > { %v3948_v8 = vpop.trf.xlu0 }
 0xa2d   : > { %v1094_v36 = vpop.xlane.xlu2 %1093  ;;  %4291 = vst [vmem:[#allocation5_spill] sm:$0xff] %v3948_v8 }
 0xa2e   : > { %v1126_v19 = vsub.f32 %v997_v51, %v1094_v36 }
 0xa30   : > { %v1189_v33 = vmul.f32 1.442695, %v1126_v19 }
 0xa32   : > { %2728 = vpow2.f32 %v1189_v33 }
 0xa33   : > { %2730 = vrcp.f32 %v1283_v42 }
 0xa38   : > { %v2729_v11 = vpop.eup %2728 }
 0xa39   : > { %v1284_v47 = vsel %vm998_vm1, %v2729_v11, 0.0  ;;  %v2731_v51 = vpop.eup %2730 }
 0xa3a   : > { %1285 = vadd.xlane.f32.xlu2 %v1284_v47  ;;  %v1349_v48 = vmul.f32 %v2731_v51, %v3877_v1 }
 0xa3c   : > { %v3952_v36 = vpop.trf.xlu0 }
 0xa3d   : > { %4292 = vst [vmem:[#allocation6_spill] sm:$0xff] %v3952_v36 }
 0xa4c   : > { %v3956_v19 = vpop.trf.xlu0 }
 0xa4d   : > { %4293 = vst [vmem:[#allocation7_spill] sm:$0xff] %v3956_v19 }
 0xa5c   : > { %v3960_v1 = vpop.trf.xlu0 }
 0xa5d   : > { %4294 = vst [vmem:[#allocation8_spill] sm:$0xff] %v3960_v1 }
 0xa75   : > { %v1917_v24 = vpop.f32.mrf.mxu2 }
 0xa76   : > { %v3925_v29 = vmul.f32 %v2544_v62, %v1917_v24 }
 0xa78   : > { %v1925_v9 = vpack.c.bf16 %v3925_v29, %v3925_v29 }
 0xa7a   : > { %v1967_v7 = vsel %vm1854_vm11, %v1925_v9, 0 }
 0xa7b   : > { %1976 = vmatpush.bf16.msra.mxu2 %v1967_v7 }
 0xa7d   : > { %v1919_v22 = vpop.f32.mrf.mxu2 }
 0xa7e   : > { %2545 = vmatmul.msk.bf16.vlgmr.msra.gmra.mxu2 %vm1841_vm13, %v3930_v14 }
 0xa8e   : > { %2546 = vmatmul.msk.bf16.gmra.mxu2 %vm1841_vm13, %v3934_v57 }
 0xa9e   : > { %2547 = vmatmul.msk.bf16.gmra.mxu2 %vm1841_vm13, %v3938_v2 }
 0xaad   : > { %v1286_v5 = vpop.xlane.xlu2 %1285 }
 0xaae   : > { %2732 = vrcp.f32 %v1286_v5  ;;  %2548 = vmatmul.msk.bf16.gmra.mxu2 %vm1841_vm13, %v3942_v31 }
 0xab4   : > { %v2733_v13 = vpop.eup %2732 }
 0xab5   : > { %v1350_v26 = vmul.f32 %v2733_v13, %v2729_v11 }
 0xab7   : > { %v1366_v45 = vpack.c.bf16 %v1350_v26, %v1349_v48 }
 0xab9   : > { %2534 = vmatmul.msk.bf16.gmra.mxu0 %vm998_vm1, %v1366_v45 }
 0xabe   : > { %2549 = vmatmul.msk.bf16.gmra.mxu2 %vm1841_vm13, %v3948_v8 }
 0xace   : > { %2550 = vmatmul.msk.bf16.gmra.mxu2 %vm1841_vm13, %v3952_v36 }
 0xade   : > { %2551 = vmatmul.msk.bf16.gmra.mxu2 %vm1841_vm13, %v3956_v19  ;;  %v1833_v19 = vpop.trf.xlu1 }
 0xae6   : > { %v1834_v8 = vpop.trf.xlu1 }
 0xaee   : > { %2552 = vmatmul.msk.bf16.gmra.mxu2 %vm1841_vm13, %v3960_v1 }
 0xb01   : > { %v3964_v33 = vpop.f32.mrf.mxu2 }
 0xb09   : > { %v3966_v11 = vpop.f32.mrf.mxu2 }
 0xb11   : > { %v3968_v47 = vpop.f32.mrf.mxu2 }
 0xb19   : > { %v1985_v24 = vpop.f32.mrf.mxu2 }
 0xb21   : > { %v1988_v62 = vpop.f32.mrf.mxu2 }
 0xb29   : > { %v1990_v9 = vpop.f32.mrf.mxu2 }
 0xb31   : > { %v1993_v7 = vpop.f32.mrf.mxu2 }
 0xb36   : > { %v1507_v22 = vpop.f32.mrf.mxu0 }
 0xb37   : > { %v1574_v5 = vmul.f32 %v3661_v59, %v1507_v22 }
 0xb39   : > { %v1995_v42 = vpop.f32.mrf.mxu2  ;;  %v1578_v48 = vadd.f32 %v1574_v5, %v3631_v25 }
 0xb3e   : > { %v1509_v51 = vpop.f32.mrf.mxu0 }
 0xb3f   : > { %v1575_v13 = vmul.f32 %v3661_v59, %v1509_v51  ;;  %v1835_v51 = vpop.trf.xlu1 }
 0xb41   : > { %v1579_v26 = vadd.f32 %v1575_v13, %v3633_v27  ;;  %v1998_v45 = vpop.f32.mrf.mxu2 }
 0xb43   : > { %v1581_v28 = vpack.c.bf16 %v1579_v26, %v1578_v48 }
 0xb45   : > { %2536 = vmatmul.msk.bf16.gmra.mxu1 %vm385_vm0, %v1581_v28 }
 0xb49   : > { %v2000_v43 = vpop.f32.mrf.mxu2 }
 0xb51   : > { %v2003_v1 = vpop.f32.mrf.mxu2 }
 0xb52   : > { %v2035_v37 = vmul.f32 0.005, %v2003_v1  ;;  %v2032_v1 = vmul.f32 0.005, %v1995_v42 }
 0xb55   : > { %2539 = vmatmul.msk.bf16.vlgmr.msra.gmra.mxu1 %vm1841_vm13, %v1833_v19 }
 0xb59   : > { %v2005_v36 = vpop.f32.mrf.mxu2 }
 0xb5a   : > { %v2036_v26 = vmul.f32 0.005, %v2005_v36  ;;  %v2033_v36 = vmul.f32 0.005, %v1998_v45  ;;  %v4010_v45 = vsub.f32 %v3755_v20, %v2032_v1 }
 0xb61   : > { %v2008_v2 = vpop.f32.mrf.mxu2 }
 0xb62   : > { %v2037_v28 = vmul.f32 0.005, %v2008_v2  ;;  %v3993_v2 = vsub.f32 %v3726_v23, %v2036_v26  ;;  %v2031_v23 = vmul.f32 0.005, %v1993_v7  ;;  %v2026_v7 = vmul.f32 0.005, %v3966_v11 }
 0xb64   : > { %v4015_v42 = vsub.f32 %v3750_v4, %v2031_v23 }
 0xb65   : > { %2540 = vmatmul.msk.bf16.gmra.mxu1 %vm1841_vm13, %v1834_v8 }
 0xb69   : > { %v2010_v22 = vpop.f32.mrf.mxu2 }
 0xb6a   : > { %v2038_v5 = vmul.f32 0.005, %v2010_v22  ;;  %v2034_v22 = vmul.f32 0.005, %v2000_v43 }
 0xb6c   : > { %v3985_v57 = vsub.f32 %v3714_v40, %v2038_v5  ;;  %v3998_v40 = vsub.f32 %v3721_v61, %v2035_v37  ;;  %v2029_v37 = vmul.f32 0.005, %v1988_v62 }
 0xb6e   : > { %v2086_v43 = vpack.c.bf16 %v3993_v2, %v3998_v40  ;;  %v4024_v20 = vsub.f32 %v3768_v21, %v2029_v37 }
 0xb71   : > { %v2013_v59 = vpop.f32.mrf.mxu2 }
 0xb72   : > { %v2039_v25 = vmul.f32 0.005, %v2013_v59  ;;  %v3990_v59 = vsub.f32 %v3707_v16, %v2037_v28  ;;  %v4002_v16 = vsub.f32 %v3738_v3, %v2034_v22  ;;  %v2028_v3 = vmul.f32 0.005, %v1985_v24 }
 0xb74   : > { %v3979_v48 = vsub.f32 %v3697_v41, %v2039_v25  ;;  %v1836_v41 = vpop.trf.xlu1  ;;  %v2030_v25 = vmul.f32 0.005, %v1990_v9  ;;  %v2027_v9 = vmul.f32 0.005, %v3968_v47  ;;  %v4028_v4 = vsub.f32 %v3788_v0, %v2028_v3 }
 0xb75   : > { %2541 = vmatmul.msk.bf16.gmra.mxu1 %vm1841_vm13, %v1835_v51  ;;  %v4007_v51 = vsub.f32 %v3733_v52, %v2033_v36  ;;  %v2084_v52 = vpack.c.bf16 %v4010_v45, %v4015_v42  ;;  %v4037_v47 = vsub.f32 %v3805_v18, %v2026_v7  ;;  %v2740_v18 = vld [vmem:[%s2849_s9 + $0x18] sm:$0xff] }
 0xb76   : > { %v4034_v62 = vsub.f32 %v3783_v17, %v2027_v9 }
 0xb77   : > { %v2085_v61 = vpack.c.bf16 %v4002_v16, %v4007_v51 }
 0xb78   : > { %v2082_v21 = vpack.c.bf16 %v4028_v4, %v4034_v62 }
 0xb79   : > { %v2015_v27 = vpop.f32.mrf.mxu2 }
 0xb7a   : > { %v2040_v13 = vmul.f32 0.005, %v2015_v27  ;;  %v4018_v27 = vsub.f32 %v3773_v44, %v2030_v25  ;;  %v2025_v44 = vmul.f32 0.005, %v3964_v33 }
 0xb7c   : > { %v3982_v19 = vsub.f32 %v3702_v54, %v2040_v13  ;;  %v2087_v54 = vpack.c.bf16 %v3985_v57, %v3990_v59  ;;  %v2083_v24 = vpack.c.bf16 %v4018_v27, %v4024_v20  ;;  %v4042_v11 = vsub.f32 %v3800_v38, %v2025_v44 }
 0xb7e   : > { %v2088_v8 = vpack.c.bf16 %v3982_v19, %v3979_v48  ;;  %v2081_v0 = vpack.c.bf16 %v4037_v47, %v4042_v11 }
 0xb80   : > { %2090 = vmatpush.bf16.msrb.mxu1 %v2088_v8 }
 0xb84   : > { %2091 = vmatpush.bf16.msrb.mxu1 %v2087_v54 }
 0xb85   : > { %2542 = vmatmul.msk.bf16.gmra.mxu1 %vm1841_vm13, %v1836_v41 }
 0xb88   : > { %2092 = vmatpush.bf16.msrb.mxu1 %v2086_v43 }
 0xb8c   : > { %2093 = vmatpush.bf16.msrb.mxu1 %v2085_v61 }
 0xb90   : > { %2094 = vmatpush.bf16.msrb.mxu1 %v2084_v52 }
 0xb94   : > { %2095 = vmatpush.bf16.msrb.mxu1 %v2083_v24 }
 0xb98   : > { %2096 = vmatpush.bf16.msrb.mxu1 %v2082_v21 }
 0xb9c   : > { %2097 = vmatpush.bf16.msrb.mxu1 %v2081_v0 }
 0xb9f   : > { %2098 = vmatmul.bf16.vlgmr.msrb.gmra.mxu1 %v3834_v53  ;;  %v2018_v53 = vsel %vm385_vm0, %v3925_v29, 0.0 }
 0xba0   : > { %v2019_v36 = vrot.slane %v2018_v53, 4 }
 0xba2   : > { %v2020_v1 = vadd.f32 %v2019_v36, %v2018_v53 }
 0xba4   : > { %v2021_v23 = vrot.slane %v2020_v1, 2 }
 0xba6   : > { %v2022_v25 = vadd.f32 %v2021_v23, %v2020_v1  ;;  %v1887_v23 = vsel %vm385_vm0, %v3916_v55, 0.0 }
 0xba8   : > { %v2023_v3 = vrot.slane %v2022_v25, 1 }
 0xbc2   : > { %v4047_v33 = vpop.f32.mrf.mxu1 }
 0xbca   : > { %v1609_v17 = vpop.f32.mrf.mxu1 }
 0xbcb   : > { %v1610_v5 = vadd.f32 %v3670_v60, %v1609_v17  ;;  %v2024_v17 = vadd.f32 %v2023_v3, %v2022_v25  ;;  %v1888_v25 = vrot.slane %v1887_v23, 4 }
 0xbcd   : > { %v4051_v13 = vadd.f32 %v2740_v18, %v1610_v5  ;;  %v1889_v3 = vadd.f32 %v1888_v25, %v1887_v23 }
 0xbcf   : > { %v1625_v28 = vsel %vm385_vm0, %v4051_v13, 0.0 }
 0xbd0   : > { %1626 = vadd.xlane.f32.xlu1 %v1625_v28 }
 0xbd2   : > { %v1867_v38 = vpop.f32.mrf.mxu1 }
 0xbda   : > { %v1869_v26 = vpop.f32.mrf.mxu1 }
 0xbe2   : > { %v1872_v8 = vpop.f32.mrf.mxu1 }
 0xbe3   : > { %v2061_v5 = vmul.f32 0.005, %v1872_v8 }
 0xbe5   : > { %v4085_v8 = vsub.f32 %v3841_v50, %v2061_v5 }
 0xbea   : > { %v1874_v22 = vpop.f32.mrf.mxu1 }
 0xbeb   : > { %v2062_v21 = vmul.f32 0.005, %v1874_v22  ;;  %v291_v22 = vld [vmem:[%s4274_s3 + $0x3] sm:$0x1] }
 0xbed   : > { %v4075_v28 = vsub.f32 %v3846_v34, %v2062_v21 }
 0xbef   : > { %v4093_v34 = vpack.c.bf16 %v4075_v28, %v4085_v8 }
 0xbf2   : > { %v1877_v41 = vpop.f32.mrf.mxu1 }
 0xbf3   : > { %v2063_v7 = vmul.f32 0.005, %v1877_v41  ;;  %v2059_v41 = vmul.f32 0.005, %v1867_v38 }
 0xbf5   : > { %v4071_v18 = vsub.f32 %v3822_v39, %v2063_v7  ;;  %v4098_v53 = vsub.f32 %v3853_v10, %v2059_v41  ;;  %v4295_v7 = vmov 0  }
 0xbfa   : > { %v1879_v54 = vpop.f32.mrf.mxu1 }
 0xbfb   : > { %v2064_v52 = vmul.f32 0.005, %v1879_v54 }
 0xbfd   : > { %v4064_v29 = vsub.f32 %v3829_v46, %v2064_v52  ;;  %v2057_v46 = vmul.f32 0.005, %v2024_v17 }
 0xc02   : > { %v1882_v43 = vpop.f32.mrf.mxu1 }
 0xc03   : > { %v2065_v61 = vmul.f32 0.005, %v1882_v43  ;;  %v1803_v43 = vmul.f32 %v3912_v58, %v3884_v56  ;;  %v292_v58 = vld [vmem:[%s4274_s3 + $0x4] sm:$0x1] }
 0xc05   : > { %v4058_v24 = vsub.f32 %v3812_v32, %v2065_v61  ;;  %v2060_v32 = vmul.f32 0.005, %v1869_v26  ;;  %v4095_v26 = vsub.f32 %v291_v22, %v2057_v46  ;;  %v1804_v61 = vsel %vm385_vm0, %v1803_v43, 0.0 }
 0xc07   : > { %v4089_v39 = vsub.f32 %v3858_v12, %v2060_v32  ;;  %v2089_v38 = vperm.slane %v4095_v26, 0 }
 0xc09   : > { %v4104_v50 = vpack.c.bf16 %v4089_v39, %v4098_v53 }
 0xc0a   : > { %v1884_v37 = vpop.f32.mrf.mxu1 }
 0xc0b   : > { %v2066_v9 = vmul.f32 0.005, %v1884_v37  ;;  %v1805_v37 = vrot.slane %v1804_v61, 4 }
 0xc0d   : > { %v4061_v44 = vsub.f32 %v3817_v35, %v2066_v9  ;;  %v4079_v35 = vpack.c.bf16 %v4064_v29, %v4071_v18  ;;  %v1806_v52 = vadd.f32 %v1805_v37, %v1804_v61  ;;  %v1890_v9 = vrot.slane %v1889_v3, 2 }
 0xc0f   : > { %v4068_v0 = vpack.c.bf16 %v4061_v44, %v4058_v24  ;;  %v1807_v21 = vrot.slane %v1806_v52, 2  ;;  %v1891_v17 = vadd.f32 %v1890_v9, %v1889_v3 }
 0xc11   : > { %2117 = vmatpush.bf16.msra.mxu1 %v4068_v0  ;;  %v1808_v5 = vadd.f32 %v1807_v21, %v1806_v52  ;;  %v1892_v32 = vrot.slane %v1891_v17, 1  ;;  %v1812_v52 = vsel %vm1811_vm14, %v3900_v15, 0.0 }
 0xc12   : > { %v1813_v9 = vrot.slane %v1812_v52, 4 }
 0xc13   : > { %v1809_v46 = vrot.slane %v1808_v5, 1  ;;  %v1893_v22 = vadd.f32 %v1892_v32, %v1891_v17 }
 0xc15   : > { %2118 = vmatpush.bf16.msra.mxu1 %v4079_v35  ;;  %v1810_v41 = vadd.f32 %v1809_v46, %v1808_v5  ;;  %v2075_v56 = vmul.f32 0.005, %v1893_v22  ;;  %v294_v22 = vld [vmem:[%s4274_s3 + $0x6] sm:$0x1] }
 0xc17   : > { %v4121_v55 = vsub.f32 %v292_v58, %v2075_v56 }
 0xc19   : > { %2119 = vmatpush.bf16.msra.mxu1 %v4093_v34 }
 0xc1c   : > { %v2099_v54 = vpop.f32.mrf.mxu1 }
 0xc1d   : > { %v2100_v12 = vadd.f32 %v2099_v54, %v2089_v38  ;;  %2120 = vmatpush.bf16.msra.mxu1 %v4104_v50  ;;  %v2077_v38 = vmul.f32 0.005, %v1810_v41  ;;  %v293_v54 = vld [vmem:[%s4274_s3 + $0x5] sm:$0x1] }
 0xc1f   : > { %v4107_v36 = vmax.f32 %v2100_v12, 0.0  ;;  %v2109_v12 = vperm.slane %v4121_v55, 0 }
 0xc21   : > { %v2104_v1 = vpack.c.bf16 %v4107_v36, %v4107_v36  ;;  %vm2256_vm1 = vcmp.gt.f32.partialorder %v4107_v36, 0.0 }
 0xc23   : > { %2162 = vxpose.xlu0.c.b16.start.end [1/1] (short) (narrow) %v2104_v1, 64  ;;  %2553 = vmatmul.msk.bf16.vlgmr.msra.gmra.mxu1 %vm385_vm0, %v2104_v1  ;;  %v4127_v1 = vsub.f32 %v293_v54, %v2077_v38 }
 0xc24   : > { %v2101_v10 = vpop.f32.mrf.mxu1 }
 0xc25   : > { %v2127_v25 = vperm.slane %v4127_v1, 0 }
 0xc8a   : > { %2592 = vset.pattern.permute.xlu0 %v4295_v7  ;;  %v1814_v7 = vadd.f32 %v1813_v9, %v1812_v52 }
 0xc8c   : > { %v1815_v21 = vrot.slane %v1814_v7, 2 }
 0xc8e   : > { %v1816_v17 = vadd.f32 %v1815_v21, %v1814_v7  ;;  %v2235_v21 = vsel %vm385_vm0, %v4093_v34, 0 }
 0xc90   : > { %v1817_v5 = vrot.slane %v1816_v17, 1 }
 0xc92   : > { %v1818_v32 = vadd.f32 %v1817_v5, %v1816_v17  ;;  %v2232_v5 = vsel %vm385_vm0, %v4104_v50, 0 }
 0xc94   : > { %v2079_v46 = vmul.f32 0.005, %v1818_v32 }
 0xc96   : > { %v4139_v41 = vsub.f32 %v294_v22, %v2079_v46  ;;  %v1627_v46 = vpop.xlane.xlu1 %1626 }
 0xc97   : > { %v1638_v34 = vmul.f32 %v3678_v49, %v1627_v46 }
 0xc98   : > { %v2132_v56 = vperm.slane %v4139_v41, 0 }
 0xc99   : > { %v4180_v50 = vsub.f32 %v4051_v13, %v1638_v34 }
 0xca0   : > { %v2122_v10 = vpop.f32.mrf.mxu1 }
 0xca1   : > { %v2123_v43 = vadd.f32 %v2122_v10, %v2109_v12  ;;  %v1608_v12 = vadd.f32 %v3670_v60, %v4047_v33  ;;  %v2741_v10 = vld [vmem:[%s2849_s9 + $0x10] sm:$0xff]  ;;  %v2241_v33 = vsel %vm385_vm0, %v4068_v0, 0  ;;  %s2495_s9 = sshll.u32 %s4305_s19, 3 }
 0xca2   : > { %s222_s22 = scalar_lea.vmem %s4276_s5, %s2495_s9 }
 0xca3   : > { %v4129_v23 = vmax.f32 %v2123_v43, 0.0  ;;  %v1614_v43 = vadd.f32 %v2741_v10, %v1608_v12 }
 0xca5   : > { %v2128_v61 = vmul.f32 %v2127_v25, %v4129_v23  ;;  %vm2157_vm15 = vcmp.gt.f32.partialorder %v4129_v23, 0.0 }
 0xca7   : > { %v2129_v37 = vsel %vm385_vm0, %v2128_v61, 0.0  ;;  %v1622_v61 = vsel %vm385_vm0, %v1614_v43, 0.0 }
 0xca8   : > { %v2124_v3 = vpop.f32.mrf.mxu1  ;;  %2130 = vadd.xlane.f32.xlu2 %v2129_v37 }
 0xccf   : > { %v2170_v7 = vpop.trf.xlu0 }
 0xcdf   : > { %v2171_v17 = vpop.trf.xlu0 }
 0xcef   : > { %v2172_v0 = vpop.trf.xlu0 }
 0xcff   : > { %v2173_v32 = vpop.trf.xlu0 }
 0xd1b   : > { %v2131_v58 = vpop.xlane.xlu2 %2130 }
 0xd1c   : > { %v2133_v38 = vadd.f32 %v2132_v56, %v2131_v58 }
 0xd1e   : > { %v2134_v15 = vsub.f32 %v2133_v38, %v3893_v63  ;;  %v4296_v63 = vmov 0.0  }
 0xd1f   : > { %v2554_v52 = vsel %vm2157_vm15, 1.0, %v4296_v63 }
 0xd20   : > { %v4144_v54 = vmul.f32 %v2134_v15, %v3896_v6  ;;  %v1646_v15 = vmul.f32 %v4180_v50, %v4180_v50 }
 0xd22   : > { %2138 = vperm.xlu2 %2590, %v4144_v54   ;;  %v1656_v12 = vsel %vm385_vm0, %v1646_v15, 0.0 }
 0xd4b   : > { %1623 = vadd.xlane.f32.xlu2 %v1622_v61 }
 0xd7c   : > { %v4152_v37 = vpop.permute.xlu2 %2138 }
 0xd7d   : > { %v2156_v3 = vmul.f32 %v4152_v37, %v2127_v25  ;;  %v2238_v25 = vsel %vm385_vm0, %v4079_v35, 0 }
 0xd7f   : > { %v4156_v6 = vmul.f32 %v2554_v52, %v2156_v3 }
 0xd81   : > { %v2161_v9 = vpack.c.bf16 %v4156_v6, %v4156_v6 }
 0xd83   : > { %v2191_v60 = vsel %vm1854_vm11, %v2161_v9, 0 }
 0xd84   : > { %2200 = vmatpush.bf16.msrb.mxu1 %v2191_v60 }
 0xd87   : > { %2555 = vmatmul.msk.bf16.vlgmr.msrb.gmra.mxu1 %vm1841_vm13, %v2170_v7 }
 0xd88   : > { %2247 = vmatpush.bf16.xpose.msra.mxu1 %v2241_v33 }
 0xd90   : > { %2248 = vmatpush.bf16.xpose.msra.mxu1 %v2238_v25 }
 0xd97   : > { %2556 = vmatmul.msk.bf16.gmra.mxu1 %vm1841_vm13, %v2171_v17 }
 0xd98   : > { %2249 = vmatpush.bf16.xpose.msra.mxu1 %v2235_v21 }
 0xda0   : > { %2250 = vmatpush.bf16.xpose.msra.mxu1 %v2232_v5 }
 0xda7   : > { %2557 = vmatmul.msk.bf16.gmra.mxu1 %vm1841_vm13, %v2172_v0 }
 0xdb7   : > { %2558 = vmatmul.msk.bf16.gmra.mxu1 %vm1841_vm13, %v2173_v32 }
 0xdbe   : > { %v1624_v35 = vpop.xlane.xlu2 %1623 }
 0xdbf   : > { %v1637_v22 = vmul.f32 %v3678_v49, %v1624_v35 }
 0xdc1   : > { %v4175_v56 = vsub.f32 %v1614_v43, %v1637_v22 }
 0xdc3   : > { %v1645_v58 = vmul.f32 %v4175_v56, %v4175_v56 }
 0xdc5   : > { %v1653_v38 = vsel %vm385_vm0, %v1645_v58, 0.0 }
 0xdc6   : > { %1654 = vadd.xlane.f32.xlu2 %v1653_v38 }
 0xdc7   : > { %2559 = vmatmul.msk.bf16.vlgmr.msra.gmra.mxu1 %vm385_vm0, %v2161_v9 }
 0xdce   : > { %1657 = vadd.xlane.f32.xlu2 %v1656_v12 }
 0xe04   : > { %v2202_v10 = vpop.f32.mrf.mxu1 }
 0xe05   : > { %v2354_v36 = vmul.f32 0.005, %v2202_v10 }
 0xe0c   : > { %v2204_v43 = vpop.f32.mrf.mxu1 }
 0xe14   : > { %v2207_v61 = vpop.f32.mrf.mxu1 }
 0xe15   : > { %v2356_v15 = vmul.f32 0.005, %v2207_v61 }
 0xe1c   : > { %v2209_v3 = vpop.f32.mrf.mxu1 }
 0xe1d   : > { %v2357_v35 = vmul.f32 0.005, %v2209_v3 }
 0xe24   : > { %v2212_v52 = vpop.f32.mrf.mxu1 }
 0xe25   : > { %v2358_v0 = vmul.f32 0.005, %v2212_v52 }
 0xe27   : > { %v2366_v12 = vsub.f32 %v4071_v18, %v2358_v0 }
 0xe2c   : > { %v2214_v60 = vpop.f32.mrf.mxu1 }
 0xe2d   : > { %v2359_v9 = vmul.f32 0.005, %v2214_v60 }
 0xe2f   : > { %v2367_v22 = vsub.f32 %v4064_v29, %v2359_v9 }
 0xe34   : > { %v2217_v33 = vpop.f32.mrf.mxu1 }
 0xe35   : > { %v2360_v25 = vmul.f32 0.005, %v2217_v33  ;;  %v2355_v33 = vmul.f32 0.005, %v2204_v43 }
 0xe37   : > { %v2368_v32 = vsub.f32 %v4058_v24, %v2360_v25  ;;  %v2560_v24 = vsel %vm2256_vm1, 1.0, %v4296_v63  ;;  %v2363_v43 = vsub.f32 %v4089_v39, %v2355_v33 }
 0xe39   : > { %v1655_v13 = vpop.xlane.xlu2 %1654 }
 0xe3a   : > { %v1661_v7 = vmul.f32 %v1655_v13, %v3678_v49 }
 0xe3c   : > { %v1665_v21 = vadd.f32 1e-05, %v1661_v7  ;;  %v2219_v17 = vpop.f32.mrf.mxu1  ;;  %v2403_v7 = vpack.c.bf16 %v2367_v22, %v2366_v12 }
 0xe3d   : > { %v2361_v5 = vmul.f32 0.005, %v2219_v17 }
 0xe3e   : > { %2734 = vrsqrt.f32 %v1665_v21  ;;  %vm1693_vm3 = vweird.f32 %v1665_v21 }
 0xe3f   : > { %v2369_v46 = vsub.f32 %v4061_v44, %v2361_v5  ;;  %v2365_v44 = vsub.f32 %v4075_v28, %v2357_v35  ;;  %v2362_v28 = vsub.f32 %v4098_v53, %v2354_v36 }
 0xe41   : > { %v2404_v34 = vpack.c.bf16 %v2369_v46, %v2368_v32  ;;  %v1658_v58 = vpop.xlane.xlu2 %1657  ;;  %v2401_v39 = vpack.c.bf16 %v2363_v43, %v2362_v28 }
 0xe42   : > { %v1662_v38 = vmul.f32 %v1658_v58, %v3678_v49  ;;  %v2364_v49 = vsub.f32 %v4085_v8, %v2356_v15 }
 0xe43   : > { %2413 = vmatpush.bf16.msra.mxu3 %v2404_v34 }
 0xe44   : > { %v2735_v60 = vpop.eup %2734  ;;  %v1666_v52 = vadd.f32 1e-05, %v1662_v38  ;;  %v2252_v13 = vpop.f32.mrf.mxu1  ;;  %v2402_v17 = vpack.c.bf16 %v2365_v44, %v2364_v49  ;;  %v4297_v38 = vld [vmem:[#allocation2_spill] sm:$0xff]  ;;  %v4303_v44 = vld [vmem:[#allocation8_spill] sm:$0xff] }
 0xe45   : > { %v1688_v3 = vmul.f32 %v2735_v60, %v1665_v21  ;;  %v4196_v29 = vmul.f32 %v2560_v24, %v2252_v13  ;;  %vm1694_vm2 = vweird.f32 %v2735_v60  ;;  %v4302_v24 = vld [vmem:[#allocation7_spill] sm:$0xff] }
 0xe46   : > { %2736 = vrsqrt.f32 %v1666_v52  ;;  %vm1695_vm4 = vmor %vm1693_vm3, %vm1694_vm2  ;;  %vm1703_vm6 = vweird.f32 %v1666_v52 }
 0xe47   : > { %v1689_v61 = vmul.f32 %v2735_v60, %v1688_v3  ;;  %v2260_v18 = vpack.c.bf16 %v4196_v29, %v4196_v29  ;;  %2414 = vmatpush.bf16.msra.mxu3 %v2403_v7 }
 0xe49   : > { %v1690_v25 = vmul.f32 0.5, %v1689_v61  ;;  %v2262_v63 = vsel %vm1854_vm11, %v2260_v18, 0 }
 0xe4a   : > { %2271 = vmatpush.bf16.msrb.mxu1 %v2262_v63  ;;  %2576 = vmatpush.bf16.msrb.mxu2 %v2262_v63 }
 0xe4b   : > { %v1691_v9 = vsub.f32 1.5, %v1690_v25  ;;  %2415 = vmatpush.bf16.msra.mxu3 %v2402_v17 }
 0xe4c   : > { %v2737_v10 = vpop.eup %2736  ;;  %v2254_v8 = vpop.f32.mrf.mxu1 }
 0xe4d   : > { %v1692_v5 = vmul.f32 %v2735_v60, %v1691_v9  ;;  %v1698_v0 = vmul.f32 %v2737_v10, %v1666_v52  ;;  %2561 = vmatmul.msk.bf16.vlgmr.msrb.gmra.mxu1 %vm1841_vm13, %v3930_v14  ;;  %2564 = vmatmul.msk.bf16.vlgmr.msrb.gmra.mxu2 %vm1841_vm13, %v3942_v31  ;;  %vm1704_vm5 = vweird.f32 %v2737_v10 }
 0xe4e   : > { %vm1705_vm7 = vmor %vm1703_vm6, %vm1704_vm5 }
 0xe4f   : > { %v1696_v32 = vsel %vm1695_vm4, %v2735_v60, %v1692_v5  ;;  %v1699_v46 = vmul.f32 %v2737_v10, %v1698_v0  ;;  %2416 = vmatpush.bf16.msra.mxu3 %v2401_v39  ;;  %v4298_v60 = vld [vmem:[#allocation3_spill] sm:$0xff] }
 0xe50   : > { %v1709_v35 = vmul.f32 %v1696_v32, %v4175_v56  ;;  %v4299_v56 = vld [vmem:[#allocation5_spill] sm:$0xff] }
 0xe51   : > { %v1700_v53 = vmul.f32 0.5, %v1699_v46 }
 0xe52   : > { %v1714_v21 = vmul.f32 %v3743_v30, %v1709_v35 }
 0xe53   : > { %v1701_v22 = vsub.f32 1.5, %v1700_v53 }
 0xe54   : > { %v4213_v15 = vadd.f32 %v4297_v38, %v1714_v21 }
 0xe55   : > { %v1702_v34 = vmul.f32 %v2737_v10, %v1701_v22 }
 0xe56   : > { %v1735_v33 = vrot.slane %v4213_v15, 1 }
 0xe57   : > { %v1706_v58 = vsel %vm1705_vm7, %v2737_v10, %v1702_v34 }
 0xe58   : > { %v1710_v14 = vmul.f32 %v1706_v58, %v4180_v50  ;;  %v4300_v50 = vld [vmem:[#allocation4_spill] sm:$0xff] }
 0xe5a   : > { %v1715_v31 = vmul.f32 %v3743_v30, %v1710_v14  ;;  %v4301_v30 = vld [vmem:[#allocation6_spill] sm:$0xff] }
 0xe5c   : > { %v1720_v12 = vadd.f32 %v4297_v38, %v1715_v31 }
 0xe5d   : > { %2562 = vmatmul.msk.bf16.gmra.mxu1 %vm1841_vm13, %v4298_v60  ;;  %2565 = vmatmul.msk.bf16.gmra.mxu2 %vm1841_vm13, %v4299_v56 }
 0xe5e   : > { %v1736_v52 = vrot.slane %v1720_v12, 1 }
 0xe60   : > { %v1737_v13 = vsel %vm1724_vm9, %v1735_v33, %v1736_v52 }
 0xe61   : > { %1738 = vrot.lane.b32.xlu2 %v1737_v13, %s2751_s7 }
 0xe6d   : > { %2563 = vmatmul.msk.bf16.gmra.mxu1 %vm1841_vm13, %v4300_v50  ;;  %2566 = vmatmul.msk.bf16.gmra.mxu2 %vm1841_vm13, %v4301_v30 }
 0xe7d   : > { %2567 = vmatmul.msk.bf16.gmra.mxu2 %vm1841_vm13, %v4302_v24 }
 0xe8d   : > { %2568 = vmatmul.msk.bf16.gmra.mxu2 %vm1841_vm13, %v4303_v44 }
 0xeca   : > { %v2273_v28 = vpop.f32.mrf.mxu1 }
 0xed0   : > { %v2288_v3 = vpop.f32.mrf.mxu2 }
 0xed1   : > { %v2326_v7 = vmul.f32 0.005, %v2288_v3 }
 0xed2   : > { %v2275_v10 = vpop.f32.mrf.mxu1 }
 0xed3   : > { %v2342_v61 = vsub.f32 %v4015_v42, %v2326_v7 }
 0xed8   : > { %v2290_v36 = vpop.f32.mrf.mxu2 }
 0xed9   : > { %v2327_v49 = vmul.f32 0.005, %v2290_v36 }
 0xeda   : > { %v2278_v5 = vpop.f32.mrf.mxu1 }
 0xedb   : > { %v2343_v18 = vsub.f32 %v4010_v45, %v2327_v49  ;;  %v2320_v49 = vmul.f32 0.005, %v2273_v28 }
 0xedd   : > { %v2380_v43 = vpack.c.bf16 %v2343_v18, %v2342_v61 }
 0xee0   : > { %v2293_v25 = vpop.f32.mrf.mxu2 }
 0xee1   : > { %v2328_v52 = vmul.f32 0.005, %v2293_v25  ;;  %v1739_v25 = vpop.permute.xlu2 %1738 }
 0xee2   : > { %v2280_v32 = vpop.f32.mrf.mxu1 }
 0xee3   : > { %v2344_v30 = vsub.f32 %v4007_v51, %v2328_v52 }
 0xee8   : > { %v2295_v63 = vpop.f32.mrf.mxu2 }
 0xee9   : > { %v2329_v60 = vmul.f32 0.005, %v2295_v63  ;;  %v1732_v63 = vperm.slane %v4213_v15, 0 }
 0xeea   : > { %v2283_v21 = vpop.f32.mrf.mxu1 }
 0xeeb   : > { %v2324_v44 = vmul.f32 0.005, %v2283_v21 }
 0xeed   : > { %v2340_v7 = vsub.f32 %v4024_v20, %v2324_v44  ;;  %v1741_v20 = vsel %vm385_vm0, %v1732_v63, %v1739_v25  ;;  %v2149_v44 = vsel %vm1811_vm14, %v4144_v54, 0.0 }
 0xef0   : > { %v2298_v17 = vpop.f32.mrf.mxu2 }
 0xef1   : > { %v2330_v38 = vmul.f32 0.005, %v2298_v17  ;;  %v2376_v17 = vpack.c.bf16 %v1741_v20, %v1741_v20 }
 0xef2   : > { %v2285_v50 = vpop.f32.mrf.mxu1 }
 0xef3   : > { %v2346_v13 = vsub.f32 %v3998_v40, %v2330_v38  ;;  %v2321_v40 = vmul.f32 0.005, %v2275_v10 }
 0xef5   : > { %v2337_v51 = vsub.f32 %v4037_v47, %v2321_v40 }
 0xef8   : > { %v2300_v9 = vpop.f32.mrf.mxu2 }
 0xef9   : > { %v2331_v58 = vmul.f32 0.005, %v2300_v9 }
 0xefb   : > { %v2347_v56 = vsub.f32 %v3993_v2, %v2331_v58  ;;  %v2322_v2 = vmul.f32 0.005, %v2278_v5 }
 0xefd   : > { %v2338_v61 = vsub.f32 %v4034_v62, %v2322_v2 }
 0xf00   : > { %v2303_v8 = vpop.f32.mrf.mxu2 }
 0xf01   : > { %v2332_v34 = vmul.f32 0.005, %v2303_v8 }
 0xf03   : > { %v2348_v12 = vsub.f32 %v3990_v59, %v2332_v34  ;;  %v2323_v59 = vmul.f32 0.005, %v2280_v32 }
 0xf05   : > { %v2339_v36 = vsub.f32 %v4028_v4, %v2323_v59  ;;  %v2313_v4 = vsel %vm385_vm0, %v4196_v29, 0.0  ;;  %v2141_v29 = vmul.f32 %v4152_v37, %v4129_v23  ;;  %v2150_v59 = vrot.slane %v2149_v44, 4 }
 0xf06   : > { %v2314_v62 = vrot.slane %v2313_v4, 4 }
 0xf07   : > { %v2378_v18 = vpack.c.bf16 %v2339_v36, %v2338_v61  ;;  %v2142_v34 = vsel %vm385_vm0, %v2141_v29, 0.0 }
 0xf08   : > { %v2305_v0 = vpop.f32.mrf.mxu2  ;;  %v2315_v28 = vadd.f32 %v2314_v62, %v2313_v4 }
 0xf09   : > { %v2333_v35 = vmul.f32 0.005, %v2305_v0 }
 0xf0a   : > { %v2316_v9 = vrot.slane %v2315_v28, 2 }
 0xf0b   : > { %v2349_v14 = vsub.f32 %v3985_v57, %v2333_v35  ;;  %v2325_v57 = vmul.f32 0.005, %v2285_v50  ;;  %v2222_v35 = vsel %vm385_vm0, %v4156_v6, 0.0 }
 0xf0c   : > { %v2317_v47 = vadd.f32 %v2316_v9, %v2315_v28 }
 0xf0d   : > { %v2383_v33 = vpack.c.bf16 %v2349_v14, %v2348_v12  ;;  %v2341_v3 = vsub.f32 %v4018_v27, %v2325_v57  ;;  %v2336_v27 = vsub.f32 %v4042_v11, %v2320_v49 }
 0xf0e   : > { %v2318_v10 = vrot.slane %v2317_v47, 1 }
 0xf10   : > { %v2308_v39 = vpop.f32.mrf.mxu2  ;;  %v2319_v8 = vadd.f32 %v2318_v10, %v2317_v47 }
 0xf11   : > { %v2334_v46 = vmul.f32 0.005, %v2308_v39 }
 0xf12   : > { %v2352_v5 = vmul.f32 0.005, %v2319_v8 }
 0xf13   : > { %v2350_v42 = vsub.f32 %v3979_v48, %v2334_v46  ;;  %v2345_v48 = vsub.f32 %v4002_v16, %v2329_v60  ;;  %v2379_v16 = vpack.c.bf16 %v2341_v3, %v2340_v7  ;;  %v2151_v3 = vadd.f32 %v2150_v59, %v2149_v44 }
 0xf14   : > { %v2353_v15 = vsub.f32 %v4095_v26, %v2352_v5 }
 0xf15   : > { %v2381_v24 = vpack.c.bf16 %v2345_v48, %v2344_v30 }
 0xf16   : > { %v2385_v11 = vperm.slane %v2353_v15, 0 }
 0xf18   : > { %v2310_v53 = vpop.f32.mrf.mxu2 }
 0xf19   : > { %v2335_v22 = vmul.f32 0.005, %v2310_v53 }
 0xf1b   : > { %v2351_v45 = vsub.f32 %v3982_v19, %v2335_v22  ;;  %v2382_v19 = vpack.c.bf16 %v2347_v56, %v2346_v13  ;;  %v2223_v22 = vrot.slane %v2222_v35, 4 }
 0xf1d   : > { %v2384_v31 = vpack.c.bf16 %v2351_v45, %v2350_v42  ;;  %v2143_v42 = vrot.slane %v2142_v34, 4  ;;  %v2224_v45 = vadd.f32 %v2223_v22, %v2222_v35 }
 0xf1f   : > { %2386 = vmatpush.bf16.msra.mxu1 %v2384_v31  ;;  %v2144_v26 = vadd.f32 %v2143_v42, %v2142_v34  ;;  %v2225_v21 = vrot.slane %v2224_v45, 2 }
 0xf21   : > { %v2145_v58 = vrot.slane %v2144_v26, 2  ;;  %v2226_v14 = vadd.f32 %v2225_v21, %v2224_v45 }
 0xf23   : > { %2387 = vmatpush.bf16.msra.mxu1 %v2383_v33  ;;  %v2146_v31 = vadd.f32 %v2145_v58, %v2144_v26  ;;  %v2227_v38 = vrot.slane %v2226_v14, 1 }
 0xf25   : > { %v2147_v12 = vrot.slane %v2146_v31, 1  ;;  %v2228_v60 = vadd.f32 %v2227_v38, %v2226_v14 }
 0xf27   : > { %2388 = vmatpush.bf16.msra.mxu1 %v2382_v19  ;;  %v2148_v56 = vadd.f32 %v2147_v12, %v2146_v31  ;;  %v2370_v33 = vmul.f32 0.005, %v2228_v60 }
 0xf29   : > { %v2371_v23 = vsub.f32 %v4121_v55, %v2370_v33  ;;  %v2372_v37 = vmul.f32 0.005, %v2148_v56  ;;  %v2152_v55 = vrot.slane %v2151_v3, 2 }
 0xf2b   : > { %2389 = vmatpush.bf16.msra.mxu1 %v2381_v24  ;;  %v2373_v6 = vsub.f32 %v4127_v1, %v2372_v37  ;;  %v2405_v52 = vperm.slane %v2371_v23, 0  ;;  %v2153_v2 = vadd.f32 %v2152_v55, %v2151_v3 }
 0xf2d   : > { %v2423_v50 = vperm.slane %v2373_v6, 0  ;;  %v2154_v7 = vrot.slane %v2153_v2, 1 }
 0xf2f   : > { %2390 = vmatpush.bf16.msra.mxu1 %v2380_v43  ;;  %v2377_v43 = vpack.c.bf16 %v2337_v51, %v2336_v27  ;;  %v2155_v1 = vadd.f32 %v2154_v7, %v2153_v2 }
 0xf31   : > { %v2374_v40 = vmul.f32 0.005, %v2155_v1 }
 0xf33   : > { %2391 = vmatpush.bf16.msra.mxu1 %v2379_v16  ;;  %v2375_v36 = vsub.f32 %v4139_v41, %v2374_v40 }
 0xf35   : > { %v2428_v16 = vperm.slane %v2375_v36, 0 }
 0xf37   : > { %2392 = vmatpush.bf16.msra.mxu1 %v2378_v18 }
 0xf3b   : > { %2393 = vmatpush.bf16.msra.mxu1 %v2377_v43 }
 0xf3e   : > { %2394 = vmatmul.bf16.vlgmr.msra.gmra.mxu1 %v2376_v17 }
 0xfbb   : > { %v2395_v0 = vpop.f32.mrf.mxu1 }
 0xfbc   : > { %v2396_v39 = vadd.f32 %v2395_v0, %v2385_v11 }
 0xfbe   : > { %v2399_v32 = vmax.f32 %v2396_v39, 0.0 }
 0xfc0   : > { %v2400_v46 = vpack.c.bf16 %v2399_v32, %v2399_v32 }
 0xfc2   : > { %2569 = vmatmul.msk.bf16.vlgmr.msra.gmra.mxu3 %vm385_vm0, %v2400_v46 }
 0xfc3   : > { %v2397_v53 = vpop.f32.mrf.mxu1 }
0x1045   : > { %v2418_v13 = vpop.f32.mrf.mxu3 }
0x1046   : > { %v2419_v48 = vadd.f32 %v2418_v13, %v2405_v52 }
0x1048   : > { %v2422_v19 = vmax.f32 %v2419_v48, 0.0 }
0x104a   : > { %v2424_v30 = vmul.f32 %v2423_v50, %v2422_v19 }
0x104c   : > { %v2425_v57 = vsel %vm385_vm0, %v2424_v30, 0.0 }
0x104d   : > { %v2420_v24 = vpop.f32.mrf.mxu3  ;;  %2426 = vadd.xlane.f32.xlu2 %v2425_v57 }
0x10c0   : > { %v2427_v49 = vpop.xlane.xlu2 %2426 }
0x10c1   : > { %v2429_v61 = vadd.f32 %v2428_v16, %v2427_v49 }
0x10c3   : > { %2432 = vperm.xlu0 %2592, %v2429_v61  }
0x1135   : > { %v2433_v51 = vpop.permute.xlu0 %2432 }
0x1136   : > { %2435 = vst [vmem:[%s222_s22] sm:$0xff] %v2433_v51 }
0x1137 PF: > { %s15_s18 = sadd.s32 1, %s2748_s18  }
0x1138   : > { %p12_p4 = scmp.ge.s32.totalorder %s15_s18, 4  }
0x113a   :  { %14 = sbr.rel (!%p12_p4) target bundleno = 1 (0x1), region = 71 }

</bundles_post_ra>
